<compile_context>
chip_gen: v7x
topology: tpu7x:2x2x1
jax: 0.10.0
libtpu: 0.0.40
codegen_flags: <defaults>
</compile_context>

<pallas_src>
import functools
import math

import jax
import jax.numpy as jnp
from jax.experimental import pallas as pl
from jax.experimental.pallas import tpu as pltpu

# ----------------------------------------------------------------------------
# Config (shapes implied by the PyTorch __init__)
# ----------------------------------------------------------------------------
CFG = dict(
    in_dim=8,                # FLAME-parameter dim
    hidden_size=32,
    quant_factor=2,          # temporal downsample = 2**quant_factor = 4
    sequence_length=16,
    quant_sequence_length=4,
    num_attention_heads=2,
    intermediate_size=64,
    num_hidden_layers=1,     # fused kernels below implement exactly one layer
    n_embed=16,              # VQ codebook size
    zquant_dim=32,           # == hidden_size
)
BN_EPS = 1e-5
LN_EPS = 1e-5
LEAKY_SLOPE = 0.2
VQ_BETA = 0.25

C_PAD = 128                                  # lane-dense channel width
K_CONV = 5
PAD_T = 2
D_MODEL = CFG["hidden_size"]
NUM_HEADS = CFG["num_attention_heads"]
HEAD_DIM = D_MODEL // NUM_HEADS
ATTN_SCALE = 1.0 / math.sqrt(HEAD_DIM)

_TX_ARGNAMES = ("le_w", "le_b", "wqkv", "bqkv", "wout", "bout",
                "ln1g", "ln1b", "w1", "b1", "w2", "b2", "ln2g", "ln2b")


# ----------------------------------------------------------------------------
# In-kernel helpers (operate on values; all weights arrive pre-packed)
# ----------------------------------------------------------------------------
def _layer_norm_padded(x, gamma, beta, d_model):
    """LayerNorm over the real `d_model` channels of a (T, 128) slab whose pad
    lanes are exactly zero (so plain full-lane sums give the masked statistics)."""
    mu = jnp.sum(x, axis=-1, keepdims=True) / d_model
    ex2 = jnp.sum(x * x, axis=-1, keepdims=True) / d_model
    var = jnp.maximum(ex2 - mu * mu, 0.0)
    return (x - mu) * jax.lax.rsqrt(var + LN_EPS) * gamma + beta


def _erf(z):
    # Abramowitz & Stegun 7.1.26, |err| < 1.5e-7 (f32-exact surrogate for lax.erf,
    # built only from ops that are guaranteed to lower in Mosaic).
    a1, a2, a3, a4, a5 = (0.254829592, -0.284496736, 1.421413741,
                          -1.453152027, 1.061405429)
    p = 0.3275911
    s = jnp.where(z >= 0.0, 1.0, -1.0)
    a = jnp.abs(z)
    t = 1.0 / (1.0 + p * a)
    poly = ((((a5 * t + a4) * t + a3) * t + a2) * t + a1) * t
    return s * (1.0 - poly * jnp.exp(-a * a))


def _gelu_exact(x):
    return 0.5 * x * (1.0 + _erf(x * 0.7071067811865476))


def _tx_layer(x, w, *, nheads, d_model, scale):
    """One nn.TransformerEncoderLayer (batch_first, post-norm, exact GELU, eval).

    x : (T, 128) f32, pad lanes zero.  Per-head q/k/v each occupy their own
    128-lane block in the packed QKV projection so every slice is lane-aligned;
    the pad lanes of q/k are zero, so contracting over all 128 lanes equals the
    real head_dim contraction.
    """
    xb = x.astype(jnp.bfloat16)
    qkv = jnp.dot(xb, w["wqkv"], preferred_element_type=jnp.float32) + w["bqkv"]

    attn = None
    for h in range(nheads):
        q = qkv[:, h * 128:(h + 1) * 128]
        k = qkv[:, (nheads + h) * 128:(nheads + h + 1) * 128]
        v = qkv[:, (2 * nheads + h) * 128:(2 * nheads + h + 1) * 128]
        s = jax.lax.dot_general(
            q.astype(jnp.bfloat16), k.astype(jnp.bfloat16),
            (((1,), (1,)), ((), ())), preferred_element_type=jnp.float32) * scale
        m = jnp.max(s, axis=-1, keepdims=True)
        p = jnp.exp(s - m)
        p = p * pl.reciprocal(jnp.sum(p, axis=-1, keepdims=True), approx=True)
        o_h = jnp.dot(p.astype(jnp.bfloat16), v.astype(jnp.bfloat16),
                      preferred_element_type=jnp.float32)          # (T, 128)
        w_h = w["wout"][h * 128:(h + 1) * 128, :]                   # (128, 128) bf16
        c = jnp.dot(o_h.astype(jnp.bfloat16), w_h,
                    preferred_element_type=jnp.float32)
        attn = c if attn is None else attn + c
    sa = attn + w["bout"]

    x1 = _layer_norm_padded(x + sa, w["ln1g"], w["ln1b"], d_model)
    h1 = jnp.dot(x1.astype(jnp.bfloat16), w["w1"],
                 preferred_element_type=jnp.float32) + w["b1"]
    h1 = _gelu_exact(h1)
    h2 = jnp.dot(h1.astype(jnp.bfloat16), w["w2"],
                 preferred_element_type=jnp.float32) + w["b2"]
    return _layer_norm_padded(x1 + h2, w["ln2g"], w["ln2b"], d_model)


# ----------------------------------------------------------------------------
# Fused Pallas kernels
# ----------------------------------------------------------------------------
def _conv_bn_kernel(p_ref, w_ref, b_ref, s_ref, t_ref, o_ref):
    """im2col-matmul + bias + LeakyReLU(0.2) + BatchNorm(eval) fused."""
    y = jnp.dot(p_ref[...].astype(jnp.bfloat16), w_ref[...],
                preferred_element_type=jnp.float32) + b_ref[...]
    y = jnp.where(y >= 0.0, y, LEAKY_SLOPE * y)
    o_ref[...] = y * s_ref[...] + t_ref[...]


def _conv_bias_kernel(p_ref, w_ref, b_ref, o_ref):
    """Plain conv (cross-smooth layer): im2col-matmul + bias."""
    o_ref[...] = jnp.dot(p_ref[...].astype(jnp.bfloat16), w_ref[...],
                         preferred_element_type=jnp.float32) + b_ref[...]


def _enc_tx_vq_kernel(x_ref, *rest, nheads, d_model, scale, beta):
    """Encoder: linear embedding + transformer layer + vector quantizer, fused.

    Outputs the quantized features (lane-dense VMEM) and the commitment-loss
    forward value as an SMEM scalar.
    """
    n_tx = len(_TX_ARGNAMES)
    w = {k: r[...] for k, r in zip(_TX_ARGNAMES, rest[:n_tx])}
    cb_ref, cbsq_ref, q_ref, loss_ref = rest[n_tx:]

    e = cb_ref[...]                      # (K, 128) f32, pad lanes zero
    e2 = cbsq_ref[...]                   # (1, K)  precomputed ||e||^2
    n_codes = e.shape[0]
    batch, t_q, _ = x_ref.shape

    total = jnp.float32(0.0)
    for b in range(batch):
        x = x_ref[b]                     # (Tq, 128)
        x = jnp.dot(x.astype(jnp.bfloat16), w["le_w"],
                    preferred_element_type=jnp.float32) + w["le_b"]
        z = _tx_layer(x, w, nheads=nheads, d_model=d_model, scale=scale)

        # squared distances ||z - e||^2  (pad lanes are zero on both sides)
        z2 = jnp.sum(z * z, axis=-1, keepdims=True)                       # (Tq, 1)
        cross = jax.lax.dot_general(z, e, (((1,), (1,)), ((), ())),
                                    preferred_element_type=jnp.float32)   # (Tq, K)
        d = z2 + e2 - 2.0 * cross
        dmin = jnp.min(d, axis=-1, keepdims=True)
        col = jax.lax.broadcasted_iota(jnp.int32, d.shape, 1).astype(jnp.float32)
        idx = jnp.min(jnp.where(d <= dmin, col, jnp.float32(n_codes)),
                      axis=-1, keepdims=True)                             # first argmin
        onehot = (col == idx).astype(jnp.float32)
        zq = jnp.dot(onehot, e, preferred_element_type=jnp.float32)       # (Tq, 128)

        q_ref[b] = zq
        total = total + jnp.sum((zq - z) ** 2)

    # forward value of mean((zq.detach()-z)^2) + beta*mean((zq-z.detach())^2)
    loss_ref[0] = (1.0 + beta) * total / (batch * t_q * d_model)


def _dec_tx_kernel(x_ref, *rest, nheads, d_model, scale):
    """Decoder: linear embedding + transformer layer, fused; one batch element
    per grid step (parallel over the batch for v7x's two TensorCores)."""
    n_tx = len(_TX_ARGNAMES)
    w = {k: r[...] for k, r in zip(_TX_ARGNAMES, rest[:n_tx])}
    (o_ref,) = rest[n_tx:]
    x = x_ref[0]                          # (T, 128)
    x = jnp.dot(x.astype(jnp.bfloat16), w["le_w"],
                preferred_element_type=jnp.float32) + w["le_b"]
    o_ref[0] = _tx_layer(x, w, nheads=nheads, d_model=d_model, scale=scale)


# ----------------------------------------------------------------------------
# Thin JAX glue (only cheap slices / concats / reshapes; no gathers/scatters)
# ----------------------------------------------------------------------------
def _im2col(x, stride, mode):
    """Patches for a k=5, pad=2 Conv1d on channels-last input via 5 shifted slices."""
    b, t, c = x.shape
    xp = jnp.pad(x, ((0, 0), (PAD_T, PAD_T), (0, 0)), mode=mode)
    t_out = (t + 2 * PAD_T - K_CONV) // stride + 1
    span = stride * (t_out - 1) + 1
    taps = [xp[:, j:j + span:stride, :] for j in range(K_CONV)]
    patches = jnp.concatenate(taps, axis=-1)            # (B, T_out, 5*128)
    return patches.reshape(b * t_out, K_CONV * c), t_out


def _conv_block(x, cw, *, stride, mode):
    b = x.shape[0]
    patches, t_out = _im2col(x, stride, mode)
    y = pl.pallas_call(
        _conv_bn_kernel,
        out_shape=jax.ShapeDtypeStruct((patches.shape[0], C_PAD), jnp.float32),
    )(patches, cw["w"], cw["b"], cw["s"], cw["t"])
    return y.reshape(b, t_out, C_PAD)


def _deconv_block(x, cw):
    """ConvTranspose1d(k=5, s=2, p=2, op=1) + LeakyReLU + BN as one fused kernel.
    Zero-insertion is a stack+reshape (no scatter)."""
    b, t, c = x.shape
    u = jnp.stack([x, jnp.zeros_like(x)], axis=2).reshape(b, 2 * t, c)
    up = jnp.pad(u, ((0, 0), (PAD_T, PAD_T), (0, 0)))
    t_out = 2 * t
    taps = [up[:, j:j + t_out, :] for j in range(K_CONV)]
    patches = jnp.concatenate(taps, axis=-1).reshape(b * t_out, K_CONV * c)
    y = pl.pallas_call(
        _conv_bn_kernel,
        out_shape=jax.ShapeDtypeStruct((b * t_out, C_PAD), jnp.float32),
    )(patches, cw["w"], cw["b"], cw["s"], cw["t"])
    return y.reshape(b, t_out, C_PAD)


def _cross_conv(x, cw):
    b = x.shape[0]
    patches, t_out = _im2col(x, 1, "constant")          # zeros padding
    y = pl.pallas_call(
        _conv_bias_kernel,
        out_shape=jax.ShapeDtypeStruct((patches.shape[0], C_PAD), jnp.float32),
    )(patches, cw["w"], cw["b"])
    return y.reshape(b, t_out, C_PAD)


def _tx_weight_list(tw):
    return [tw[k] for k in _TX_ARGNAMES]


def _enc_transformer_vq(h, tw, codebook, codebook_sq):
    b, t_q, c = h.shape
    ws = _tx_weight_list(tw)
    quant, loss = pl.pallas_call(
        functools.partial(_enc_tx_vq_kernel, nheads=NUM_HEADS, d_model=D_MODEL,
                          scale=ATTN_SCALE, beta=VQ_BETA),
        out_shape=(jax.ShapeDtypeStruct((b, t_q, c), jnp.float32),
                   jax.ShapeDtypeStruct((1,), jnp.float32)),
        out_specs=(pl.BlockSpec(memory_space=pltpu.MemorySpace.VMEM),
                   pl.BlockSpec(memory_space=pltpu.MemorySpace.SMEM)),
    )(h, *ws, codebook, codebook_sq)
    return quant, loss[0]


def _dec_transformer(x, tw):
    b, t, c = x.shape
    ws = _tx_weight_list(tw)

    def _full(a):
        return pl.BlockSpec(a.shape, lambda i, nd=a.ndim: (0,) * nd)

    return pl.pallas_call(
        functools.partial(_dec_tx_kernel, nheads=NUM_HEADS, d_model=D_MODEL,
                          scale=ATTN_SCALE),
        grid=(b,),
        in_specs=[pl.BlockSpec((1, t, c), lambda i: (i, 0, 0))] + [_full(a) for a in ws],
        out_specs=pl.BlockSpec((1, t, c), lambda i: (i, 0, 0)),
        out_shape=jax.ShapeDtypeStruct((b, t, c), jnp.float32),
        compiler_params=pltpu.CompilerParams(dimension_semantics=("parallel",)),
    )(x, *ws)


# ----------------------------------------------------------------------------
# Model forward (VQVAE.forward): encode -> quantize -> decode
# ----------------------------------------------------------------------------
def vqvae_forward(W, x):
    b, t, c_in = x.shape
    h = jnp.pad(x, ((0, 0), (0, 0), (0, C_PAD - c_in)))          # lane-pad once

    # ---- encoder squasher ----
    h = _conv_block(h, W["enc_conv"][0], stride=2, mode="edge")  # replicate pad
    for cw in W["enc_conv"][1:]:
        h = _conv_block(h, cw, stride=1, mode="edge")
        h = jnp.maximum(h[:, 0::2, :], h[:, 1::2, :])            # MaxPool1d(2)

    # ---- encoder linear-embed + transformer + vector-quantizer (fused) ----
    quant, emb_loss = _enc_transformer_vq(h, W["enc_tx"], W["codebook"],
                                          W["codebook_sq"])

    # ---- decoder expander ----
    d = _deconv_block(quant, W["dec_deconv"])
    for cw in W["dec_conv"]:
        d = _conv_block(d, cw, stride=1, mode="edge")
        bd, td, cd = d.shape
        d = jnp.stack([d, d], axis=2).reshape(bd, 2 * td, cd)    # repeat_interleave(2, dim=1)

    # ---- decoder linear-embed + transformer (fused, parallel over batch) ----
    d = _dec_transformer(d, W["dec_tx"])

    # ---- cross-smooth conv ----
    out = _cross_conv(d, W["cross"])
    return out[..., :c_in], emb_loss


# ----------------------------------------------------------------------------
# Deterministic "PyTorch-layout" init + one-time packing to kernel layout
# ----------------------------------------------------------------------------
def init_params(key):
    keys = iter(jax.random.split(key, 64))
    H, Din, Fi = CFG["hidden_size"], CFG["in_dim"], CFG["intermediate_size"]

    def w(shape, s=0.05):
        return s * jax.random.normal(next(keys), shape, jnp.float32)

    def bn(c):
        return dict(gamma=1.0 + w((c,), 0.02), beta=w((c,), 0.02),
                    mean=jnp.zeros((c,), jnp.float32),
                    var=jnp.ones((c,), jnp.float32))

    def tlayer():
        return dict(in_w=w((3 * H, H)), in_b=w((3 * H,)),
                    out_w=w((H, H)), out_b=w((H,)),
                    ln1_g=jnp.ones((H,), jnp.float32), ln1_b=jnp.zeros((H,), jnp.float32),
                    ln2_g=jnp.ones((H,), jnp.float32), ln2_b=jnp.zeros((H,), jnp.float32),
                    ff_w1=w((Fi, H)), ff_b1=w((Fi,)),
                    ff_w2=w((H, Fi)), ff_b2=w((H,)))

    P = {}
    P["enc_convs"] = [dict(w=w((H, Din, 5)), b=w((H,)), bn=bn(H))]
    for _ in range(1, CFG["quant_factor"]):
        P["enc_convs"].append(dict(w=w((H, H, 5)), b=w((H,)), bn=bn(H)))
    P["enc_le"] = dict(w=w((H, H)), b=w((H,)))
    P["enc_layer"] = tlayer()
    P["codebook"] = jax.random.uniform(
        next(keys), (CFG["n_embed"], CFG["zquant_dim"]), jnp.float32,
        -1.0 / CFG["n_embed"], 1.0 / CFG["n_embed"])
    P["dec_ct"] = dict(w=w((H, H, 5)), b=w((H,)), bn=bn(H))      # ConvTranspose1d (Cin,Cout,K)
    P["dec_convs"] = [dict(w=w((H, H, 5)), b=w((H,)), bn=bn(H))
                      for _ in range(1, CFG["quant_factor"])]
    P["dec_le"] = dict(w=w((H, H)), b=w((H,)))
    P["dec_layer"] = tlayer()
    P["cross"] = dict(w=w((Din, H, 5)), b=w((Din,)))
    return P


def pack_params(P):
    """One-time (outside jit) repack: transpose, zero-pad to 128 lanes, cast the
    matmul weights to bf16, fold BN into scale/shift, pack per-head QKV blocks."""
    H, NH, dh = D_MODEL, NUM_HEADS, HEAD_DIM
    bf16 = jnp.bfloat16

    def padmat(m):                                   # (r,c) -> (128,128) bf16
        r, c = m.shape
        return jnp.pad(m, ((0, C_PAD - r), (0, C_PAD - c))).astype(bf16)

    def padvec(v):                                   # (c,) -> (1,128) f32
        return jnp.pad(v, (0, C_PAD - v.shape[0])).reshape(1, C_PAD).astype(jnp.float32)

    def pack_conv(w3):                               # Conv1d weight (Cout,Cin,K)
        c_out, c_in, k = w3.shape
        t = jnp.transpose(w3, (2, 1, 0))             # (K, Cin, Cout)
        t = jnp.pad(t, ((0, 0), (0, C_PAD - c_in), (0, C_PAD - c_out)))
        return t.reshape(k * C_PAD, C_PAD).astype(bf16)

    def pack_convT(w3):                              # ConvTranspose1d weight (Cin,Cout,K)
        c_in, c_out, k = w3.shape
        t = jnp.transpose(w3[:, :, ::-1], (2, 0, 1))  # flipped kernel -> (K, Cin, Cout)
        t = jnp.pad(t, ((0, 0), (0, C_PAD - c_in), (0, C_PAD - c_out)))
        return t.reshape(k * C_PAD, C_PAD).astype(bf16)

    def pack_conv_block(c, transpose=False):
        scale = c["bn"]["gamma"] / jnp.sqrt(c["bn"]["var"] + BN_EPS)
        shift = c["bn"]["beta"] - c["bn"]["mean"] * scale
        return dict(w=pack_convT(c["w"]) if transpose else pack_conv(c["w"]),
                    b=padvec(c["b"]), s=padvec(scale), t=padvec(shift))

    def pack_tx(le, lp):
        Wq, Wk, Wv = lp["in_w"][:H], lp["in_w"][H:2 * H], lp["in_w"][2 * H:]
        bq, bk, bv = lp["in_b"][:H], lp["in_b"][H:2 * H], lp["in_b"][2 * H:]
        wblocks, bblocks = [], []
        for mat, vec in ((Wq, bq), (Wk, bk), (Wv, bv)):
            for hh in range(NH):
                wblocks.append(padmat(mat[hh * dh:(hh + 1) * dh].T))   # each head -> own 128-lane block
                bblocks.append(padvec(vec[hh * dh:(hh + 1) * dh]))
        wout_t = lp["out_w"].T
        wout_blocks = [padmat(wout_t[hh * dh:(hh + 1) * dh]) for hh in range(NH)]
        return dict(
            le_w=padmat(le["w"].T), le_b=padvec(le["b"]),
            wqkv=jnp.concatenate(wblocks, axis=1),        # (128, 3*NH*128) bf16
            bqkv=jnp.concatenate(bblocks, axis=1),        # (1,   3*NH*128) f32
            wout=jnp.concatenate(wout_blocks, axis=0),    # (NH*128, 128)   bf16
            bout=padvec(lp["out_b"]),
            ln1g=padvec(lp["ln1_g"]), ln1b=padvec(lp["ln1_b"]),
            w1=padmat(lp["ff_w1"].T), b1=padvec(lp["ff_b1"]),
            w2=padmat(lp["ff_w2"].T), b2=padvec(lp["ff_b2"]),
            ln2g=padvec(lp["ln2_g"]), ln2b=padvec(lp["ln2_b"]))

    W = {}
    W["enc_conv"] = [pack_conv_block(c) for c in P["enc_convs"]]
    W["enc_tx"] = pack_tx(P["enc_le"], P["enc_layer"])
    cb = P["codebook"]
    W["codebook"] = jnp.pad(cb, ((0, 0), (0, C_PAD - cb.shape[1]))).astype(jnp.float32)
    W["codebook_sq"] = jnp.sum(cb * cb, axis=1).reshape(1, -1).astype(jnp.float32)
    W["dec_deconv"] = pack_conv_block(P["dec_ct"], transpose=True)
    W["dec_conv"] = [pack_conv_block(c) for c in P["dec_convs"]]
    W["dec_tx"] = pack_tx(P["dec_le"], P["dec_layer"])
    W["cross"] = dict(w=pack_conv(P["cross"]["w"]), b=padvec(P["cross"]["b"]))
    return W


# ----------------------------------------------------------------------------
if __name__ == "__main__":
    root = jax.random.PRNGKey(0)
    kx, kp = jax.random.split(root)
    x = jax.random.normal(kx, (2, CFG["sequence_length"], CFG["in_dim"]), jnp.float32)

    params_torch_layout = init_params(kp)
    W = pack_params(params_torch_layout)     # one-time weight packing, outside jit

    fwd = jax.jit(vqvae_forward)
    dec, emb_loss = fwd(W, x)
    jax.block_until_ready((dec, emb_loss))

    assert dec.shape == (2, CFG["sequence_length"], CFG["in_dim"]), dec.shape
    assert emb_loss.shape == (), emb_loss.shape
    assert bool(jnp.isfinite(dec).all()) and bool(jnp.isfinite(emb_loss))
    # TODO(synk): the straight-through-estimator gradient of the quantizer and
    # training-time dropout/BN-stat updates are autograd/training behaviors;
    # only the forward values are reproduced here.
    print("KERNEL_OK")
</pallas_src>

<mosaic_0001>
module attributes {stable_mosaic.version = 11 : i64} {
  func.func @_conv_bn_kernel(%arg0: memref<16x640xf32, #tpu.memory_space<vmem>>, %arg1: memref<640x128xbf16, #tpu.memory_space<vmem>>, %arg2: memref<1x128xf32, #tpu.memory_space<vmem>>, %arg3: memref<1x128xf32, #tpu.memory_space<vmem>>, %arg4: memref<1x128xf32, #tpu.memory_space<vmem>>, %arg5: memref<16x128xf32, #tpu.memory_space<vmem>>) attributes {dimension_semantics = [], scalar_prefetch = 0 : i64, scratch_operands = 0 : i64, tpu.core_type = #tpu.core_type<tc>} {
    %c0 = arith.constant 0 : index
    %c0_0 = arith.constant 0 : index
    %0 = vector.load %arg0[%c0, %c0_0] : memref<16x640xf32, #tpu.memory_space<vmem>>, vector<16x640xf32>
    %1 = arith.truncf %0 : vector<16x640xf32> to vector<16x640xbf16>
    %c0_1 = arith.constant 0 : index
    %c0_2 = arith.constant 0 : index
    %2 = vector.load %arg1[%c0_1, %c0_2] : memref<640x128xbf16, #tpu.memory_space<vmem>>, vector<640x128xbf16>
    %cst = arith.constant dense<0.000000e+00> : vector<16x128xf32>
    %3 = tpu.matmul %1, %2, %cst {dimension_numbers = #tpu.dot_dimension_numbers<[1], [0], [0], [1], [0, 0, 1, 1], [], []>} : vector<16x640xbf16>, vector<640x128xbf16>, vector<16x128xf32> -> vector<16x128xf32>
    %c0_3 = arith.constant 0 : index
    %c0_4 = arith.constant 0 : index
    %4 = vector.load %arg2[%c0_3, %c0_4] : memref<1x128xf32, #tpu.memory_space<vmem>>, vector<1x128xf32>
    %5 = vector.broadcast %4 : vector<1x128xf32> to vector<16x128xf32>
    %6 = arith.addf %3, %5 : vector<16x128xf32>
    %cst_5 = arith.constant 0.000000e+00 : f32
    %7 = vector.broadcast %cst_5 : f32 to vector<16x128xf32>
    %8 = arith.cmpf oge, %6, %7 : vector<16x128xf32>
    %cst_6 = arith.constant 2.000000e-01 : f32
    %9 = vector.broadcast %cst_6 : f32 to vector<16x128xf32>
    %10 = arith.mulf %9, %6 : vector<16x128xf32>
    %11 = arith.select %8, %6, %10 : vector<16x128xi1>, vector<16x128xf32>
    %c0_7 = arith.constant 0 : index
    %c0_8 = arith.constant 0 : index
    %12 = vector.load %arg3[%c0_7, %c0_8] : memref<1x128xf32, #tpu.memory_space<vmem>>, vector<1x128xf32>
    %13 = vector.broadcast %12 : vector<1x128xf32> to vector<16x128xf32>
    %14 = arith.mulf %11, %13 : vector<16x128xf32>
    %c0_9 = arith.constant 0 : index
    %c0_10 = arith.constant 0 : index
    %15 = vector.load %arg4[%c0_9, %c0_10] : memref<1x128xf32, #tpu.memory_space<vmem>>, vector<1x128xf32>
    %16 = vector.broadcast %15 : vector<1x128xf32> to vector<16x128xf32>
    %17 = arith.addf %14, %16 : vector<16x128xf32>
    %c0_11 = arith.constant 0 : index
    %c0_12 = arith.constant 0 : index
    %18 = vector.load %arg5[%c0_11, %c0_12] : memref<16x128xf32, #tpu.memory_space<vmem>>, vector<16x128xf32>
    tpu.vector_store %arg5[%c0_11, %c0_12], %17 {strides = array<i32>} : memref<16x128xf32, #tpu.memory_space<vmem>>, vector<16x128xf32>,
    return
  }
}

module attributes {stable_mosaic.version = 11 : i64} {
  func.func @_enc_tx_vq_kernel(%arg0: memref<2x4x128xf32, #tpu.memory_space<vmem>>, %arg1: memref<128x128xbf16, #tpu.memory_space<vmem>>, %arg2: memref<1x128xf32, #tpu.memory_space<vmem>>, %arg3: memref<128x768xbf16, #tpu.memory_space<vmem>>, %arg4: memref<1x768xf32, #tpu.memory_space<vmem>>, %arg5: memref<256x128xbf16, #tpu.memory_space<vmem>>, %arg6: memref<1x128xf32, #tpu.memory_space<vmem>>, %arg7: memref<1x128xf32, #tpu.memory_space<vmem>>, %arg8: memref<1x128xf32, #tpu.memory_space<vmem>>, %arg9: memref<128x128xbf16, #tpu.memory_space<vmem>>, %arg10: memref<1x128xf32, #tpu.memory_space<vmem>>, %arg11: memref<128x128xbf16, #tpu.memory_space<vmem>>, %arg12: memref<1x128xf32, #tpu.memory_space<vmem>>, %arg13: memref<1x128xf32, #tpu.memory_space<vmem>>, %arg14: memref<1x128xf32, #tpu.memory_space<vmem>>, %arg15: memref<16x128xf32, #tpu.memory_space<vmem>>, %arg16: memref<1x16xf32, #tpu.memory_space<vmem>>, %arg17: memref<2x4x128xf32, #tpu.memory_space<vmem>>, %arg18: memref<1xf32, #tpu.memory_space<smem>>) attributes {dimension_semantics = [], scalar_prefetch = 0 : i64, scratch_operands = 0 : i64, tpu.core_type = #tpu.core_type<tc>} {
    %c0 = arith.constant 0 : index
    %c0_0 = arith.constant 0 : index
    %0 = vector.load %arg1[%c0, %c0_0] : memref<128x128xbf16, #tpu.memory_space<vmem>>, vector<128x128xbf16>
    %c0_1 = arith.constant 0 : index
    %c0_2 = arith.constant 0 : index
    %1 = vector.load %arg2[%c0_1, %c0_2] : memref<1x128xf32, #tpu.memory_space<vmem>>, vector<1x128xf32>
    %c0_3 = arith.constant 0 : index
    %c0_4 = arith.constant 0 : index
    %2 = vector.load %arg3[%c0_3, %c0_4] : memref<128x768xbf16, #tpu.memory_space<vmem>>, vector<128x768xbf16>
    %c0_5 = arith.constant 0 : index
    %c0_6 = arith.constant 0 : index
    %3 = vector.load %arg4[%c0_5, %c0_6] : memref<1x768xf32, #tpu.memory_space<vmem>>, vector<1x768xf32>
    %c0_7 = arith.constant 0 : index
    %c0_8 = arith.constant 0 : index
    %4 = vector.load %arg5[%c0_7, %c0_8] : memref<256x128xbf16, #tpu.memory_space<vmem>>, vector<256x128xbf16>
    %c0_9 = arith.constant 0 : index
    %c0_10 = arith.constant 0 : index
    %5 = vector.load %arg6[%c0_9, %c0_10] : memref<1x128xf32, #tpu.memory_space<vmem>>, vector<1x128xf32>
    %c0_11 = arith.constant 0 : index
    %c0_12 = arith.constant 0 : index
    %6 = vector.load %arg7[%c0_11, %c0_12] : memref<1x128xf32, #tpu.memory_space<vmem>>, vector<1x128xf32>
    %c0_13 = arith.constant 0 : index
    %c0_14 = arith.constant 0 : index
    %7 = vector.load %arg8[%c0_13, %c0_14] : memref<1x128xf32, #tpu.memory_space<vmem>>, vector<1x128xf32>
    %c0_15 = arith.constant 0 : index
    %c0_16 = arith.constant 0 : index
    %8 = vector.load %arg9[%c0_15, %c0_16] : memref<128x128xbf16, #tpu.memory_space<vmem>>, vector<128x128xbf16>
    %c0_17 = arith.constant 0 : index
    %c0_18 = arith.constant 0 : index
    %9 = vector.load %arg10[%c0_17, %c0_18] : memref<1x128xf32, #tpu.memory_space<vmem>>, vector<1x128xf32>
    %c0_19 = arith.constant 0 : index
    %c0_20 = arith.constant 0 : index
    %10 = vector.load %arg11[%c0_19, %c0_20] : memref<128x128xbf16, #tpu.memory_space<vmem>>, vector<128x128xbf16>
    %c0_21 = arith.constant 0 : index
    %c0_22 = arith.constant 0 : index
    %11 = vector.load %arg12[%c0_21, %c0_22] : memref<1x128xf32, #tpu.memory_space<vmem>>, vector<1x128xf32>
    %c0_23 = arith.constant 0 : index
    %c0_24 = arith.constant 0 : index
    %12 = vector.load %arg13[%c0_23, %c0_24] : memref<1x128xf32, #tpu.memory_space<vmem>>, vector<1x128xf32>
    %c0_25 = arith.constant 0 : index
    %c0_26 = arith.constant 0 : index
    %13 = vector.load %arg14[%c0_25, %c0_26] : memref<1x128xf32, #tpu.memory_space<vmem>>, vector<1x128xf32>
    %c0_27 = arith.constant 0 : index
    %c0_28 = arith.constant 0 : index
    %14 = vector.load %arg15[%c0_27, %c0_28] : memref<16x128xf32, #tpu.memory_space<vmem>>, vector<16x128xf32>
    %c0_29 = arith.constant 0 : index
    %c0_30 = arith.constant 0 : index
    %15 = vector.load %arg16[%c0_29, %c0_30] : memref<1x16xf32, #tpu.memory_space<vmem>>, vector<1x16xf32>
    %c0_31 = arith.constant 0 : index
    %c0_32 = arith.constant 0 : index
    %c0_33 = arith.constant 0 : index
    %16 = vector.load %arg0[%c0_31, %c0_32, %c0_33] : memref<2x4x128xf32, #tpu.memory_space<vmem>>, vector<1x4x128xf32>
    %17 = vector.shape_cast %16 : vector<1x4x128xf32> to vector<4x128xf32>
    %18 = arith.truncf %17 : vector<4x128xf32> to vector<4x128xbf16>
    %cst = arith.constant dense<0.000000e+00> : vector<4x128xf32>
    %19 = tpu.matmul %18, %0, %cst {dimension_numbers = #tpu.dot_dimension_numbers<[1], [0], [0], [1], [0, 0, 1, 1], [], []>} : vector<4x128xbf16>, vector<128x128xbf16>, vector<4x128xf32> -> vector<4x128xf32>
    %20 = vector.broadcast %1 : vector<1x128xf32> to vector<4x128xf32>
    %21 = arith.addf %19, %20 : vector<4x128xf32>
    %22 = arith.truncf %21 : vector<4x128xf32> to vector<4x128xbf16>
    %cst_34 = arith.constant dense<0.000000e+00> : vector<4x768xf32>
    %23 = tpu.matmul %22, %2, %cst_34 {dimension_numbers = #tpu.dot_dimension_numbers<[1], [0], [0], [1], [0, 0, 1, 1], [], []>} : vector<4x128xbf16>, vector<128x768xbf16>, vector<4x768xf32> -> vector<4x768xf32>
    %24 = vector.broadcast %3 : vector<1x768xf32> to vector<4x768xf32>
    %25 = arith.addf %23, %24 : vector<4x768xf32>
    %26 = vector.extract_strided_slice %25 {offsets = [0, 0], sizes = [4, 128], strides = [1, 1]} : vector<4x768xf32> to vector<4x128xf32>
    %27 = vector.extract_strided_slice %25 {offsets = [0, 256], sizes = [4, 128], strides = [1, 1]} : vector<4x768xf32> to vector<4x128xf32>
    %28 = vector.extract_strided_slice %25 {offsets = [0, 512], sizes = [4, 128], strides = [1, 1]} : vector<4x768xf32> to vector<4x128xf32>
    %29 = arith.truncf %26 : vector<4x128xf32> to vector<4x128xbf16>
    %30 = arith.truncf %27 : vector<4x128xf32> to vector<4x128xbf16>
    %cst_35 = arith.constant dense<0.000000e+00> : vector<4x4xf32>
    %31 = tpu.matmul %29, %30, %cst_35 {dimension_numbers = #tpu.dot_dimension_numbers<[1], [1], [0], [0], [0, 0, 1, 0], [], []>} : vector<4x128xbf16>, vector<4x128xbf16>, vector<4x4xf32> -> vector<4x4xf32>
    %cst_36 = arith.constant 2.500000e-01 : f32
    %32 = vector.broadcast %cst_36 : f32 to vector<4x4xf32>
    %33 = arith.mulf %31, %32 : vector<4x4xf32>
    %cst_37 = arith.constant dense<0xFF800000> : vector<4xf32>
    %34 = vector.multi_reduction <maximumf>, %33, %cst_37 [1] : vector<4x4xf32> to vector<4xf32>
    %35 = vector.shape_cast %34 : vector<4xf32> to vector<4x1xf32>
    %36 = vector.broadcast %35 : vector<4x1xf32> to vector<4x4xf32>
    %37 = arith.subf %33, %36 : vector<4x4xf32>
    %38 = math.exp %37 : vector<4x4xf32>
    %cst_38 = arith.constant dense<0.000000e+00> : vector<4xf32>
    %39 = vector.multi_reduction <add>, %38, %cst_38 [1] : vector<4x4xf32> to vector<4xf32>
    %40 = vector.shape_cast %39 : vector<4xf32> to vector<4x1xf32>
    %41 = tpu.reciprocal %40 {approx = true} : vector<4x1xf32> -> vector<4x1xf32>
    %42 = vector.broadcast %41 : vector<4x1xf32> to vector<4x4xf32>
    %43 = arith.mulf %38, %42 : vector<4x4xf32>
    %44 = arith.truncf %43 : vector<4x4xf32> to vector<4x4xbf16>
    %45 = arith.truncf %28 : vector<4x128xf32> to vector<4x128xbf16>
    %cst_39 = arith.constant dense<0.000000e+00> : vector<4x128xf32>
    %46 = tpu.matmul %44, %45, %cst_39 {dimension_numbers = #tpu.dot_dimension_numbers<[1], [0], [0], [1], [0, 0, 1, 1], [], []>} : vector<4x4xbf16>, vector<4x128xbf16>, vector<4x128xf32> -> vector<4x128xf32>
    %47 = vector.extract_strided_slice %4 {offsets = [0, 0], sizes = [128, 128], strides = [1, 1]} : vector<256x128xbf16> to vector<128x128xbf16>
    %48 = arith.truncf %46 : vector<4x128xf32> to vector<4x128xbf16>
    %cst_40 = arith.constant dense<0.000000e+00> : vector<4x128xf32>
    %49 = tpu.matmul %48, %47, %cst_40 {dimension_numbers = #tpu.dot_dimension_numbers<[1], [0], [0], [1], [0, 0, 1, 1], [], []>} : vector<4x128xbf16>, vector<128x128xbf16>, vector<4x128xf32> -> vector<4x128xf32>
    %50 = vector.extract_strided_slice %25 {offsets = [0, 128], sizes = [4, 128], strides = [1, 1]} : vector<4x768xf32> to vector<4x128xf32>
    %51 = vector.extract_strided_slice %25 {offsets = [0, 384], sizes = [4, 128], strides = [1, 1]} : vector<4x768xf32> to vector<4x128xf32>
    %52 = vector.extract_strided_slice %25 {offsets = [0, 640], sizes = [4, 128], strides = [1, 1]} : vector<4x768xf32> to vector<4x128xf32>
    %53 = arith.truncf %50 : vector<4x128xf32> to vector<4x128xbf16>
    %54 = arith.truncf %51 : vector<4x128xf32> to vector<4x128xbf16>
    %cst_41 = arith.constant dense<0.000000e+00> : vector<4x4xf32>
    %55 = tpu.matmul %53, %54, %cst_41 {dimension_numbers = #tpu.dot_dimension_numbers<[1], [1], [0], [0], [0, 0, 1, 0], [], []>} : vector<4x128xbf16>, vector<4x128xbf16>, vector<4x4xf32> -> vector<4x4xf32>
    %cst_42 = arith.constant 2.500000e-01 : f32
    %56 = vector.broadcast %cst_42 : f32 to vector<4x4xf32>
    %57 = arith.mulf %55, %56 : vector<4x4xf32>
    %cst_43 = arith.constant dense<0xFF800000> : vector<4xf32>
    %58 = vector.multi_reduction <maximumf>, %57, %cst_43 [1] : vector<4x4xf32> to vector<4xf32>
    %59 = vector.shape_cast %58 : vector<4xf32> to vector<4x1xf32>
    %60 = vector.broadcast %59 : vector<4x1xf32> to vector<4x4xf32>
    %61 = arith.subf %57, %60 : vector<4x4xf32>
    %62 = math.exp %61 : vector<4x4xf32>
    %cst_44 = arith.constant dense<0.000000e+00> : vector<4xf32>
    %63 = vector.multi_reduction <add>, %62, %cst_44 [1] : vector<4x4xf32> to vector<4xf32>
    %64 = vector.shape_cast %63 : vector<4xf32> to vector<4x1xf32>
    %65 = tpu.reciprocal %64 {approx = true} : vector<4x1xf32> -> vector<4x1xf32>
    %66 = vector.broadcast %65 : vector<4x1xf32> to vector<4x4xf32>
    %67 = arith.mulf %62, %66 : vector<4x4xf32>
    %68 = arith.truncf %67 : vector<4x4xf32> to vector<4x4xbf16>
    %69 = arith.truncf %52 : vector<4x128xf32> to vector<4x128xbf16>
    %cst_45 = arith.constant dense<0.000000e+00> : vector<4x128xf32>
    %70 = tpu.matmul %68, %69, %cst_45 {dimension_numbers = #tpu.dot_dimension_numbers<[1], [0], [0], [1], [0, 0, 1, 1], [], []>} : vector<4x4xbf16>, vector<4x128xbf16>, vector<4x128xf32> -> vector<4x128xf32>
    %71 = vector.extract_strided_slice %4 {offsets = [128, 0], sizes = [128, 128], strides = [1, 1]} : vector<256x128xbf16> to vector<128x128xbf16>
    %72 = arith.truncf %70 : vector<4x128xf32> to vector<4x128xbf16>
    %cst_46 = arith.constant dense<0.000000e+00> : vector<4x128xf32>
    %73 = tpu.matmul %72, %71, %cst_46 {dimension_numbers = #tpu.dot_dimension_numbers<[1], [0], [0], [1], [0, 0, 1, 1], [], []>} : vector<4x128xbf16>, vector<128x128xbf16>, vector<4x128xf32> -> vector<4x128xf32>
    %74 = arith.addf %49, %73 : vector<4x128xf32>
    %75 = vector.broadcast %5 : vector<1x128xf32> to vector<4x128xf32>
    %76 = arith.addf %74, %75 : vector<4x128xf32>
    %77 = arith.addf %21, %76 : vector<4x128xf32>
    %cst_47 = arith.constant dense<0.000000e+00> : vector<4xf32>
    %78 = vector.multi_reduction <add>, %77, %cst_47 [1] : vector<4x128xf32> to vector<4xf32>
    %79 = vector.shape_cast %78 : vector<4xf32> to vector<4x1xf32>
    %cst_48 = arith.constant 3.200000e+01 : f32
    %80 = vector.broadcast %cst_48 : f32 to vector<4x1xf32>
    %81 = arith.divf %79, %80 : vector<4x1xf32>
    %82 = arith.mulf %77, %77 : vector<4x128xf32>
    %cst_49 = arith.constant dense<0.000000e+00> : vector<4xf32>
    %83 = vector.multi_reduction <add>, %82, %cst_49 [1] : vector<4x128xf32> to vector<4xf32>
    %84 = vector.shape_cast %83 : vector<4xf32> to vector<4x1xf32>
    %cst_50 = arith.constant 3.200000e+01 : f32
    %85 = vector.broadcast %cst_50 : f32 to vector<4x1xf32>
    %86 = arith.divf %84, %85 : vector<4x1xf32>
    %87 = arith.mulf %81, %81 : vector<4x1xf32>
    %88 = arith.subf %86, %87 : vector<4x1xf32>
    %cst_51 = arith.constant 0.000000e+00 : f32
    %89 = vector.broadcast %cst_51 : f32 to vector<4x1xf32>
    %90 = arith.maximumf %88, %89 : vector<4x1xf32>
    %91 = vector.broadcast %81 : vector<4x1xf32> to vector<4x128xf32>
    %92 = arith.subf %77, %91 : vector<4x128xf32>
    %cst_52 = arith.constant 9.99999974E-6 : f32
    %93 = vector.broadcast %cst_52 : f32 to vector<4x1xf32>
    %94 = arith.addf %90, %93 : vector<4x1xf32>
    %95 = math.rsqrt %94 : vector<4x1xf32>
    %96 = vector.broadcast %95 : vector<4x1xf32> to vector<4x128xf32>
    %97 = arith.mulf %92, %96 : vector<4x128xf32>
    %98 = vector.broadcast %6 : vector<1x128xf32> to vector<4x128xf32>
    %99 = arith.mulf %97, %98 : vector<4x128xf32>
    %100 = vector.broadcast %7 : vector<1x128xf32> to vector<4x128xf32>
    %101 = arith.addf %99, %100 : vector<4x128xf32>
    %102 = arith.truncf %101 : vector<4x128xf32> to vector<4x128xbf16>
    %cst_53 = arith.constant dense<0.000000e+00> : vector<4x128xf32>
    %103 = tpu.matmul %102, %8, %cst_53 {dimension_numbers = #tpu.dot_dimension_numbers<[1], [0], [0], [1], [0, 0, 1, 1], [], []>} : vector<4x128xbf16>, vector<128x128xbf16>, vector<4x128xf32> -> vector<4x128xf32>
    %104 = vector.broadcast %9 : vector<1x128xf32> to vector<4x128xf32>
    %105 = arith.addf %103, %104 : vector<4x128xf32>
    %cst_54 = arith.constant 5.000000e-01 : f32
    %106 = vector.broadcast %cst_54 : f32 to vector<4x128xf32>
    %107 = arith.mulf %106, %105 : vector<4x128xf32>
    %cst_55 = arith.constant 0.707106769 : f32
    %108 = vector.broadcast %cst_55 : f32 to vector<4x128xf32>
    %109 = arith.mulf %105, %108 : vector<4x128xf32>
    %cst_56 = arith.constant 0.000000e+00 : f32
    %110 = vector.broadcast %cst_56 : f32 to vector<4x128xf32>
    %111 = arith.cmpf oge, %109, %110 : vector<4x128xf32>
    %cst_57 = arith.constant 1.000000e+00 : f32
    %cst_58 = arith.constant -1.000000e+00 : f32
    %112 = vector.broadcast %cst_57 : f32 to vector<4x128xf32>
    %113 = vector.broadcast %cst_58 : f32 to vector<4x128xf32>
    %114 = arith.select %111, %112, %113 : vector<4x128xi1>, vector<4x128xf32>
    %115 = math.absf %109 : vector<4x128xf32>
    %cst_59 = arith.constant 0.327591091 : f32
    %116 = vector.broadcast %cst_59 : f32 to vector<4x128xf32>
    %117 = arith.mulf %116, %115 : vector<4x128xf32>
    %cst_60 = arith.constant 1.000000e+00 : f32
    %118 = vector.broadcast %cst_60 : f32 to vector<4x128xf32>
    %119 = arith.addf %118, %117 : vector<4x128xf32>
    %cst_61 = arith.constant 1.000000e+00 : f32
    %120 = vector.broadcast %cst_61 : f32 to vector<4x128xf32>
    %121 = arith.divf %120, %119 : vector<4x128xf32>
    %cst_62 = arith.constant 1.06140542 : f32
    %122 = vector.broadcast %cst_62 : f32 to vector<4x128xf32>
    %123 = arith.mulf %122, %121 : vector<4x128xf32>
    %cst_63 = arith.constant -1.45315206 : f32
    %124 = vector.broadcast %cst_63 : f32 to vector<4x128xf32>
    %125 = arith.addf %123, %124 : vector<4x128xf32>
    %126 = arith.mulf %125, %121 : vector<4x128xf32>
    %cst_64 = arith.constant 1.42141378 : f32
    %127 = vector.broadcast %cst_64 : f32 to vector<4x128xf32>
    %128 = arith.addf %126, %127 : vector<4x128xf32>
    %129 = arith.mulf %128, %121 : vector<4x128xf32>
    %cst_65 = arith.constant -0.284496725 : f32
    %130 = vector.broadcast %cst_65 : f32 to vector<4x128xf32>
    %131 = arith.addf %129, %130 : vector<4x128xf32>
    %132 = arith.mulf %131, %121 : vector<4x128xf32>
    %cst_66 = arith.constant 0.254829586 : f32
    %133 = vector.broadcast %cst_66 : f32 to vector<4x128xf32>
    %134 = arith.addf %132, %133 : vector<4x128xf32>
    %135 = arith.mulf %134, %121 : vector<4x128xf32>
    %cst_67 = arith.constant 0.000000e+00 : f32
    %136 = vector.broadcast %cst_67 : f32 to vector<4x128xf32>
    %137 = arith.subf %136, %115 : vector<4x128xf32>
    %138 = arith.mulf %137, %115 : vector<4x128xf32>
    %139 = math.exp %138 : vector<4x128xf32>
    %140 = arith.mulf %135, %139 : vector<4x128xf32>
    %cst_68 = arith.constant 1.000000e+00 : f32
    %141 = vector.broadcast %cst_68 : f32 to vector<4x128xf32>
    %142 = arith.subf %141, %140 : vector<4x128xf32>
    %143 = arith.mulf %114, %142 : vector<4x128xf32>
    %cst_69 = arith.constant 1.000000e+00 : f32
    %144 = vector.broadcast %cst_69 : f32 to vector<4x128xf32>
    %145 = arith.addf %144, %143 : vector<4x128xf32>
    %146 = arith.mulf %107, %145 : vector<4x128xf32>
    %147 = arith.truncf %146 : vector<4x128xf32> to vector<4x128xbf16>
    %cst_70 = arith.constant dense<0.000000e+00> : vector<4x128xf32>
    %148 = tpu.matmul %147, %10, %cst_70 {dimension_numbers = #tpu.dot_dimension_numbers<[1], [0], [0], [1], [0, 0, 1, 1], [], []>} : vector<4x128xbf16>, vector<128x128xbf16>, vector<4x128xf32> -> vector<4x128xf32>
    %149 = vector.broadcast %11 : vector<1x128xf32> to vector<4x128xf32>
    %150 = arith.addf %148, %149 : vector<4x128xf32>
    %151 = arith.addf %101, %150 : vector<4x128xf32>
    %cst_71 = arith.constant dense<0.000000e+00> : vector<4xf32>
    %152 = vector.multi_reduction <add>, %151, %cst_71 [1] : vector<4x128xf32> to vector<4xf32>
    %153 = vector.shape_cast %152 : vector<4xf32> to vector<4x1xf32>
    %cst_72 = arith.constant 3.200000e+01 : f32
    %154 = vector.broadcast %cst_72 : f32 to vector<4x1xf32>
    %155 = arith.divf %153, %154 : vector<4x1xf32>
    %156 = arith.mulf %151, %151 : vector<4x128xf32>
    %cst_73 = arith.constant dense<0.000000e+00> : vector<4xf32>
    %157 = vector.multi_reduction <add>, %156, %cst_73 [1] : vector<4x128xf32> to vector<4xf32>
    %158 = vector.shape_cast %157 : vector<4xf32> to vector<4x1xf32>
    %cst_74 = arith.constant 3.200000e+01 : f32
    %159 = vector.broadcast %cst_74 : f32 to vector<4x1xf32>
    %160 = arith.divf %158, %159 : vector<4x1xf32>
    %161 = arith.mulf %155, %155 : vector<4x1xf32>
    %162 = arith.subf %160, %161 : vector<4x1xf32>
    %cst_75 = arith.constant 0.000000e+00 : f32
    %163 = vector.broadcast %cst_75 : f32 to vector<4x1xf32>
    %164 = arith.maximumf %162, %163 : vector<4x1xf32>
    %165 = vector.broadcast %155 : vector<4x1xf32> to vector<4x128xf32>
    %166 = arith.subf %151, %165 : vector<4x128xf32>
    %cst_76 = arith.constant 9.99999974E-6 : f32
    %167 = vector.broadcast %cst_76 : f32 to vector<4x1xf32>
    %168 = arith.addf %164, %167 : vector<4x1xf32>
    %169 = math.rsqrt %168 : vector<4x1xf32>
    %170 = vector.broadcast %169 : vector<4x1xf32> to vector<4x128xf32>
    %171 = arith.mulf %166, %170 : vector<4x128xf32>
    %172 = vector.broadcast %12 : vector<1x128xf32> to vector<4x128xf32>
    %173 = arith.mulf %171, %172 : vector<4x128xf32>
    %174 = vector.broadcast %13 : vector<1x128xf32> to vector<4x128xf32>
    %175 = arith.addf %173, %174 : vector<4x128xf32>
    %176 = arith.mulf %175, %175 : vector<4x128xf32>
    %cst_77 = arith.constant dense<0.000000e+00> : vector<4xf32>
    %177 = vector.multi_reduction <add>, %176, %cst_77 [1] : vector<4x128xf32> to vector<4xf32>
    %178 = vector.shape_cast %177 : vector<4xf32> to vector<4x1xf32>
    %cst_78 = arith.constant dense<0.000000e+00> : vector<4x16xf32>
    %179 = tpu.matmul %175, %14, %cst_78 {dimension_numbers = #tpu.dot_dimension_numbers<[1], [1], [0], [0], [0, 0, 1, 0], [], []>} : vector<4x128xf32>, vector<16x128xf32>, vector<4x16xf32> -> vector<4x16xf32>
    %180 = vector.broadcast %178 : vector<4x1xf32> to vector<4x16xf32>
    %181 = vector.broadcast %15 : vector<1x16xf32> to vector<4x16xf32>
    %182 = arith.addf %180, %181 : vector<4x16xf32>
    %cst_79 = arith.constant 2.000000e+00 : f32
    %183 = vector.broadcast %cst_79 : f32 to vector<4x16xf32>
    %184 = arith.mulf %183, %179 : vector<4x16xf32>
    %185 = arith.subf %182, %184 : vector<4x16xf32>
    %cst_80 = arith.constant dense<0x7F800000> : vector<4xf32>
    %186 = vector.multi_reduction <minimumf>, %185, %cst_80 [1] : vector<4x16xf32> to vector<4xf32>
    %187 = vector.shape_cast %186 : vector<4xf32> to vector<4x1xf32>
    %188 = tpu.iota {dimensions = array<i32: 1>} : vector<4x16xi32>
    %189 = arith.sitofp %188 : vector<4x16xi32> to vector<4x16xf32>
    %190 = vector.broadcast %187 : vector<4x1xf32> to vector<4x16xf32>
    %191 = arith.cmpf ole, %185, %190 : vector<4x16xf32>
    %cst_81 = arith.constant 1.600000e+01 : f32
    %192 = vector.broadcast %cst_81 : f32 to vector<4x16xf32>
    %193 = arith.select %191, %189, %192 : vector<4x16xi1>, vector<4x16xf32>
    %cst_82 = arith.constant dense<0x7F800000> : vector<4xf32>
    %194 = vector.multi_reduction <minimumf>, %193, %cst_82 [1] : vector<4x16xf32> to vector<4xf32>
    %195 = vector.shape_cast %194 : vector<4xf32> to vector<4x1xf32>
    %196 = vector.broadcast %195 : vector<4x1xf32> to vector<4x16xf32>
    %197 = arith.cmpf oeq, %189, %196 : vector<4x16xf32>
    %198 = arith.extui %197 : vector<4x16xi1> to vector<4x16xi32>
    %199 = arith.sitofp %198 : vector<4x16xi32> to vector<4x16xf32>
    %cst_83 = arith.constant dense<0.000000e+00> : vector<4x128xf32>
    %200 = tpu.matmul %199, %14, %cst_83 {dimension_numbers = #tpu.dot_dimension_numbers<[1], [0], [0], [1], [0, 0, 1, 1], [], []>} : vector<4x16xf32>, vector<16x128xf32>, vector<4x128xf32> -> vector<4x128xf32>
    %c0_84 = arith.constant 0 : index
    %c0_85 = arith.constant 0 : index
    %c0_86 = arith.constant 0 : index
    %201 = vector.load %arg17[%c0_84, %c0_85, %c0_86] : memref<2x4x128xf32, #tpu.memory_space<vmem>>, vector<1x4x128xf32>
    %202 = vector.shape_cast %201 : vector<1x4x128xf32> to vector<4x128xf32>
    %203 = vector.shape_cast %200 : vector<4x128xf32> to vector<1x4x128xf32>
    tpu.vector_store %arg17[%c0_84, %c0_85, %c0_86], %203 {strides = array<i32>} : memref<2x4x128xf32, #tpu.memory_space<vmem>>, vector<1x4x128xf32>,
    %204 = arith.subf %200, %175 : vector<4x128xf32>
    %205 = arith.mulf %204, %204 : vector<4x128xf32>
    %206 = vector.shape_cast %205 : vector<4x128xf32> to vector<1x4x128xf32>
    %cst_87 = arith.constant dense<0.000000e+00> : vector<1xf32>
    %207 = vector.multi_reduction <add>, %206, %cst_87 [1, 2] : vector<1x4x128xf32> to vector<1xf32>
    %208 = vector.shape_cast %207 : vector<1xf32> to vector<1x1x1xf32>
    %209 = vector.extract %208[0, 0, 0] : f32 from vector<1x1x1xf32>
    %cst_88 = arith.constant 0.000000e+00 : f32
    %210 = arith.addf %cst_88, %209 : f32
    %c1 = arith.constant 1 : index
    %c0_89 = arith.constant 0 : index
    %c0_90 = arith.constant 0 : index
    %211 = vector.load %arg0[%c1, %c0_89, %c0_90] : memref<2x4x128xf32, #tpu.memory_space<vmem>>, vector<1x4x128xf32>
    %212 = vector.shape_cast %211 : vector<1x4x128xf32> to vector<4x128xf32>
    %213 = arith.truncf %212 : vector<4x128xf32> to vector<4x128xbf16>
    %cst_91 = arith.constant dense<0.000000e+00> : vector<4x128xf32>
    %214 = tpu.matmul %213, %0, %cst_91 {dimension_numbers = #tpu.dot_dimension_numbers<[1], [0], [0], [1], [0, 0, 1, 1], [], []>} : vector<4x128xbf16>, vector<128x128xbf16>, vector<4x128xf32> -> vector<4x128xf32>
    %215 = vector.broadcast %1 : vector<1x128xf32> to vector<4x128xf32>
    %216 = arith.addf %214, %215 : vector<4x128xf32>
    %217 = arith.truncf %216 : vector<4x128xf32> to vector<4x128xbf16>
    %cst_92 = arith.constant dense<0.000000e+00> : vector<4x768xf32>
    %218 = tpu.matmul %217, %2, %cst_92 {dimension_numbers = #tpu.dot_dimension_numbers<[1], [0], [0], [1], [0, 0, 1, 1], [], []>} : vector<4x128xbf16>, vector<128x768xbf16>, vector<4x768xf32> -> vector<4x768xf32>
    %219 = vector.broadcast %3 : vector<1x768xf32> to vector<4x768xf32>
    %220 = arith.addf %218, %219 : vector<4x768xf32>
    %221 = vector.extract_strided_slice %220 {offsets = [0, 0], sizes = [4, 128], strides = [1, 1]} : vector<4x768xf32> to vector<4x128xf32>
    %222 = vector.extract_strided_slice %220 {offsets = [0, 256], sizes = [4, 128], strides = [1, 1]} : vector<4x768xf32> to vector<4x128xf32>
    %223 = vector.extract_strided_slice %220 {offsets = [0, 512], sizes = [4, 128], strides = [1, 1]} : vector<4x768xf32> to vector<4x128xf32>
    %224 = arith.truncf %221 : vector<4x128xf32> to vector<4x128xbf16>
    %225 = arith.truncf %222 : vector<4x128xf32> to vector<4x128xbf16>
    %cst_93 = arith.constant dense<0.000000e+00> : vector<4x4xf32>
    %226 = tpu.matmul %224, %225, %cst_93 {dimension_numbers = #tpu.dot_dimension_numbers<[1], [1], [0], [0], [0, 0, 1, 0], [], []>} : vector<4x128xbf16>, vector<4x128xbf16>, vector<4x4xf32> -> vector<4x4xf32>
    %cst_94 = arith.constant 2.500000e-01 : f32
    %227 = vector.broadcast %cst_94 : f32 to vector<4x4xf32>
    %228 = arith.mulf %226, %227 : vector<4x4xf32>
    %cst_95 = arith.constant dense<0xFF800000> : vector<4xf32>
    %229 = vector.multi_reduction <maximumf>, %228, %cst_95 [1] : vector<4x4xf32> to vector<4xf32>
    %230 = vector.shape_cast %229 : vector<4xf32> to vector<4x1xf32>
    %231 = vector.broadcast %230 : vector<4x1xf32> to vector<4x4xf32>
    %232 = arith.subf %228, %231 : vector<4x4xf32>
    %233 = math.exp %232 : vector<4x4xf32>
    %cst_96 = arith.constant dense<0.000000e+00> : vector<4xf32>
    %234 = vector.multi_reduction <add>, %233, %cst_96 [1] : vector<4x4xf32> to vector<4xf32>
    %235 = vector.shape_cast %234 : vector<4xf32> to vector<4x1xf32>
    %236 = tpu.reciprocal %235 {approx = true} : vector<4x1xf32> -> vector<4x1xf32>
    %237 = vector.broadcast %236 : vector<4x1xf32> to vector<4x4xf32>
    %238 = arith.mulf %233, %237 : vector<4x4xf32>
    %239 = arith.truncf %238 : vector<4x4xf32> to vector<4x4xbf16>
    %240 = arith.truncf %223 : vector<4x128xf32> to vector<4x128xbf16>
    %cst_97 = arith.constant dense<0.000000e+00> : vector<4x128xf32>
    %241 = tpu.matmul %239, %240, %cst_97 {dimension_numbers = #tpu.dot_dimension_numbers<[1], [0], [0], [1], [0, 0, 1, 1], [], []>} : vector<4x4xbf16>, vector<4x128xbf16>, vector<4x128xf32> -> vector<4x128xf32>
    %242 = vector.extract_strided_slice %4 {offsets = [0, 0], sizes = [128, 128], strides = [1, 1]} : vector<256x128xbf16> to vector<128x128xbf16>
    %243 = arith.truncf %241 : vector<4x128xf32> to vector<4x128xbf16>
    %cst_98 = arith.constant dense<0.000000e+00> : vector<4x128xf32>
    %244 = tpu.matmul %243, %242, %cst_98 {dimension_numbers = #tpu.dot_dimension_numbers<[1], [0], [0], [1], [0, 0, 1, 1], [], []>} : vector<4x128xbf16>, vector<128x128xbf16>, vector<4x128xf32> -> vector<4x128xf32>
    %245 = vector.extract_strided_slice %220 {offsets = [0, 128], sizes = [4, 128], strides = [1, 1]} : vector<4x768xf32> to vector<4x128xf32>
    %246 = vector.extract_strided_slice %220 {offsets = [0, 384], sizes = [4, 128], strides = [1, 1]} : vector<4x768xf32> to vector<4x128xf32>
    %247 = vector.extract_strided_slice %220 {offsets = [0, 640], sizes = [4, 128], strides = [1, 1]} : vector<4x768xf32> to vector<4x128xf32>
    %248 = arith.truncf %245 : vector<4x128xf32> to vector<4x128xbf16>
    %249 = arith.truncf %246 : vector<4x128xf32> to vector<4x128xbf16>
    %cst_99 = arith.constant dense<0.000000e+00> : vector<4x4xf32>
    %250 = tpu.matmul %248, %249, %cst_99 {dimension_numbers = #tpu.dot_dimension_numbers<[1], [1], [0], [0], [0, 0, 1, 0], [], []>} : vector<4x128xbf16>, vector<4x128xbf16>, vector<4x4xf32> -> vector<4x4xf32>
    %cst_100 = arith.constant 2.500000e-01 : f32
    %251 = vector.broadcast %cst_100 : f32 to vector<4x4xf32>
    %252 = arith.mulf %250, %251 : vector<4x4xf32>
    %cst_101 = arith.constant dense<0xFF800000> : vector<4xf32>
    %253 = vector.multi_reduction <maximumf>, %252, %cst_101 [1] : vector<4x4xf32> to vector<4xf32>
    %254 = vector.shape_cast %253 : vector<4xf32> to vector<4x1xf32>
    %255 = vector.broadcast %254 : vector<4x1xf32> to vector<4x4xf32>
    %256 = arith.subf %252, %255 : vector<4x4xf32>
    %257 = math.exp %256 : vector<4x4xf32>
    %cst_102 = arith.constant dense<0.000000e+00> : vector<4xf32>
    %258 = vector.multi_reduction <add>, %257, %cst_102 [1] : vector<4x4xf32> to vector<4xf32>
    %259 = vector.shape_cast %258 : vector<4xf32> to vector<4x1xf32>
    %260 = tpu.reciprocal %259 {approx = true} : vector<4x1xf32> -> vector<4x1xf32>
    %261 = vector.broadcast %260 : vector<4x1xf32> to vector<4x4xf32>
    %262 = arith.mulf %257, %261 : vector<4x4xf32>
    %263 = arith.truncf %262 : vector<4x4xf32> to vector<4x4xbf16>
    %264 = arith.truncf %247 : vector<4x128xf32> to vector<4x128xbf16>
    %cst_103 = arith.constant dense<0.000000e+00> : vector<4x128xf32>
    %265 = tpu.matmul %263, %264, %cst_103 {dimension_numbers = #tpu.dot_dimension_numbers<[1], [0], [0], [1], [0, 0, 1, 1], [], []>} : vector<4x4xbf16>, vector<4x128xbf16>, vector<4x128xf32> -> vector<4x128xf32>
    %266 = vector.extract_strided_slice %4 {offsets = [128, 0], sizes = [128, 128], strides = [1, 1]} : vector<256x128xbf16> to vector<128x128xbf16>
    %267 = arith.truncf %265 : vector<4x128xf32> to vector<4x128xbf16>
    %cst_104 = arith.constant dense<0.000000e+00> : vector<4x128xf32>
    %268 = tpu.matmul %267, %266, %cst_104 {dimension_numbers = #tpu.dot_dimension_numbers<[1], [0], [0], [1], [0, 0, 1, 1], [], []>} : vector<4x128xbf16>, vector<128x128xbf16>, vector<4x128xf32> -> vector<4x128xf32>
    %269 = arith.addf %244, %268 : vector<4x128xf32>
    %270 = vector.broadcast %5 : vector<1x128xf32> to vector<4x128xf32>
    %271 = arith.addf %269, %270 : vector<4x128xf32>
    %272 = arith.addf %216, %271 : vector<4x128xf32>
    %cst_105 = arith.constant dense<0.000000e+00> : vector<4xf32>
    %273 = vector.multi_reduction <add>, %272, %cst_105 [1] : vector<4x128xf32> to vector<4xf32>
    %274 = vector.shape_cast %273 : vector<4xf32> to vector<4x1xf32>
    %cst_106 = arith.constant 3.200000e+01 : f32
    %275 = vector.broadcast %cst_106 : f32 to vector<4x1xf32>
    %276 = arith.divf %274, %275 : vector<4x1xf32>
    %277 = arith.mulf %272, %272 : vector<4x128xf32>
    %cst_107 = arith.constant dense<0.000000e+00> : vector<4xf32>
    %278 = vector.multi_reduction <add>, %277, %cst_107 [1] : vector<4x128xf32> to vector<4xf32>
    %279 = vector.shape_cast %278 : vector<4xf32> to vector<4x1xf32>
    %cst_108 = arith.constant 3.200000e+01 : f32
    %280 = vector.broadcast %cst_108 : f32 to vector<4x1xf32>
    %281 = arith.divf %279, %280 : vector<4x1xf32>
    %282 = arith.mulf %276, %276 : vector<4x1xf32>
    %283 = arith.subf %281, %282 : vector<4x1xf32>
    %cst_109 = arith.constant 0.000000e+00 : f32
    %284 = vector.broadcast %cst_109 : f32 to vector<4x1xf32>
    %285 = arith.maximumf %283, %284 : vector<4x1xf32>
    %286 = vector.broadcast %276 : vector<4x1xf32> to vector<4x128xf32>
    %287 = arith.subf %272, %286 : vector<4x128xf32>
    %cst_110 = arith.constant 9.99999974E-6 : f32
    %288 = vector.broadcast %cst_110 : f32 to vector<4x1xf32>
    %289 = arith.addf %285, %288 : vector<4x1xf32>
    %290 = math.rsqrt %289 : vector<4x1xf32>
    %291 = vector.broadcast %290 : vector<4x1xf32> to vector<4x128xf32>
    %292 = arith.mulf %287, %291 : vector<4x128xf32>
    %293 = vector.broadcast %6 : vector<1x128xf32> to vector<4x128xf32>
    %294 = arith.mulf %292, %293 : vector<4x128xf32>
    %295 = vector.broadcast %7 : vector<1x128xf32> to vector<4x128xf32>
    %296 = arith.addf %294, %295 : vector<4x128xf32>
    %297 = arith.truncf %296 : vector<4x128xf32> to vector<4x128xbf16>
    %cst_111 = arith.constant dense<0.000000e+00> : vector<4x128xf32>
    %298 = tpu.matmul %297, %8, %cst_111 {dimension_numbers = #tpu.dot_dimension_numbers<[1], [0], [0], [1], [0, 0, 1, 1], [], []>} : vector<4x128xbf16>, vector<128x128xbf16>, vector<4x128xf32> -> vector<4x128xf32>
    %299 = vector.broadcast %9 : vector<1x128xf32> to vector<4x128xf32>
    %300 = arith.addf %298, %299 : vector<4x128xf32>
    %cst_112 = arith.constant 5.000000e-01 : f32
    %301 = vector.broadcast %cst_112 : f32 to vector<4x128xf32>
    %302 = arith.mulf %301, %300 : vector<4x128xf32>
    %cst_113 = arith.constant 0.707106769 : f32
    %303 = vector.broadcast %cst_113 : f32 to vector<4x128xf32>
    %304 = arith.mulf %300, %303 : vector<4x128xf32>
    %cst_114 = arith.constant 0.000000e+00 : f32
    %305 = vector.broadcast %cst_114 : f32 to vector<4x128xf32>
    %306 = arith.cmpf oge, %304, %305 : vector<4x128xf32>
    %cst_115 = arith.constant 1.000000e+00 : f32
    %cst_116 = arith.constant -1.000000e+00 : f32
    %307 = vector.broadcast %cst_115 : f32 to vector<4x128xf32>
    %308 = vector.broadcast %cst_116 : f32 to vector<4x128xf32>
    %309 = arith.select %306, %307, %308 : vector<4x128xi1>, vector<4x128xf32>
    %310 = math.absf %304 : vector<4x128xf32>
    %cst_117 = arith.constant 0.327591091 : f32
    %311 = vector.broadcast %cst_117 : f32 to vector<4x128xf32>
    %312 = arith.mulf %311, %310 : vector<4x128xf32>
    %cst_118 = arith.constant 1.000000e+00 : f32
    %313 = vector.broadcast %cst_118 : f32 to vector<4x128xf32>
    %314 = arith.addf %313, %312 : vector<4x128xf32>
    %cst_119 = arith.constant 1.000000e+00 : f32
    %315 = vector.broadcast %cst_119 : f32 to vector<4x128xf32>
    %316 = arith.divf %315, %314 : vector<4x128xf32>
    %cst_120 = arith.constant 1.06140542 : f32
    %317 = vector.broadcast %cst_120 : f32 to vector<4x128xf32>
    %318 = arith.mulf %317, %316 : vector<4x128xf32>
    %cst_121 = arith.constant -1.45315206 : f32
    %319 = vector.broadcast %cst_121 : f32 to vector<4x128xf32>
    %320 = arith.addf %318, %319 : vector<4x128xf32>
    %321 = arith.mulf %320, %316 : vector<4x128xf32>
    %cst_122 = arith.constant 1.42141378 : f32
    %322 = vector.broadcast %cst_122 : f32 to vector<4x128xf32>
    %323 = arith.addf %321, %322 : vector<4x128xf32>
    %324 = arith.mulf %323, %316 : vector<4x128xf32>
    %cst_123 = arith.constant -0.284496725 : f32
    %325 = vector.broadcast %cst_123 : f32 to vector<4x128xf32>
    %326 = arith.addf %324, %325 : vector<4x128xf32>
    %327 = arith.mulf %326, %316 : vector<4x128xf32>
    %cst_124 = arith.constant 0.254829586 : f32
    %328 = vector.broadcast %cst_124 : f32 to vector<4x128xf32>
    %329 = arith.addf %327, %328 : vector<4x128xf32>
    %330 = arith.mulf %329, %316 : vector<4x128xf32>
    %cst_125 = arith.constant 0.000000e+00 : f32
    %331 = vector.broadcast %cst_125 : f32 to vector<4x128xf32>
    %332 = arith.subf %331, %310 : vector<4x128xf32>
    %333 = arith.mulf %332, %310 : vector<4x128xf32>
    %334 = math.exp %333 : vector<4x128xf32>
    %335 = arith.mulf %330, %334 : vector<4x128xf32>
    %cst_126 = arith.constant 1.000000e+00 : f32
    %336 = vector.broadcast %cst_126 : f32 to vector<4x128xf32>
    %337 = arith.subf %336, %335 : vector<4x128xf32>
    %338 = arith.mulf %309, %337 : vector<4x128xf32>
    %cst_127 = arith.constant 1.000000e+00 : f32
    %339 = vector.broadcast %cst_127 : f32 to vector<4x128xf32>
    %340 = arith.addf %339, %338 : vector<4x128xf32>
    %341 = arith.mulf %302, %340 : vector<4x128xf32>
    %342 = arith.truncf %341 : vector<4x128xf32> to vector<4x128xbf16>
    %cst_128 = arith.constant dense<0.000000e+00> : vector<4x128xf32>
    %343 = tpu.matmul %342, %10, %cst_128 {dimension_numbers = #tpu.dot_dimension_numbers<[1], [0], [0], [1], [0, 0, 1, 1], [], []>} : vector<4x128xbf16>, vector<128x128xbf16>, vector<4x128xf32> -> vector<4x128xf32>
    %344 = vector.broadcast %11 : vector<1x128xf32> to vector<4x128xf32>
    %345 = arith.addf %343, %344 : vector<4x128xf32>
    %346 = arith.addf %296, %345 : vector<4x128xf32>
    %cst_129 = arith.constant dense<0.000000e+00> : vector<4xf32>
    %347 = vector.multi_reduction <add>, %346, %cst_129 [1] : vector<4x128xf32> to vector<4xf32>
    %348 = vector.shape_cast %347 : vector<4xf32> to vector<4x1xf32>
    %cst_130 = arith.constant 3.200000e+01 : f32
    %349 = vector.broadcast %cst_130 : f32 to vector<4x1xf32>
    %350 = arith.divf %348, %349 : vector<4x1xf32>
    %351 = arith.mulf %346, %346 : vector<4x128xf32>
    %cst_131 = arith.constant dense<0.000000e+00> : vector<4xf32>
    %352 = vector.multi_reduction <add>, %351, %cst_131 [1] : vector<4x128xf32> to vector<4xf32>
    %353 = vector.shape_cast %352 : vector<4xf32> to vector<4x1xf32>
    %cst_132 = arith.constant 3.200000e+01 : f32
    %354 = vector.broadcast %cst_132 : f32 to vector<4x1xf32>
    %355 = arith.divf %353, %354 : vector<4x1xf32>
    %356 = arith.mulf %350, %350 : vector<4x1xf32>
    %357 = arith.subf %355, %356 : vector<4x1xf32>
    %cst_133 = arith.constant 0.000000e+00 : f32
    %358 = vector.broadcast %cst_133 : f32 to vector<4x1xf32>
    %359 = arith.maximumf %357, %358 : vector<4x1xf32>
    %360 = vector.broadcast %350 : vector<4x1xf32> to vector<4x128xf32>
    %361 = arith.subf %346, %360 : vector<4x128xf32>
    %cst_134 = arith.constant 9.99999974E-6 : f32
    %362 = vector.broadcast %cst_134 : f32 to vector<4x1xf32>
    %363 = arith.addf %359, %362 : vector<4x1xf32>
    %364 = math.rsqrt %363 : vector<4x1xf32>
    %365 = vector.broadcast %364 : vector<4x1xf32> to vector<4x128xf32>
    %366 = arith.mulf %361, %365 : vector<4x128xf32>
    %367 = vector.broadcast %12 : vector<1x128xf32> to vector<4x128xf32>
    %368 = arith.mulf %366, %367 : vector<4x128xf32>
    %369 = vector.broadcast %13 : vector<1x128xf32> to vector<4x128xf32>
    %370 = arith.addf %368, %369 : vector<4x128xf32>
    %371 = arith.mulf %370, %370 : vector<4x128xf32>
    %cst_135 = arith.constant dense<0.000000e+00> : vector<4xf32>
    %372 = vector.multi_reduction <add>, %371, %cst_135 [1] : vector<4x128xf32> to vector<4xf32>
    %373 = vector.shape_cast %372 : vector<4xf32> to vector<4x1xf32>
    %cst_136 = arith.constant dense<0.000000e+00> : vector<4x16xf32>
    %374 = tpu.matmul %370, %14, %cst_136 {dimension_numbers = #tpu.dot_dimension_numbers<[1], [1], [0], [0], [0, 0, 1, 0], [], []>} : vector<4x128xf32>, vector<16x128xf32>, vector<4x16xf32> -> vector<4x16xf32>
    %375 = vector.broadcast %373 : vector<4x1xf32> to vector<4x16xf32>
    %376 = vector.broadcast %15 : vector<1x16xf32> to vector<4x16xf32>
    %377 = arith.addf %375, %376 : vector<4x16xf32>
    %cst_137 = arith.constant 2.000000e+00 : f32
    %378 = vector.broadcast %cst_137 : f32 to vector<4x16xf32>
    %379 = arith.mulf %378, %374 : vector<4x16xf32>
    %380 = arith.subf %377, %379 : vector<4x16xf32>
    %cst_138 = arith.constant dense<0x7F800000> : vector<4xf32>
    %381 = vector.multi_reduction <minimumf>, %380, %cst_138 [1] : vector<4x16xf32> to vector<4xf32>
    %382 = vector.shape_cast %381 : vector<4xf32> to vector<4x1xf32>
    %383 = tpu.iota {dimensions = array<i32: 1>} : vector<4x16xi32>
    %384 = arith.sitofp %383 : vector<4x16xi32> to vector<4x16xf32>
    %385 = vector.broadcast %382 : vector<4x1xf32> to vector<4x16xf32>
    %386 = arith.cmpf ole, %380, %385 : vector<4x16xf32>
    %cst_139 = arith.constant 1.600000e+01 : f32
    %387 = vector.broadcast %cst_139 : f32 to vector<4x16xf32>
    %388 = arith.select %386, %384, %387 : vector<4x16xi1>, vector<4x16xf32>
    %cst_140 = arith.constant dense<0x7F800000> : vector<4xf32>
    %389 = vector.multi_reduction <minimumf>, %388, %cst_140 [1] : vector<4x16xf32> to vector<4xf32>
    %390 = vector.shape_cast %389 : vector<4xf32> to vector<4x1xf32>
    %391 = vector.broadcast %390 : vector<4x1xf32> to vector<4x16xf32>
    %392 = arith.cmpf oeq, %384, %391 : vector<4x16xf32>
    %393 = arith.extui %392 : vector<4x16xi1> to vector<4x16xi32>
    %394 = arith.sitofp %393 : vector<4x16xi32> to vector<4x16xf32>
    %cst_141 = arith.constant dense<0.000000e+00> : vector<4x128xf32>
    %395 = tpu.matmul %394, %14, %cst_141 {dimension_numbers = #tpu.dot_dimension_numbers<[1], [0], [0], [1], [0, 0, 1, 1], [], []>} : vector<4x16xf32>, vector<16x128xf32>, vector<4x128xf32> -> vector<4x128xf32>
    %c1_142 = arith.constant 1 : index
    %c0_143 = arith.constant 0 : index
    %c0_144 = arith.constant 0 : index
    %396 = vector.load %arg17[%c1_142, %c0_143, %c0_144] : memref<2x4x128xf32, #tpu.memory_space<vmem>>, vector<1x4x128xf32>
    %397 = vector.shape_cast %396 : vector<1x4x128xf32> to vector<4x128xf32>
    %398 = vector.shape_cast %395 : vector<4x128xf32> to vector<1x4x128xf32>
    tpu.vector_store %arg17[%c1_142, %c0_143, %c0_144], %398 {strides = array<i32>} : memref<2x4x128xf32, #tpu.memory_space<vmem>>, vector<1x4x128xf32>,
    %399 = arith.subf %395, %370 : vector<4x128xf32>
    %400 = arith.mulf %399, %399 : vector<4x128xf32>
    %401 = vector.shape_cast %400 : vector<4x128xf32> to vector<1x4x128xf32>
    %cst_145 = arith.constant dense<0.000000e+00> : vector<1xf32>
    %402 = vector.multi_reduction <add>, %401, %cst_145 [1, 2] : vector<1x4x128xf32> to vector<1xf32>
    %403 = vector.shape_cast %402 : vector<1xf32> to vector<1x1x1xf32>
    %404 = vector.extract %403[0, 0, 0] : f32 from vector<1x1x1xf32>
    %405 = arith.addf %210, %404 : f32
    %cst_146 = arith.constant 1.250000e+00 : f32
    %406 = arith.mulf %cst_146, %405 : f32
    %cst_147 = arith.constant 2.560000e+02 : f32
    %407 = arith.divf %406, %cst_147 : f32
    %c0_148 = arith.constant 0 : index
    %408 = memref.load %arg18[%c0_148] : memref<1xf32, #tpu.memory_space<smem>>
    memref.store %407, %arg18[%c0_148] : memref<1xf32, #tpu.memory_space<smem>>
    return
  }
}

module attributes {stable_mosaic.version = 11 : i64} {
  func.func @_dec_tx_kernel(%arg0: i32, %arg1: memref<1x16x128xf32, #tpu.memory_space<vmem>>, %arg2: memref<128x128xbf16, #tpu.memory_space<vmem>>, %arg3: memref<1x128xf32, #tpu.memory_space<vmem>>, %arg4: memref<128x768xbf16, #tpu.memory_space<vmem>>, %arg5: memref<1x768xf32, #tpu.memory_space<vmem>>, %arg6: memref<256x128xbf16, #tpu.memory_space<vmem>>, %arg7: memref<1x128xf32, #tpu.memory_space<vmem>>, %arg8: memref<1x128xf32, #tpu.memory_space<vmem>>, %arg9: memref<1x128xf32, #tpu.memory_space<vmem>>, %arg10: memref<128x128xbf16, #tpu.memory_space<vmem>>, %arg11: memref<1x128xf32, #tpu.memory_space<vmem>>, %arg12: memref<128x128xbf16, #tpu.memory_space<vmem>>, %arg13: memref<1x128xf32, #tpu.memory_space<vmem>>, %arg14: memref<1x128xf32, #tpu.memory_space<vmem>>, %arg15: memref<1x128xf32, #tpu.memory_space<vmem>>, %arg16: memref<1x16x128xf32, #tpu.memory_space<vmem>>) attributes {dimension_semantics = [#tpu.dimension_semantics<parallel>], iteration_bounds = array<i64: 2>, scalar_prefetch = 0 : i64, scratch_operands = 0 : i64, tpu.core_type = #tpu.core_type<tc>, window_params = [{transform_indices = @transform_0, window_bounds = array<i64: 1, 16, 128>}, {pipeline_mode = #tpu.pipeline_mode<synchronous>, transform_indices = @transform_1, window_bounds = array<i64: 128, 128>}, {pipeline_mode = #tpu.pipeline_mode<synchronous>, transform_indices = @transform_2, window_bounds = array<i64: 1, 128>}, {pipeline_mode = #tpu.pipeline_mode<synchronous>, transform_indices = @transform_3, window_bounds = array<i64: 128, 768>}, {pipeline_mode = #tpu.pipeline_mode<synchronous>, transform_indices = @transform_4, window_bounds = array<i64: 1, 768>}, {pipeline_mode = #tpu.pipeline_mode<synchronous>, transform_indices = @transform_5, window_bounds = array<i64: 256, 128>}, {pipeline_mode = #tpu.pipeline_mode<synchronous>, transform_indices = @transform_6, window_bounds = array<i64: 1, 128>}, {pipeline_mode = #tpu.pipeline_mode<synchronous>, transform_indices = @transform_7, window_bounds = array<i64: 1, 128>}, {pipeline_mode = #tpu.pipeline_mode<synchronous>, transform_indices = @transform_8, window_bounds = array<i64: 1, 128>}, {pipeline_mode = #tpu.pipeline_mode<synchronous>, transform_indices = @transform_9, window_bounds = array<i64: 128, 128>}, {pipeline_mode = #tpu.pipeline_mode<synchronous>, transform_indices = @transform_10, window_bounds = array<i64: 1, 128>}, {pipeline_mode = #tpu.pipeline_mode<synchronous>, transform_indices = @transform_11, window_bounds = array<i64: 128, 128>}, {pipeline_mode = #tpu.pipeline_mode<synchronous>, transform_indices = @transform_12, window_bounds = array<i64: 1, 128>}, {pipeline_mode = #tpu.pipeline_mode<synchronous>, transform_indices = @transform_13, window_bounds = array<i64: 1, 128>}, {pipeline_mode = #tpu.pipeline_mode<synchronous>, transform_indices = @transform_14, window_bounds = array<i64: 1, 128>}, {transform_indices = @transform_15, window_bounds = array<i64: 1, 16, 128>}]} {
    %c0 = arith.constant 0 : index
    %c0_0 = arith.constant 0 : index
    %0 = vector.load %arg2[%c0, %c0_0] : memref<128x128xbf16, #tpu.memory_space<vmem>>, vector<128x128xbf16>
    %c0_1 = arith.constant 0 : index
    %c0_2 = arith.constant 0 : index
    %1 = vector.load %arg3[%c0_1, %c0_2] : memref<1x128xf32, #tpu.memory_space<vmem>>, vector<1x128xf32>
    %c0_3 = arith.constant 0 : index
    %c0_4 = arith.constant 0 : index
    %2 = vector.load %arg4[%c0_3, %c0_4] : memref<128x768xbf16, #tpu.memory_space<vmem>>, vector<128x768xbf16>
    %c0_5 = arith.constant 0 : index
    %c0_6 = arith.constant 0 : index
    %3 = vector.load %arg5[%c0_5, %c0_6] : memref<1x768xf32, #tpu.memory_space<vmem>>, vector<1x768xf32>
    %c0_7 = arith.constant 0 : index
    %c0_8 = arith.constant 0 : index
    %4 = vector.load %arg6[%c0_7, %c0_8] : memref<256x128xbf16, #tpu.memory_space<vmem>>, vector<256x128xbf16>
    %c0_9 = arith.constant 0 : index
    %c0_10 = arith.constant 0 : index
    %5 = vector.load %arg7[%c0_9, %c0_10] : memref<1x128xf32, #tpu.memory_space<vmem>>, vector<1x128xf32>
    %c0_11 = arith.constant 0 : index
    %c0_12 = arith.constant 0 : index
    %6 = vector.load %arg8[%c0_11, %c0_12] : memref<1x128xf32, #tpu.memory_space<vmem>>, vector<1x128xf32>
    %c0_13 = arith.constant 0 : index
    %c0_14 = arith.constant 0 : index
    %7 = vector.load %arg9[%c0_13, %c0_14] : memref<1x128xf32, #tpu.memory_space<vmem>>, vector<1x128xf32>
    %c0_15 = arith.constant 0 : index
    %c0_16 = arith.constant 0 : index
    %8 = vector.load %arg10[%c0_15, %c0_16] : memref<128x128xbf16, #tpu.memory_space<vmem>>, vector<128x128xbf16>
    %c0_17 = arith.constant 0 : index
    %c0_18 = arith.constant 0 : index
    %9 = vector.load %arg11[%c0_17, %c0_18] : memref<1x128xf32, #tpu.memory_space<vmem>>, vector<1x128xf32>
    %c0_19 = arith.constant 0 : index
    %c0_20 = arith.constant 0 : index
    %10 = vector.load %arg12[%c0_19, %c0_20] : memref<128x128xbf16, #tpu.memory_space<vmem>>, vector<128x128xbf16>
    %c0_21 = arith.constant 0 : index
    %c0_22 = arith.constant 0 : index
    %11 = vector.load %arg13[%c0_21, %c0_22] : memref<1x128xf32, #tpu.memory_space<vmem>>, vector<1x128xf32>
    %c0_23 = arith.constant 0 : index
    %c0_24 = arith.constant 0 : index
    %12 = vector.load %arg14[%c0_23, %c0_24] : memref<1x128xf32, #tpu.memory_space<vmem>>, vector<1x128xf32>
    %c0_25 = arith.constant 0 : index
    %c0_26 = arith.constant 0 : index
    %13 = vector.load %arg15[%c0_25, %c0_26] : memref<1x128xf32, #tpu.memory_space<vmem>>, vector<1x128xf32>
    %c0_27 = arith.constant 0 : index
    %c0_28 = arith.constant 0 : index
    %c0_29 = arith.constant 0 : index
    %14 = vector.load %arg1[%c0_27, %c0_28, %c0_29] : memref<1x16x128xf32, #tpu.memory_space<vmem>>, vector<1x16x128xf32>
    %15 = vector.shape_cast %14 : vector<1x16x128xf32> to vector<16x128xf32>
    %16 = arith.truncf %15 : vector<16x128xf32> to vector<16x128xbf16>
    %cst = arith.constant dense<0.000000e+00> : vector<16x128xf32>
    %17 = tpu.matmul %16, %0, %cst {dimension_numbers = #tpu.dot_dimension_numbers<[1], [0], [0], [1], [0, 0, 1, 1], [], []>} : vector<16x128xbf16>, vector<128x128xbf16>, vector<16x128xf32> -> vector<16x128xf32>
    %18 = vector.broadcast %1 : vector<1x128xf32> to vector<16x128xf32>
    %19 = arith.addf %17, %18 : vector<16x128xf32>
    %20 = arith.truncf %19 : vector<16x128xf32> to vector<16x128xbf16>
    %cst_30 = arith.constant dense<0.000000e+00> : vector<16x768xf32>
    %21 = tpu.matmul %20, %2, %cst_30 {dimension_numbers = #tpu.dot_dimension_numbers<[1], [0], [0], [1], [0, 0, 1, 1], [], []>} : vector<16x128xbf16>, vector<128x768xbf16>, vector<16x768xf32> -> vector<16x768xf32>
    %22 = vector.broadcast %3 : vector<1x768xf32> to vector<16x768xf32>
    %23 = arith.addf %21, %22 : vector<16x768xf32>
    %24 = vector.extract_strided_slice %23 {offsets = [0, 0], sizes = [16, 128], strides = [1, 1]} : vector<16x768xf32> to vector<16x128xf32>
    %25 = vector.extract_strided_slice %23 {offsets = [0, 256], sizes = [16, 128], strides = [1, 1]} : vector<16x768xf32> to vector<16x128xf32>
    %26 = vector.extract_strided_slice %23 {offsets = [0, 512], sizes = [16, 128], strides = [1, 1]} : vector<16x768xf32> to vector<16x128xf32>
    %27 = arith.truncf %24 : vector<16x128xf32> to vector<16x128xbf16>
    %28 = arith.truncf %25 : vector<16x128xf32> to vector<16x128xbf16>
    %cst_31 = arith.constant dense<0.000000e+00> : vector<16x16xf32>
    %29 = tpu.matmul %27, %28, %cst_31 {dimension_numbers = #tpu.dot_dimension_numbers<[1], [1], [0], [0], [0, 0, 1, 0], [], []>} : vector<16x128xbf16>, vector<16x128xbf16>, vector<16x16xf32> -> vector<16x16xf32>
    %cst_32 = arith.constant 2.500000e-01 : f32
    %30 = vector.broadcast %cst_32 : f32 to vector<16x16xf32>
    %31 = arith.mulf %29, %30 : vector<16x16xf32>
    %cst_33 = arith.constant dense<0xFF800000> : vector<16xf32>
    %32 = vector.multi_reduction <maximumf>, %31, %cst_33 [1] : vector<16x16xf32> to vector<16xf32>
    %33 = vector.shape_cast %32 : vector<16xf32> to vector<16x1xf32>
    %34 = vector.broadcast %33 : vector<16x1xf32> to vector<16x16xf32>
    %35 = arith.subf %31, %34 : vector<16x16xf32>
    %36 = math.exp %35 : vector<16x16xf32>
    %cst_34 = arith.constant dense<0.000000e+00> : vector<16xf32>
    %37 = vector.multi_reduction <add>, %36, %cst_34 [1] : vector<16x16xf32> to vector<16xf32>
    %38 = vector.shape_cast %37 : vector<16xf32> to vector<16x1xf32>
    %39 = tpu.reciprocal %38 {approx = true} : vector<16x1xf32> -> vector<16x1xf32>
    %40 = vector.broadcast %39 : vector<16x1xf32> to vector<16x16xf32>
    %41 = arith.mulf %36, %40 : vector<16x16xf32>
    %42 = arith.truncf %41 : vector<16x16xf32> to vector<16x16xbf16>
    %43 = arith.truncf %26 : vector<16x128xf32> to vector<16x128xbf16>
    %cst_35 = arith.constant dense<0.000000e+00> : vector<16x128xf32>
    %44 = tpu.matmul %42, %43, %cst_35 {dimension_numbers = #tpu.dot_dimension_numbers<[1], [0], [0], [1], [0, 0, 1, 1], [], []>} : vector<16x16xbf16>, vector<16x128xbf16>, vector<16x128xf32> -> vector<16x128xf32>
    %45 = vector.extract_strided_slice %4 {offsets = [0, 0], sizes = [128, 128], strides = [1, 1]} : vector<256x128xbf16> to vector<128x128xbf16>
    %46 = arith.truncf %44 : vector<16x128xf32> to vector<16x128xbf16>
    %cst_36 = arith.constant dense<0.000000e+00> : vector<16x128xf32>
    %47 = tpu.matmul %46, %45, %cst_36 {dimension_numbers = #tpu.dot_dimension_numbers<[1], [0], [0], [1], [0, 0, 1, 1], [], []>} : vector<16x128xbf16>, vector<128x128xbf16>, vector<16x128xf32> -> vector<16x128xf32>
    %48 = vector.extract_strided_slice %23 {offsets = [0, 128], sizes = [16, 128], strides = [1, 1]} : vector<16x768xf32> to vector<16x128xf32>
    %49 = vector.extract_strided_slice %23 {offsets = [0, 384], sizes = [16, 128], strides = [1, 1]} : vector<16x768xf32> to vector<16x128xf32>
    %50 = vector.extract_strided_slice %23 {offsets = [0, 640], sizes = [16, 128], strides = [1, 1]} : vector<16x768xf32> to vector<16x128xf32>
    %51 = arith.truncf %48 : vector<16x128xf32> to vector<16x128xbf16>
    %52 = arith.truncf %49 : vector<16x128xf32> to vector<16x128xbf16>
    %cst_37 = arith.constant dense<0.000000e+00> : vector<16x16xf32>
    %53 = tpu.matmul %51, %52, %cst_37 {dimension_numbers = #tpu.dot_dimension_numbers<[1], [1], [0], [0], [0, 0, 1, 0], [], []>} : vector<16x128xbf16>, vector<16x128xbf16>, vector<16x16xf32> -> vector<16x16xf32>
    %cst_38 = arith.constant 2.500000e-01 : f32
    %54 = vector.broadcast %cst_38 : f32 to vector<16x16xf32>
    %55 = arith.mulf %53, %54 : vector<16x16xf32>
    %cst_39 = arith.constant dense<0xFF800000> : vector<16xf32>
    %56 = vector.multi_reduction <maximumf>, %55, %cst_39 [1] : vector<16x16xf32> to vector<16xf32>
    %57 = vector.shape_cast %56 : vector<16xf32> to vector<16x1xf32>
    %58 = vector.broadcast %57 : vector<16x1xf32> to vector<16x16xf32>
    %59 = arith.subf %55, %58 : vector<16x16xf32>
    %60 = math.exp %59 : vector<16x16xf32>
    %cst_40 = arith.constant dense<0.000000e+00> : vector<16xf32>
    %61 = vector.multi_reduction <add>, %60, %cst_40 [1] : vector<16x16xf32> to vector<16xf32>
    %62 = vector.shape_cast %61 : vector<16xf32> to vector<16x1xf32>
    %63 = tpu.reciprocal %62 {approx = true} : vector<16x1xf32> -> vector<16x1xf32>
    %64 = vector.broadcast %63 : vector<16x1xf32> to vector<16x16xf32>
    %65 = arith.mulf %60, %64 : vector<16x16xf32>
    %66 = arith.truncf %65 : vector<16x16xf32> to vector<16x16xbf16>
    %67 = arith.truncf %50 : vector<16x128xf32> to vector<16x128xbf16>
    %cst_41 = arith.constant dense<0.000000e+00> : vector<16x128xf32>
    %68 = tpu.matmul %66, %67, %cst_41 {dimension_numbers = #tpu.dot_dimension_numbers<[1], [0], [0], [1], [0, 0, 1, 1], [], []>} : vector<16x16xbf16>, vector<16x128xbf16>, vector<16x128xf32> -> vector<16x128xf32>
    %69 = vector.extract_strided_slice %4 {offsets = [128, 0], sizes = [128, 128], strides = [1, 1]} : vector<256x128xbf16> to vector<128x128xbf16>
    %70 = arith.truncf %68 : vector<16x128xf32> to vector<16x128xbf16>
    %cst_42 = arith.constant dense<0.000000e+00> : vector<16x128xf32>
    %71 = tpu.matmul %70, %69, %cst_42 {dimension_numbers = #tpu.dot_dimension_numbers<[1], [0], [0], [1], [0, 0, 1, 1], [], []>} : vector<16x128xbf16>, vector<128x128xbf16>, vector<16x128xf32> -> vector<16x128xf32>
    %72 = arith.addf %47, %71 : vector<16x128xf32>
    %73 = vector.broadcast %5 : vector<1x128xf32> to vector<16x128xf32>
    %74 = arith.addf %72, %73 : vector<16x128xf32>
    %75 = arith.addf %19, %74 : vector<16x128xf32>
    %cst_43 = arith.constant dense<0.000000e+00> : vector<16xf32>
    %76 = vector.multi_reduction <add>, %75, %cst_43 [1] : vector<16x128xf32> to vector<16xf32>
    %77 = vector.shape_cast %76 : vector<16xf32> to vector<16x1xf32>
    %cst_44 = arith.constant 3.200000e+01 : f32
    %78 = vector.broadcast %cst_44 : f32 to vector<16x1xf32>
    %79 = arith.divf %77, %78 : vector<16x1xf32>
    %80 = arith.mulf %75, %75 : vector<16x128xf32>
    %cst_45 = arith.constant dense<0.000000e+00> : vector<16xf32>
    %81 = vector.multi_reduction <add>, %80, %cst_45 [1] : vector<16x128xf32> to vector<16xf32>
    %82 = vector.shape_cast %81 : vector<16xf32> to vector<16x1xf32>
    %cst_46 = arith.constant 3.200000e+01 : f32
    %83 = vector.broadcast %cst_46 : f32 to vector<16x1xf32>
    %84 = arith.divf %82, %83 : vector<16x1xf32>
    %85 = arith.mulf %79, %79 : vector<16x1xf32>
    %86 = arith.subf %84, %85 : vector<16x1xf32>
    %cst_47 = arith.constant 0.000000e+00 : f32
    %87 = vector.broadcast %cst_47 : f32 to vector<16x1xf32>
    %88 = arith.maximumf %86, %87 : vector<16x1xf32>
    %89 = vector.broadcast %79 : vector<16x1xf32> to vector<16x128xf32>
    %90 = arith.subf %75, %89 : vector<16x128xf32>
    %cst_48 = arith.constant 9.99999974E-6 : f32
    %91 = vector.broadcast %cst_48 : f32 to vector<16x1xf32>
    %92 = arith.addf %88, %91 : vector<16x1xf32>
    %93 = math.rsqrt %92 : vector<16x1xf32>
    %94 = vector.broadcast %93 : vector<16x1xf32> to vector<16x128xf32>
    %95 = arith.mulf %90, %94 : vector<16x128xf32>
    %96 = vector.broadcast %6 : vector<1x128xf32> to vector<16x128xf32>
    %97 = arith.mulf %95, %96 : vector<16x128xf32>
    %98 = vector.broadcast %7 : vector<1x128xf32> to vector<16x128xf32>
    %99 = arith.addf %97, %98 : vector<16x128xf32>
    %100 = arith.truncf %99 : vector<16x128xf32> to vector<16x128xbf16>
    %cst_49 = arith.constant dense<0.000000e+00> : vector<16x128xf32>
    %101 = tpu.matmul %100, %8, %cst_49 {dimension_numbers = #tpu.dot_dimension_numbers<[1], [0], [0], [1], [0, 0, 1, 1], [], []>} : vector<16x128xbf16>, vector<128x128xbf16>, vector<16x128xf32> -> vector<16x128xf32>
    %102 = vector.broadcast %9 : vector<1x128xf32> to vector<16x128xf32>
    %103 = arith.addf %101, %102 : vector<16x128xf32>
    %cst_50 = arith.constant 5.000000e-01 : f32
    %104 = vector.broadcast %cst_50 : f32 to vector<16x128xf32>
    %105 = arith.mulf %104, %103 : vector<16x128xf32>
    %cst_51 = arith.constant 0.707106769 : f32
    %106 = vector.broadcast %cst_51 : f32 to vector<16x128xf32>
    %107 = arith.mulf %103, %106 : vector<16x128xf32>
    %cst_52 = arith.constant 0.000000e+00 : f32
    %108 = vector.broadcast %cst_52 : f32 to vector<16x128xf32>
    %109 = arith.cmpf oge, %107, %108 : vector<16x128xf32>
    %cst_53 = arith.constant 1.000000e+00 : f32
    %cst_54 = arith.constant -1.000000e+00 : f32
    %110 = vector.broadcast %cst_53 : f32 to vector<16x128xf32>
    %111 = vector.broadcast %cst_54 : f32 to vector<16x128xf32>
    %112 = arith.select %109, %110, %111 : vector<16x128xi1>, vector<16x128xf32>
    %113 = math.absf %107 : vector<16x128xf32>
    %cst_55 = arith.constant 0.327591091 : f32
    %114 = vector.broadcast %cst_55 : f32 to vector<16x128xf32>
    %115 = arith.mulf %114, %113 : vector<16x128xf32>
    %cst_56 = arith.constant 1.000000e+00 : f32
    %116 = vector.broadcast %cst_56 : f32 to vector<16x128xf32>
    %117 = arith.addf %116, %115 : vector<16x128xf32>
    %cst_57 = arith.constant 1.000000e+00 : f32
    %118 = vector.broadcast %cst_57 : f32 to vector<16x128xf32>
    %119 = arith.divf %118, %117 : vector<16x128xf32>
    %cst_58 = arith.constant 1.06140542 : f32
    %120 = vector.broadcast %cst_58 : f32 to vector<16x128xf32>
    %121 = arith.mulf %120, %119 : vector<16x128xf32>
    %cst_59 = arith.constant -1.45315206 : f32
    %122 = vector.broadcast %cst_59 : f32 to vector<16x128xf32>
    %123 = arith.addf %121, %122 : vector<16x128xf32>
    %124 = arith.mulf %123, %119 : vector<16x128xf32>
    %cst_60 = arith.constant 1.42141378 : f32
    %125 = vector.broadcast %cst_60 : f32 to vector<16x128xf32>
    %126 = arith.addf %124, %125 : vector<16x128xf32>
    %127 = arith.mulf %126, %119 : vector<16x128xf32>
    %cst_61 = arith.constant -0.284496725 : f32
    %128 = vector.broadcast %cst_61 : f32 to vector<16x128xf32>
    %129 = arith.addf %127, %128 : vector<16x128xf32>
    %130 = arith.mulf %129, %119 : vector<16x128xf32>
    %cst_62 = arith.constant 0.254829586 : f32
    %131 = vector.broadcast %cst_62 : f32 to vector<16x128xf32>
    %132 = arith.addf %130, %131 : vector<16x128xf32>
    %133 = arith.mulf %132, %119 : vector<16x128xf32>
    %cst_63 = arith.constant 0.000000e+00 : f32
    %134 = vector.broadcast %cst_63 : f32 to vector<16x128xf32>
    %135 = arith.subf %134, %113 : vector<16x128xf32>
    %136 = arith.mulf %135, %113 : vector<16x128xf32>
    %137 = math.exp %136 : vector<16x128xf32>
    %138 = arith.mulf %133, %137 : vector<16x128xf32>
    %cst_64 = arith.constant 1.000000e+00 : f32
    %139 = vector.broadcast %cst_64 : f32 to vector<16x128xf32>
    %140 = arith.subf %139, %138 : vector<16x128xf32>
    %141 = arith.mulf %112, %140 : vector<16x128xf32>
    %cst_65 = arith.constant 1.000000e+00 : f32
    %142 = vector.broadcast %cst_65 : f32 to vector<16x128xf32>
    %143 = arith.addf %142, %141 : vector<16x128xf32>
    %144 = arith.mulf %105, %143 : vector<16x128xf32>
    %145 = arith.truncf %144 : vector<16x128xf32> to vector<16x128xbf16>
    %cst_66 = arith.constant dense<0.000000e+00> : vector<16x128xf32>
    %146 = tpu.matmul %145, %10, %cst_66 {dimension_numbers = #tpu.dot_dimension_numbers<[1], [0], [0], [1], [0, 0, 1, 1], [], []>} : vector<16x128xbf16>, vector<128x128xbf16>, vector<16x128xf32> -> vector<16x128xf32>
    %147 = vector.broadcast %11 : vector<1x128xf32> to vector<16x128xf32>
    %148 = arith.addf %146, %147 : vector<16x128xf32>
    %149 = arith.addf %99, %148 : vector<16x128xf32>
    %cst_67 = arith.constant dense<0.000000e+00> : vector<16xf32>
    %150 = vector.multi_reduction <add>, %149, %cst_67 [1] : vector<16x128xf32> to vector<16xf32>
    %151 = vector.shape_cast %150 : vector<16xf32> to vector<16x1xf32>
    %cst_68 = arith.constant 3.200000e+01 : f32
    %152 = vector.broadcast %cst_68 : f32 to vector<16x1xf32>
    %153 = arith.divf %151, %152 : vector<16x1xf32>
    %154 = arith.mulf %149, %149 : vector<16x128xf32>
    %cst_69 = arith.constant dense<0.000000e+00> : vector<16xf32>
    %155 = vector.multi_reduction <add>, %154, %cst_69 [1] : vector<16x128xf32> to vector<16xf32>
    %156 = vector.shape_cast %155 : vector<16xf32> to vector<16x1xf32>
    %cst_70 = arith.constant 3.200000e+01 : f32
    %157 = vector.broadcast %cst_70 : f32 to vector<16x1xf32>
    %158 = arith.divf %156, %157 : vector<16x1xf32>
    %159 = arith.mulf %153, %153 : vector<16x1xf32>
    %160 = arith.subf %158, %159 : vector<16x1xf32>
    %cst_71 = arith.constant 0.000000e+00 : f32
    %161 = vector.broadcast %cst_71 : f32 to vector<16x1xf32>
    %162 = arith.maximumf %160, %161 : vector<16x1xf32>
    %163 = vector.broadcast %153 : vector<16x1xf32> to vector<16x128xf32>
    %164 = arith.subf %149, %163 : vector<16x128xf32>
    %cst_72 = arith.constant 9.99999974E-6 : f32
    %165 = vector.broadcast %cst_72 : f32 to vector<16x1xf32>
    %166 = arith.addf %162, %165 : vector<16x1xf32>
    %167 = math.rsqrt %166 : vector<16x1xf32>
    %168 = vector.broadcast %167 : vector<16x1xf32> to vector<16x128xf32>
    %169 = arith.mulf %164, %168 : vector<16x128xf32>
    %170 = vector.broadcast %12 : vector<1x128xf32> to vector<16x128xf32>
    %171 = arith.mulf %169, %170 : vector<16x128xf32>
    %172 = vector.broadcast %13 : vector<1x128xf32> to vector<16x128xf32>
    %173 = arith.addf %171, %172 : vector<16x128xf32>
    %c0_73 = arith.constant 0 : index
    %c0_74 = arith.constant 0 : index
    %c0_75 = arith.constant 0 : index
    %174 = vector.load %arg16[%c0_73, %c0_74, %c0_75] : memref<1x16x128xf32, #tpu.memory_space<vmem>>, vector<1x16x128xf32>
    %175 = vector.shape_cast %174 : vector<1x16x128xf32> to vector<16x128xf32>
    %176 = vector.shape_cast %173 : vector<16x128xf32> to vector<1x16x128xf32>
    tpu.vector_store %arg16[%c0_73, %c0_74, %c0_75], %176 {strides = array<i32>} : memref<1x16x128xf32, #tpu.memory_space<vmem>>, vector<1x16x128xf32>,
    return
  }
  func.func @transform_0(%arg0: i32) -> (i32, i32, i32) {
    %c0_i32 = arith.constant 0 : i32
    %c0_i32_0 = arith.constant 0 : i32
    %c0_i32_1 = arith.constant 0 : i32
    return %arg0, %c0_i32, %c0_i32_0 : i32, i32, i32
  }
  func.func @transform_1(%arg0: i32) -> (i32, i32) {
    %c0_i32 = arith.constant 0 : i32
    %c0_i32_0 = arith.constant 0 : i32
    %c0_i32_1 = arith.constant 0 : i32
    return %c0_i32, %c0_i32_0 : i32, i32
  }
  func.func @transform_2(%arg0: i32) -> (i32, i32) {
    %c0_i32 = arith.constant 0 : i32
    %c0_i32_0 = arith.constant 0 : i32
    %c0_i32_1 = arith.constant 0 : i32
    return %c0_i32, %c0_i32_0 : i32, i32
  }
  func.func @transform_3(%arg0: i32) -> (i32, i32) {
    %c0_i32 = arith.constant 0 : i32
    %c0_i32_0 = arith.constant 0 : i32
    %c0_i32_1 = arith.constant 0 : i32
    return %c0_i32, %c0_i32_0 : i32, i32
  }
  func.func @transform_4(%arg0: i32) -> (i32, i32) {
    %c0_i32 = arith.constant 0 : i32
    %c0_i32_0 = arith.constant 0 : i32
    %c0_i32_1 = arith.constant 0 : i32
    return %c0_i32, %c0_i32_0 : i32, i32
  }
  func.func @transform_5(%arg0: i32) -> (i32, i32) {
    %c0_i32 = arith.constant 0 : i32
    %c0_i32_0 = arith.constant 0 : i32
    %c0_i32_1 = arith.constant 0 : i32
    return %c0_i32, %c0_i32_0 : i32, i32
  }
  func.func @transform_6(%arg0: i32) -> (i32, i32) {
    %c0_i32 = arith.constant 0 : i32
    %c0_i32_0 = arith.constant 0 : i32
    %c0_i32_1 = arith.constant 0 : i32
    return %c0_i32, %c0_i32_0 : i32, i32
  }
  func.func @transform_7(%arg0: i32) -> (i32, i32) {
    %c0_i32 = arith.constant 0 : i32
    %c0_i32_0 = arith.constant 0 : i32
    %c0_i32_1 = arith.constant 0 : i32
    return %c0_i32, %c0_i32_0 : i32, i32
  }
  func.func @transform_8(%arg0: i32) -> (i32, i32) {
    %c0_i32 = arith.constant 0 : i32
    %c0_i32_0 = arith.constant 0 : i32
    %c0_i32_1 = arith.constant 0 : i32
    return %c0_i32, %c0_i32_0 : i32, i32
  }
  func.func @transform_9(%arg0: i32) -> (i32, i32) {
    %c0_i32 = arith.constant 0 : i32
    %c0_i32_0 = arith.constant 0 : i32
    %c0_i32_1 = arith.constant 0 : i32
    return %c0_i32, %c0_i32_0 : i32, i32
  }
  func.func @transform_10(%arg0: i32) -> (i32, i32) {
    %c0_i32 = arith.constant 0 : i32
    %c0_i32_0 = arith.constant 0 : i32
    %c0_i32_1 = arith.constant 0 : i32
    return %c0_i32, %c0_i32_0 : i32, i32
  }
  func.func @transform_11(%arg0: i32) -> (i32, i32) {
    %c0_i32 = arith.constant 0 : i32
    %c0_i32_0 = arith.constant 0 : i32
    %c0_i32_1 = arith.constant 0 : i32
    return %c0_i32, %c0_i32_0 : i32, i32
  }
  func.func @transform_12(%arg0: i32) -> (i32, i32) {
    %c0_i32 = arith.constant 0 : i32
    %c0_i32_0 = arith.constant 0 : i32
    %c0_i32_1 = arith.constant 0 : i32
    return %c0_i32, %c0_i32_0 : i32, i32
  }
  func.func @transform_13(%arg0: i32) -> (i32, i32) {
    %c0_i32 = arith.constant 0 : i32
    %c0_i32_0 = arith.constant 0 : i32
    %c0_i32_1 = arith.constant 0 : i32
    return %c0_i32, %c0_i32_0 : i32, i32
  }
  func.func @transform_14(%arg0: i32) -> (i32, i32) {
    %c0_i32 = arith.constant 0 : i32
    %c0_i32_0 = arith.constant 0 : i32
    %c0_i32_1 = arith.constant 0 : i32
    return %c0_i32, %c0_i32_0 : i32, i32
  }
  func.func @transform_15(%arg0: i32) -> (i32, i32, i32) {
    %c0_i32 = arith.constant 0 : i32
    %c0_i32_0 = arith.constant 0 : i32
    %c0_i32_1 = arith.constant 0 : i32
    return %arg0, %c0_i32, %c0_i32_0 : i32, i32, i32
  }
}

module attributes {stable_mosaic.version = 11 : i64} {
  func.func @_conv_bias_kernel(%arg0: memref<32x640xf32, #tpu.memory_space<vmem>>, %arg1: memref<640x128xbf16, #tpu.memory_space<vmem>>, %arg2: memref<1x128xf32, #tpu.memory_space<vmem>>, %arg3: memref<32x128xf32, #tpu.memory_space<vmem>>) attributes {dimension_semantics = [], scalar_prefetch = 0 : i64, scratch_operands = 0 : i64, tpu.core_type = #tpu.core_type<tc>} {
    %c0 = arith.constant 0 : index
    %c0_0 = arith.constant 0 : index
    %0 = vector.load %arg0[%c0, %c0_0] : memref<32x640xf32, #tpu.memory_space<vmem>>, vector<32x640xf32>
    %1 = arith.truncf %0 : vector<32x640xf32> to vector<32x640xbf16>
    %c0_1 = arith.constant 0 : index
    %c0_2 = arith.constant 0 : index
    %2 = vector.load %arg1[%c0_1, %c0_2] : memref<640x128xbf16, #tpu.memory_space<vmem>>, vector<640x128xbf16>
    %cst = arith.constant dense<0.000000e+00> : vector<32x128xf32>
    %3 = tpu.matmul %1, %2, %cst {dimension_numbers = #tpu.dot_dimension_numbers<[1], [0], [0], [1], [0, 0, 1, 1], [], []>} : vector<32x640xbf16>, vector<640x128xbf16>, vector<32x128xf32> -> vector<32x128xf32>
    %c0_3 = arith.constant 0 : index
    %c0_4 = arith.constant 0 : index
    %4 = vector.load %arg2[%c0_3, %c0_4] : memref<1x128xf32, #tpu.memory_space<vmem>>, vector<1x128xf32>
    %5 = vector.broadcast %4 : vector<1x128xf32> to vector<32x128xf32>
    %6 = arith.addf %3, %5 : vector<32x128xf32>
    %c0_5 = arith.constant 0 : index
    %c0_6 = arith.constant 0 : index
    %7 = vector.load %arg3[%c0_5, %c0_6] : memref<32x128xf32, #tpu.memory_space<vmem>>, vector<32x128xf32>
    tpu.vector_store %arg3[%c0_5, %c0_6], %6 {strides = array<i32>} : memref<32x128xf32, #tpu.memory_space<vmem>>, vector<32x128xf32>,
    return
  }
}

</mosaic_0001>

<bundles_post_ra>
// kernel: vqvae_forward.13
= control target key start
LH: loop header
LB: loop body
LE: loop exit
PB: predicated region body
PF: predicated region fallthrough
CT: control target
= control target key end

     0   :  { %s909_s1 = inlined_call_operand.vmem [shape: bf16[640,128], index: 1, kind: input, shape index: {}]   ;;  %s910_s0 = inlined_call_operand.vmem [shape: f32[32,640], index: 0, kind: input, shape index: {}]   ;;  %s911_s2 = inlined_call_operand.vmem [shape: f32[1,128], index: 2, kind: input, shape index: {}]   ;;  %s912_s3 = inlined_call_operand.vmem [shape: f32[32,128], index: 3, kind: output, shape index: {}]  }
   0x1   :  { %v654_v0 = vld [vmem:[%s909_s1 + $0x40] sm:$0xff]   ;;  %v658_v4 = vld [vmem:[%s909_s1 + $0x48] sm:$0xff]   ;;  %v662_v8 = vld [vmem:[%s909_s1 + $0x50] sm:$0xff]  }
   0x2   :  { %v655_v1 = vld [vmem:[%s909_s1] sm:$0xff]   ;;  %568 = vmatprep.subr.bf16.mxu0 %v654_v0  ;;  %v659_v5 = vld [vmem:[%s909_s1 + $0x8] sm:$0xff]   ;;  %v663_v9 = vld [vmem:[%s909_s1 + $0x10] sm:$0xff]  }
   0x3   :  { %v656_v2 = vld [vmem:[%s909_s1 + $0xc0] sm:$0xff]   ;;  %569 = vmatpush3.bf16.msra.mxu0 %v655_v1  ;;  %v660_v6 = vld [vmem:[%s909_s1 + $0xc8] sm:$0xff]   ;;  %v664_v10 = vld [vmem:[%s909_s1 + $0xd0] sm:$0xff]  }
   0x4   :  { %v657_v3 = vld [vmem:[%s909_s1 + $0x80] sm:$0xff]   ;;  %596 = vmatprep.subr.bf16.mxu1 %v656_v2  ;;  %570 = vmatprep.subr.bf16.mxu0 %v658_v4  ;;  %v661_v7 = vld [vmem:[%s909_s1 + $0x88] sm:$0xff]   ;;  %v665_v11 = vld [vmem:[%s909_s1 + $0x90] sm:$0xff]  }
   0x5   :  { %597 = vmatpush3.bf16.msra.mxu1 %v657_v3  ;;  %v666_v12 = vld [vmem:[%s909_s1 + $0x58] sm:$0xff]   ;;  %v670_v16 = vld [vmem:[%s909_s1 + $0x60] sm:$0xff]   ;;  %v674_v20 = vld [vmem:[%s909_s1 + $0x68] sm:$0xff]  }
   0x6   :  { %598 = vmatprep.subr.bf16.mxu1 %v660_v6  ;;  %v667_v13 = vld [vmem:[%s909_s1 + $0x18] sm:$0xff]   ;;  %v671_v17 = vld [vmem:[%s909_s1 + $0x20] sm:$0xff]   ;;  %v675_v21 = vld [vmem:[%s909_s1 + $0x28] sm:$0xff]  }
   0x7   :  { %571 = vmatpush3.bf16.msra.mxu0 %v659_v5  ;;  %v668_v14 = vld [vmem:[%s909_s1 + $0xd8] sm:$0xff]   ;;  %v672_v18 = vld [vmem:[%s909_s1 + $0xe0] sm:$0xff]   ;;  %v676_v22 = vld [vmem:[%s909_s1 + $0xe8] sm:$0xff]  }
   0x8   :  { %572 = vmatprep.subr.bf16.mxu0 %v662_v8  ;;  %v669_v15 = vld [vmem:[%s909_s1 + $0x98] sm:$0xff]   ;;  %v673_v19 = vld [vmem:[%s909_s1 + $0xa0] sm:$0xff]   ;;  %v677_v23 = vld [vmem:[%s909_s1 + $0xa8] sm:$0xff]  }
   0x9   :  { %599 = vmatpush3.bf16.msra.mxu1 %v661_v7  ;;  %v678_v24 = vld [vmem:[%s909_s1 + $0x70] sm:$0xff]   ;;  %v682_v28 = vld [vmem:[%s909_s1 + $0x78] sm:$0xff]   ;;  %v16_v31 = vld [vmem:[%s910_s0 + $0x8] sm:$0xff] }
   0xa   :  { %600 = vmatprep.subr.bf16.mxu1 %v664_v10  ;;  %v679_v25 = vld [vmem:[%s909_s1 + $0x30] sm:$0xff]   ;;  %v683_v29 = vld [vmem:[%s909_s1 + $0x38] sm:$0xff]   ;;  %v15_v35 = vld [vmem:[%s910_s0] sm:$0xff] }
   0xb   :  { %573 = vmatpush3.bf16.msra.mxu0 %v663_v9  ;;  %v680_v26 = vld [vmem:[%s909_s1 + $0xf0] sm:$0xff]   ;;  %v684_v30 = vld [vmem:[%s909_s1 + $0xf8] sm:$0xff]   ;;  %v20_v36 = vld [vmem:[%s910_s0 + $0x28] sm:$0xff] }
   0xc   :  { %574 = vmatprep.subr.bf16.mxu0 %v666_v12  ;;  %v681_v27 = vld [vmem:[%s909_s1 + $0xb0] sm:$0xff]   ;;  %v685_v34 = vld [vmem:[%s909_s1 + $0xb8] sm:$0xff]   ;;  %v35_v37 = vpack.c.bf16 %v20_v36, %v15_v35  ;;  %v686_v38 = vld [vmem:[%s909_s1 + $0x100] sm:$0xff]  }
   0xd   :  { %601 = vmatpush3.bf16.msra.mxu1 %v665_v11  ;;  %v21_v32 = vld [vmem:[%s910_s0 + $0x30] sm:$0xff]  ;;  %v18_v39 = vld [vmem:[%s910_s0 + $0x18] sm:$0xff]  ;;  %v23_v40 = vld [vmem:[%s910_s0 + $0x40] sm:$0xff] }
   0xe   :  { %602 = vmatprep.subr.bf16.mxu1 %v668_v14  ;;  %v36_v33 = vpack.c.bf16 %v21_v32, %v16_v31  ;;  %v38_v41 = vpack.c.bf16 %v23_v40, %v18_v39  ;;  %v17_v42 = vld [vmem:[%s910_s0 + $0x10] sm:$0xff]  ;;  %v22_v43 = vld [vmem:[%s910_s0 + $0x38] sm:$0xff]  ;;  %v687_v45 = vld [vmem:[%s909_s1 + $0x108] sm:$0xff]  }
   0xf   :  { %575 = vmatpush3.bf16.msra.mxu0 %v667_v13  ;;  %v37_v44 = vpack.c.bf16 %v22_v43, %v17_v42  ;;  %v688_v46 = vld [vmem:[%s909_s1 + $0x110] sm:$0xff]   ;;  %v26_v47 = vld [vmem:[%s910_s0 + $0x58] sm:$0xff]  ;;  %v31_v48 = vld [vmem:[%s910_s0 + $0x80] sm:$0xff] }
  0x10   :  { %576 = vmatprep.subr.bf16.mxu0 %v670_v16  ;;  %404 = vmatprep.mubr.bf16.mxu0 %v36_v33  ;;  %v689_v49 = vld [vmem:[%s909_s1 + $0x118] sm:$0xff]   ;;  %v41_v50 = vpack.c.bf16 %v31_v48, %v26_v47  ;;  %v25_v51 = vld [vmem:[%s910_s0 + $0x50] sm:$0xff]  ;;  %v28_v54 = vld [vmem:[%s910_s0 + $0x68] sm:$0xff] }
  0x11   :  { %603 = vmatpush3.bf16.msra.mxu1 %v669_v15  ;;  %453 = vmatprep.mubr.bf16.mxu1 %v38_v41  ;;  %v30_v52 = vld [vmem:[%s910_s0 + $0x78] sm:$0xff]  ;;  %v33_v55 = vld [vmem:[%s910_s0 + $0x90] sm:$0xff]  ;;  %v27_v56 = vld [vmem:[%s910_s0 + $0x60] sm:$0xff] }
  0x12   :  { %604 = vmatprep.subr.bf16.mxu1 %v672_v18  ;;  %v40_v53 = vpack.c.bf16 %v30_v52, %v25_v51  ;;  %v43_v57 = vpack.c.bf16 %v33_v55, %v28_v54  ;;  %v32_v58 = vld [vmem:[%s910_s0 + $0x88] sm:$0xff]  ;;  %v19_v60 = vld [vmem:[%s910_s0 + $0x20] sm:$0xff]  ;;  %v692_v1 = vld [vmem:[%s909_s1 + $0x130] sm:$0xff]  }
  0x13   :  { %577 = vmatpush3.bf16.msra.mxu0 %v671_v17  ;;  %v42_v59 = vpack.c.bf16 %v32_v58, %v27_v56  ;;  %v24_v61 = vld [vmem:[%s910_s0 + $0x48] sm:$0xff]  ;;  %v690_v62 = vld [vmem:[%s909_s1 + $0x120] sm:$0xff]   ;;  %v693_v2 = vld [vmem:[%s909_s1 + $0x138] sm:$0xff]  }
  0x14   :  { %578 = vmatprep.subr.bf16.mxu0 %v674_v20  ;;  %v39_v63 = vpack.c.bf16 %v24_v61, %v19_v60  ;;  %v691_v0 = vld [vmem:[%s909_s1 + $0x128] sm:$0xff]   ;;  %v29_v3 = vld [vmem:[%s910_s0 + $0x70] sm:$0xff]  ;;  %v34_v4 = vld [vmem:[%s910_s0 + $0x98] sm:$0xff] }
  0x15   :  { %605 = vmatpush3.bf16.msra.mxu1 %v673_v19  ;;  %v44_v5 = vpack.c.bf16 %v34_v4, %v29_v3  ;;  %v527_v7 = vld [vmem:[%s911_s2] ss:$0 sm:$0xff] }
  0x16   :  { %606 = vmatprep.subr.bf16.mxu1 %v676_v22 }
  0x17   :  { %579 = vmatpush3.bf16.msra.mxu0 %v675_v21 }
  0x18   :  { %580 = vmatprep.subr.bf16.mxu0 %v678_v24 }
  0x19   :  { %607 = vmatpush3.bf16.msra.mxu1 %v677_v23 }
  0x1a   :  { %608 = vmatprep.subr.bf16.mxu1 %v680_v26 }
  0x1b   :  { %581 = vmatpush3.bf16.msra.mxu0 %v679_v25 }
  0x1c   :  { %582 = vmatprep.subr.bf16.mxu0 %v682_v28 }
  0x1d   :  { %609 = vmatpush3.bf16.msra.mxu1 %v681_v27 }
  0x1e   :  { %610 = vmatprep.subr.bf16.mxu1 %v684_v30 }
  0x1f   :  { %583 = vmatpush3.bf16.msra.mxu0 %v683_v29 }
  0x20   :  { %634 = vmatprep.subr.bf16.mxu0 %v686_v38 }
  0x21   :  { %611 = vmatpush3.bf16.msra.mxu1 %v685_v34 }
  0x22   :  { %405 = vmatmul.mubr.bf16.vlgmr.msra.gmra.mrb[0].mxu0 %v35_v37 }
  0x23   :  { %635 = vmatpush3.bf16.msra.mxu0 %v686_v38  ;;  %412 = vmatprep.mubr.bf16.mxu0 %v41_v50 }
  0x24   :  { %454 = vmatmul.mubr.bf16.vlgmr.msra.gmra.mrb[0].mxu1 %v37_v44  ;;  %636 = vmatprep.subr.bf16.mxu0 %v687_v45 }
  0x25   :  { %461 = vmatprep.mubr.bf16.mxu1 %v43_v57 }
  0x27   :  { %637 = vmatpush3.bf16.msra.mxu0 %v687_v45 }
  0x28   :  { %638 = vmatprep.subr.bf16.mxu0 %v688_v46 }
  0x2a   :  { %413 = vmatmul.mubr.bf16.gmra.mrb[4].mxu0 %v40_v53 }
  0x2b   :  { %639 = vmatpush3.bf16.msra.mxu0 %v688_v46  ;;  %650 = vmatprep.mubr.bf16.mxu0 %v39_v63 }
  0x2c   :  { %640 = vmatprep.subr.bf16.mxu0 %v689_v49  ;;  %462 = vmatmul.mubr.bf16.gmra.mrb[4].mxu1 %v42_v59 }
  0x2f   :  { %641 = vmatpush3.bf16.msra.mxu0 %v689_v49 }
  0x30   :  { %642 = vmatprep.subr.bf16.mxu0 %v690_v62 }
  0x33   :  { %643 = vmatpush3.bf16.msra.mxu0 %v690_v62 }
  0x34   :  { %644 = vmatprep.subr.bf16.mxu0 %v691_v0 }
  0x37   :  { %645 = vmatpush3.bf16.msra.mxu0 %v691_v0 }
  0x38   :  { %646 = vmatprep.subr.bf16.mxu0 %v692_v1 }
  0x3b   :  { %647 = vmatpush3.bf16.msra.mxu0 %v692_v1 }
  0x3c   :  { %648 = vmatprep.subr.bf16.mxu0 %v693_v2 }
  0x3f   :  { %649 = vmatpush3.bf16.msra.mxu0 %v693_v2 }
  0x42   :  { %651 = vmatmul.mubr.bf16.vlgmr.msra.gmra.mrb[8].mxu0 %v44_v5 }
  0xf5   :  { %v584_v6 = vpop.f32.mrb[0].mxu0 }
  0xf6   :  { %v585_v8 = vpop.f32.mrb[1].mxu0 }
  0xf7   :  { %v586_v9 = vadd.f32 %v585_v8, %v584_v6  ;;  %v587_v10 = vpop.f32.mrb[2].mxu0  ;;  %v612_v11 = vpop.f32.mrb[0].mxu1 }
  0xf8   :  { %v588_v12 = vpop.f32.mrb[3].mxu0  ;;  %v613_v13 = vpop.f32.mrb[1].mxu1 }
  0xf9   :  { %v407_v14 = vadd.f32 %v586_v9, %v527_v7  ;;  %v589_v15 = vadd.f32 %v588_v12, %v587_v10  ;;  %v614_v16 = vadd.f32 %v613_v13, %v612_v11  ;;  %v615_v17 = vpop.f32.mrb[2].mxu1 }
  0xfa   :  { %v616_v18 = vpop.f32.mrb[3].mxu1 }
  0xfb   :  { %v410_v19 = vadd.f32 %v589_v15, %v527_v7  ;;  %v617_v20 = vadd.f32 %v616_v18, %v615_v17  ;;  %v456_v21 = vadd.f32 %v614_v16, %v407_v14 }
  0xfd   :  { %v590_v22 = vpop.f32.mrb[4].mxu0  ;;  %v459_v23 = vadd.f32 %v617_v20, %v410_v19 }
  0xfe   :  { %v591_v24 = vpop.f32.mrb[5].mxu0 }
  0xff   :  { %v592_v25 = vadd.f32 %v591_v24, %v590_v22  ;;  %v593_v26 = vpop.f32.mrb[6].mxu0  ;;  %v618_v27 = vpop.f32.mrb[4].mxu1 }
 0x100   :  { %v594_v28 = vpop.f32.mrb[7].mxu0  ;;  %v619_v29 = vpop.f32.mrb[5].mxu1 }
 0x101   :  { %v415_v30 = vadd.f32 %v592_v25, %v527_v7  ;;  %v595_v31 = vadd.f32 %v594_v28, %v593_v26  ;;  %v620_v32 = vadd.f32 %v619_v29, %v618_v27  ;;  %v621_v33 = vpop.f32.mrb[6].mxu1 }
 0x102   :  { %v622_v34 = vpop.f32.mrb[7].mxu1 }
 0x103   :  { %v418_v35 = vadd.f32 %v595_v31, %v527_v7  ;;  %v623_v36 = vadd.f32 %v622_v34, %v621_v33  ;;  %v464_v37 = vadd.f32 %v620_v32, %v415_v30 }
 0x105   :  { %v467_v38 = vadd.f32 %v623_v36, %v418_v35 }
 0x115   :  { %v652_v39 = vpop.f32.mrb[8].mxu0 }
 0x116   :  { %v513_v40 = vadd.f32 %v652_v39, %v464_v37  ;;  %v504_v41 = vpop.f32.mrb[9].mxu0 }
 0x117   :  { %v505_v42 = vadd.f32 %v504_v41, %v456_v21  ;;  %v653_v43 = vpop.f32.mrb[10].mxu0 }
 0x118   :  { %521 = vst [vmem:[%s912_s3 + $0x10] sm:$0xff] %v513_v40  ;;  %v516_v44 = vadd.f32 %v653_v43, %v467_v38  ;;  %v507_v45 = vpop.f32.mrb[11].mxu0 }
 0x119   :  { %519 = vst [vmem:[%s912_s3] sm:$0xff] %v505_v42  ;;  %v508_v46 = vadd.f32 %v507_v45, %v459_v23 }
 0x11a   :  { %522 = vst [vmem:[%s912_s3 + $0x18] sm:$0xff] %v516_v44 }
 0x11b   :  { %520 = vst [vmem:[%s912_s3 + $0x8] sm:$0xff] %v508_v46 }

// kernel: vqvae_forward.7
= control target key start
LH: loop header
LB: loop body
LE: loop exit
PB: predicated region body
PF: predicated region fallthrough
CT: control target
= control target key end

     0   :  { %v674_v36 = vmov 0.0   ;;  %vm675_vm0 = vmmov 0   ;;  %s871_s1 = inlined_call_operand.vmem [shape: bf16[640,128], index: 1, kind: input, shape index: {}]   ;;  %s872_s0 = inlined_call_operand.vmem [shape: f32[16,640], index: 0, kind: input, shape index: {}]   ;;  %s873_s2 = inlined_call_operand.vmem [shape: f32[1,128], index: 2, kind: input, shape index: {}]   ;;  %s874_s3 = inlined_call_operand.vmem [shape: f32[1,128], index: 3, kind: input, shape index: {}]   ;;  %s875_s4 = inlined_call_operand.vmem [shape: f32[1,128], index: 4, kind: input, shape index: {}]   ;;  %s876_s5 = inlined_call_operand.vmem [shape: f32[16,128], index: 5, kind: output, shape index: {}]  }
   0x1   :  { %v634_v0 = vld [vmem:[%s871_s1 + $0x40] sm:$0xff]   ;;  %v638_v4 = vld [vmem:[%s871_s1 + $0x48] sm:$0xff]   ;;  %v642_v8 = vld [vmem:[%s871_s1 + $0x50] sm:$0xff]  }
   0x2   :  { %v635_v1 = vld [vmem:[%s871_s1] sm:$0xff]   ;;  %559 = vmatprep.subr.bf16.mxu0 %v634_v0  ;;  %v639_v5 = vld [vmem:[%s871_s1 + $0x8] sm:$0xff]   ;;  %v643_v9 = vld [vmem:[%s871_s1 + $0x10] sm:$0xff]  }
   0x3   :  { %v636_v2 = vld [vmem:[%s871_s1 + $0xc0] sm:$0xff]   ;;  %560 = vmatpush3.bf16.msra.mxu0 %v635_v1  ;;  %v640_v6 = vld [vmem:[%s871_s1 + $0xc8] sm:$0xff]   ;;  %v644_v10 = vld [vmem:[%s871_s1 + $0xd0] sm:$0xff]  }
   0x4   :  { %v637_v3 = vld [vmem:[%s871_s1 + $0x80] sm:$0xff]   ;;  %581 = vmatprep.subr.bf16.mxu1 %v636_v2  ;;  %561 = vmatprep.subr.bf16.mxu0 %v638_v4  ;;  %v641_v7 = vld [vmem:[%s871_s1 + $0x88] sm:$0xff]   ;;  %v645_v11 = vld [vmem:[%s871_s1 + $0x90] sm:$0xff]  }
   0x5   :  { %582 = vmatpush3.bf16.msra.mxu1 %v637_v3  ;;  %v646_v12 = vld [vmem:[%s871_s1 + $0x58] sm:$0xff]   ;;  %v650_v16 = vld [vmem:[%s871_s1 + $0x60] sm:$0xff]   ;;  %v654_v20 = vld [vmem:[%s871_s1 + $0x68] sm:$0xff]  }
   0x6   :  { %583 = vmatprep.subr.bf16.mxu1 %v640_v6  ;;  %v647_v13 = vld [vmem:[%s871_s1 + $0x18] sm:$0xff]   ;;  %v651_v17 = vld [vmem:[%s871_s1 + $0x20] sm:$0xff]   ;;  %v655_v21 = vld [vmem:[%s871_s1 + $0x28] sm:$0xff]  }
   0x7   :  { %562 = vmatpush3.bf16.msra.mxu0 %v639_v5  ;;  %v648_v14 = vld [vmem:[%s871_s1 + $0xd8] sm:$0xff]   ;;  %v652_v18 = vld [vmem:[%s871_s1 + $0xe0] sm:$0xff]   ;;  %v656_v22 = vld [vmem:[%s871_s1 + $0xe8] sm:$0xff]  }
   0x8   :  { %563 = vmatprep.subr.bf16.mxu0 %v642_v8  ;;  %v649_v15 = vld [vmem:[%s871_s1 + $0x98] sm:$0xff]   ;;  %v653_v19 = vld [vmem:[%s871_s1 + $0xa0] sm:$0xff]   ;;  %v657_v23 = vld [vmem:[%s871_s1 + $0xa8] sm:$0xff]  }
   0x9   :  { %584 = vmatpush3.bf16.msra.mxu1 %v641_v7  ;;  %v658_v24 = vld [vmem:[%s871_s1 + $0x70] sm:$0xff]   ;;  %v662_v28 = vld [vmem:[%s871_s1 + $0x78] sm:$0xff]   ;;  %v22_v31 = vld [vmem:[%s872_s0 + $0x8] sm:$0xff] }
   0xa   :  { %585 = vmatprep.subr.bf16.mxu1 %v644_v10  ;;  %v659_v25 = vld [vmem:[%s871_s1 + $0x30] sm:$0xff]   ;;  %v663_v29 = vld [vmem:[%s871_s1 + $0x38] sm:$0xff]   ;;  %v21_v35 = vld [vmem:[%s872_s0] sm:$0xff] }
   0xb   :  { %564 = vmatpush3.bf16.msra.mxu0 %v643_v9  ;;  %v660_v26 = vld [vmem:[%s871_s1 + $0xf0] sm:$0xff]   ;;  %v664_v30 = vld [vmem:[%s871_s1 + $0xf8] sm:$0xff]   ;;  %v26_v37 = vld [vmem:[%s872_s0 + $0x28] sm:$0xff] }
   0xc   :  { %565 = vmatprep.subr.bf16.mxu0 %v646_v12  ;;  %v661_v27 = vld [vmem:[%s871_s1 + $0xb0] sm:$0xff]   ;;  %v665_v34 = vld [vmem:[%s871_s1 + $0xb8] sm:$0xff]   ;;  %v29_v39 = vld [vmem:[%s872_s0 + $0x40] sm:$0xff]  ;;  %v31_v40 = vpack.c.bf16 %v26_v37, %v21_v35 }
   0xd   :  { %586 = vmatpush3.bf16.msra.mxu1 %v645_v11  ;;  %v27_v32 = vld [vmem:[%s872_s0 + $0x30] sm:$0xff]  ;;  %v24_v38 = vld [vmem:[%s872_s0 + $0x18] sm:$0xff]  ;;  %v666_v42 = vld [vmem:[%s871_s1 + $0x100] sm:$0xff]  }
   0xe   :  { %587 = vmatprep.subr.bf16.mxu1 %v648_v14  ;;  %v32_v33 = vpack.c.bf16 %v27_v32, %v22_v31  ;;  %v34_v41 = vpack.c.bf16 %v29_v39, %v24_v38  ;;  %v23_v43 = vld [vmem:[%s872_s0 + $0x10] sm:$0xff]  ;;  %v28_v44 = vld [vmem:[%s872_s0 + $0x38] sm:$0xff]  ;;  %v667_v46 = vld [vmem:[%s871_s1 + $0x108] sm:$0xff]  }
   0xf   :  { %566 = vmatpush3.bf16.msra.mxu0 %v647_v13  ;;  %v33_v45 = vpack.c.bf16 %v28_v44, %v23_v43  ;;  %v668_v47 = vld [vmem:[%s871_s1 + $0x110] sm:$0xff]   ;;  %v669_v48 = vld [vmem:[%s871_s1 + $0x118] sm:$0xff]   ;;  %v670_v49 = vld [vmem:[%s871_s1 + $0x120] sm:$0xff]  }
  0x10   :  { %567 = vmatprep.subr.bf16.mxu0 %v650_v16  ;;  %395 = vmatprep.mubr.bf16.mxu0 %v32_v33  ;;  %v671_v50 = vld [vmem:[%s871_s1 + $0x128] sm:$0xff]   ;;  %v672_v51 = vld [vmem:[%s871_s1 + $0x130] sm:$0xff]   ;;  %v673_v52 = vld [vmem:[%s871_s1 + $0x138] sm:$0xff]  }
  0x11   :  { %588 = vmatpush3.bf16.msra.mxu1 %v649_v15  ;;  %436 = vmatprep.mubr.bf16.mxu1 %v34_v41  ;;  %v25_v53 = vld [vmem:[%s872_s0 + $0x20] sm:$0xff]  ;;  %v30_v54 = vld [vmem:[%s872_s0 + $0x48] sm:$0xff] }
  0x12   :  { %589 = vmatprep.subr.bf16.mxu1 %v652_v18  ;;  %v35_v55 = vpack.c.bf16 %v30_v54, %v25_v53  ;;  %v516_v57 = vld [vmem:[%s873_s2] ss:$0 sm:$0xff] }
  0x13   :  { %568 = vmatpush3.bf16.msra.mxu0 %v651_v17  ;;  %v557_v14 = vld [vmem:[%s874_s3] ss:$0 sm:$0xff] }
  0x14   :  { %569 = vmatprep.subr.bf16.mxu0 %v654_v20  ;;  %v558_v18 = vld [vmem:[%s875_s4] ss:$0 sm:$0xff] }
  0x15   :  { %590 = vmatpush3.bf16.msra.mxu1 %v653_v19 }
  0x16   :  { %591 = vmatprep.subr.bf16.mxu1 %v656_v22 }
  0x17   :  { %570 = vmatpush3.bf16.msra.mxu0 %v655_v21 }
  0x18   :  { %571 = vmatprep.subr.bf16.mxu0 %v658_v24 }
  0x19   :  { %592 = vmatpush3.bf16.msra.mxu1 %v657_v23 }
  0x1a   :  { %593 = vmatprep.subr.bf16.mxu1 %v660_v26 }
  0x1b   :  { %572 = vmatpush3.bf16.msra.mxu0 %v659_v25 }
  0x1c   :  { %573 = vmatprep.subr.bf16.mxu0 %v662_v28 }
  0x1d   :  { %594 = vmatpush3.bf16.msra.mxu1 %v661_v27 }
  0x1e   :  { %595 = vmatprep.subr.bf16.mxu1 %v664_v30 }
  0x1f   :  { %574 = vmatpush3.bf16.msra.mxu0 %v663_v29 }
  0x20   :  { %612 = vmatprep.subr.bf16.mxu0 %v674_v36 }
  0x21   :  { %596 = vmatpush3.bf16.msra.mxu1 %v665_v34 }
  0x22   :  { %396 = vmatmul.mubr.bf16.vlgmr.msra.gmra.mrb[0].mxu0 %v31_v40 }
  0x23   :  { %613 = vmatpush3.bf16.msra.mxu0 %v666_v42  ;;  %628 = vmatprep.mubr.msk.bf16.mxu0 %vm675_vm0, %v674_v36 }
  0x24   :  { %437 = vmatmul.mubr.bf16.vlgmr.msra.gmra.mrb[0].mxu1 %v33_v45  ;;  %614 = vmatprep.subr.bf16.mxu0 %v674_v36 }
  0x27   :  { %615 = vmatpush3.bf16.msra.mxu0 %v667_v46 }
  0x28   :  { %616 = vmatprep.subr.bf16.mxu0 %v674_v36 }
  0x2b   :  { %617 = vmatpush3.bf16.msra.mxu0 %v668_v47 }
  0x2c   :  { %618 = vmatprep.subr.bf16.mxu0 %v674_v36 }
  0x2f   :  { %619 = vmatpush3.bf16.msra.mxu0 %v669_v48 }
  0x30   :  { %620 = vmatprep.subr.bf16.mxu0 %v674_v36 }
  0x33   :  { %621 = vmatpush3.bf16.msra.mxu0 %v670_v49 }
  0x34   :  { %622 = vmatprep.subr.bf16.mxu0 %v674_v36 }
  0x37   :  { %623 = vmatpush3.bf16.msra.mxu0 %v671_v50 }
  0x38   :  { %624 = vmatprep.subr.bf16.mxu0 %v674_v36 }
  0x3b   :  { %625 = vmatpush3.bf16.msra.mxu0 %v672_v51 }
  0x3c   :  { %626 = vmatprep.subr.bf16.mxu0 %v674_v36 }
  0x3f   :  { %627 = vmatpush3.bf16.msra.mxu0 %v673_v52 }
  0x42   :  { %629 = vmatmul.mubr.bf16.vlgmr.msra.gmra.mrb[4].mxu0 %v35_v55 }
  0xf5   :  { %v575_v56 = vpop.f32.mrb[0].mxu0 }
  0xf6   :  { %v576_v58 = vpop.f32.mrb[1].mxu0 }
  0xf7   :  { %v577_v59 = vadd.f32 %v576_v58, %v575_v56  ;;  %v578_v60 = vpop.f32.mrb[2].mxu0  ;;  %v597_v61 = vpop.f32.mrb[0].mxu1 }
  0xf8   :  { %v579_v62 = vpop.f32.mrb[3].mxu0  ;;  %v598_v63 = vpop.f32.mrb[1].mxu1 }
  0xf9   :  { %v398_v0 = vadd.f32 %v577_v59, %v516_v57  ;;  %v580_v1 = vadd.f32 %v579_v62, %v578_v60  ;;  %v599_v2 = vadd.f32 %v598_v63, %v597_v61  ;;  %v600_v3 = vpop.f32.mrb[2].mxu1 }
  0xfa   :  { %v601_v4 = vpop.f32.mrb[3].mxu1 }
  0xfb   :  { %v401_v5 = vadd.f32 %v580_v1, %v516_v57  ;;  %v602_v6 = vadd.f32 %v601_v4, %v600_v3  ;;  %v439_v7 = vadd.f32 %v599_v2, %v398_v0 }
  0xfd   :  { %v442_v8 = vadd.f32 %v602_v6, %v401_v5 }
 0x115   :  { %v479_v9 = vpop.f32.mrb[4].mxu0 }
 0x116   :  { %v480_v10 = vadd.f32 %v479_v9, %v439_v7  ;;  %v630_v11 = vpop.f32.mrb[5].mxu0 }
 0x117   :  { %v482_v12 = vpop.f32.mrb[6].mxu0 }
 0x118   :  { %vm486_vm1 = vcmp.ge.f32.partialorder %v480_v10, 0.0  ;;  %v488_v13 = vmul.f32 0.2, %v480_v10  ;;  %v483_v15 = vadd.f32 %v482_v12, %v442_v8  ;;  %v631_v16 = vpop.f32.mrb[7].mxu0 }
 0x11a   :  { %v490_v17 = vsel %vm486_vm1, %v480_v10, %v488_v13  ;;  %vm487_vm2 = vcmp.ge.f32.partialorder %v483_v15, 0.0  ;;  %v489_v19 = vmul.f32 0.2, %v483_v15 }
 0x11b   :  { %v499_v20 = vmul.f32 %v557_v14, %v490_v17 }
 0x11c   :  { %v491_v21 = vsel %vm487_vm2, %v483_v15, %v489_v19 }
 0x11d   :  { %v508_v22 = vadd.f32 %v558_v18, %v499_v20  ;;  %v500_v23 = vmul.f32 %v557_v14, %v491_v21 }
 0x11f   :  { %510 = vst [vmem:[%s876_s5] sm:$0xff] %v508_v22  ;;  %v509_v24 = vadd.f32 %v558_v18, %v500_v23 }
 0x121   :  { %511 = vst [vmem:[%s876_s5 + $0x8] sm:$0xff] %v509_v24 }

// kernel: vqvae_forward.12
= control target key start
LH: loop header
LB: loop body
LE: loop exit
PB: predicated region body
PF: predicated region fallthrough
CT: control target
= control target key end

     0   :  { %s2479_s18 = smov 0   ;;  %s2891_s0 = inlined_call_operand.vmem [shape: f32[2,16,128], index: 0, kind: input, shape index: {}]   ;;  %s2892_s1 = inlined_call_operand.vmem [shape: bf16[128,128], index: 1, kind: input, shape index: {}]   ;;  %s2893_s2 = inlined_call_operand.vmem [shape: f32[1,128], index: 2, kind: input, shape index: {}]   ;;  %s2894_s3 = inlined_call_operand.vmem [shape: bf16[128,768], index: 3, kind: input, shape index: {}]   ;;  %s2895_s4 = inlined_call_operand.vmem [shape: f32[1,768], index: 4, kind: input, shape index: {}]   ;;  %s2896_s5 = inlined_call_operand.vmem [shape: bf16[256,128], index: 5, kind: input, shape index: {}]   ;;  %s2897_s6 = inlined_call_operand.vmem [shape: f32[1,128], index: 6, kind: input, shape index: {}]   ;;  %s2898_s7 = inlined_call_operand.vmem [shape: f32[1,128], index: 7, kind: input, shape index: {}]   ;;  %s2899_s8 = inlined_call_operand.vmem [shape: f32[1,128], index: 8, kind: input, shape index: {}]   ;;  %s2900_s9 = inlined_call_operand.vmem [shape: bf16[128,128], index: 9, kind: input, shape index: {}]   ;;  %s2901_s10 = inlined_call_operand.vmem [shape: f32[1,128], index: 10, kind: input, shape index: {}]   ;;  %s2902_s11 = inlined_call_operand.vmem [shape: bf16[128,128], index: 11, kind: input, shape index: {}]   ;;  %s2903_s12 = inlined_call_operand.vmem [shape: f32[1,128], index: 12, kind: input, shape index: {}]   ;;  %s2904_s13 = inlined_call_operand.vmem [shape: f32[1,128], index: 13, kind: input, shape index: {}]   ;;  %s2905_s14 = inlined_call_operand.vmem [shape: f32[1,128], index: 14, kind: input, shape index: {}]   ;;  %s2906_s15 = inlined_call_operand.vmem [shape: f32[2,16,128], index: 15, kind: output, shape index: {}]  }
   0x1 LB: > { %s1943_s19 = sadd.s32 4294967295, %s2393_s18   ;;  %p1947_p0 = scmp.ge.s32.totalorder %s2393_s18, 1  ;;  %s2393_s18 = sphi %s2479_s18, %s25_s18  }
   0x2   : > { %p437_p1 = scmp.lt.s32.totalorder %s2393_s18, 3 }
   0x4   : > { %p438_p2 = pnand %p1947_p0, %p437_p1 }
   0x5   : > { %v2243_v0 = vld [vmem:[%s2892_s1] sm:$0xff] (!%p438_p2)   ;;  %v2395_v1 = vmov (!%p438_p2), 0.0   ;;  %v2244_v2 = vld [vmem:[%s2892_s1 + $0x8] sm:$0xff] (!%p438_p2)   ;;  %vm2396_vm0 = vmmov (!%p438_p2), 0   ;;  %v2245_v3 = vld [vmem:[%s2892_s1 + $0x10] sm:$0xff] (!%p438_p2)   ;;  %p485_p3 = scmp.lt.s32.totalorder (!%p438_p2), %s1943_s19, 1 }
   0x6   : > { %441 = sbr.rel (%p438_p2) target bundleno = 2287 (0x8ef), region = 80  ;;  %2107 = vmatprep.subr.bf16.mxu0 (!%p438_p2), %v2395_v1  ;;  %2123 = vmatprep.mubr.msk.bf16.mxu0 (!%p438_p2), %vm2396_vm0, %v2395_v1  ;;  %v2251_v4 = vld [vmem:[%s2894_s3 + $0x4] ss:$24 sps:$4 sm:$0xff] (!%p438_p2)   ;;  %v2253_v5 = vld [vmem:[%s2894_s3] ss:$24 sps:$4 sm:$0xff] (!%p438_p2)   ;;  %v2248_v13 = vld [vmem:[%s2892_s1 + $0x28] sm:$0xff] (!%p438_p2)  }
   0x7   : > { %2108 = vmatpush3.bf16.msra.mxu0 (!%p438_p2), %v2243_v0  ;;  %v2246_v6 = vld [vmem:[%s2892_s1 + $0x18] sm:$0xff] (!%p438_p2)   ;;  %1003 = vmatprep.subr.bf16.mxu1 (!%p438_p2), %v2251_v4  ;;  %v2257_v7 = vld [vmem:[%s2894_s3 + $0x34] ss:$24 sps:$4 sm:$0xff] (!%p438_p2)   ;;  %v2259_v8 = vld [vmem:[%s2894_s3 + $0x30] ss:$24 sps:$4 sm:$0xff] (!%p438_p2)   ;;  %v2397_v45 = vmov (!%p438_p2), 0  }
   0x8   : > { %2109 = vmatprep.subr.bf16.mxu0 (!%p438_p2), %v2395_v1  ;;  %1004 = vmatpush1.bf16.msra.mxu1 (!%p438_p2), %v2253_v5  ;;  %v2247_v9 = vld [vmem:[%s2892_s1 + $0x20] sm:$0xff] (!%p438_p2)   ;;  %v2269_v12 = vld [vmem:[%s2894_s3 + $0x94] ss:$24 sps:$4 sm:$0xff] (!%p438_p2)   ;;  %v2271_v14 = vld [vmem:[%s2894_s3 + $0x90] ss:$24 sps:$4 sm:$0xff] (!%p438_p2)   ;;  %vm1177_vm1 = vcmask (!%p438_p2), 130048  }
   0x9   : > { %1005 = vmatprep.subr.bf16.mxu1 (!%p438_p2), %v2257_v7  ;;  %v2263_v10 = vld [vmem:[%s2894_s3 + $0x64] ss:$24 sps:$4 sm:$0xff] (!%p438_p2)   ;;  %v2265_v11 = vld [vmem:[%s2894_s3 + $0x60] ss:$24 sps:$4 sm:$0xff] (!%p438_p2)   ;;  %v2249_v16 = vld [vmem:[%s2892_s1 + $0x30] sm:$0xff] (!%p438_p2)   ;;  %1035 = vmatprep.mubr.bf16.mxu1 (!%p438_p2), %v2397_v45 }
   0xa   : > { %v2275_v15 = vld [vmem:[%s2894_s3 + $0xc4] ss:$24 sps:$4 sm:$0xff] (!%p438_p2)   ;;  %v2277_v19 = vld [vmem:[%s2894_s3 + $0xc0] ss:$24 sps:$4 sm:$0xff] (!%p438_p2)   ;;  %v2281_v21 = vld [vmem:[%s2894_s3 + $0xf4] ss:$24 sps:$4 sm:$0xff] (!%p438_p2)  }
   0xb   : > { %2110 = vmatpush3.bf16.msra.mxu0 (!%p438_p2), %v2244_v2  ;;  %v2250_v17 = vld [vmem:[%s2892_s1 + $0x38] sm:$0xff] (!%p438_p2)   ;;  %v2256_v22 = vld [vmem:[%s2894_s3 + $0xc] ss:$24 sps:$4 sm:$0xff] (!%p438_p2)   ;;  %v2283_v23 = vld [vmem:[%s2894_s3 + $0xf0] ss:$24 sps:$4 sm:$0xff] (!%p438_p2)  }
   0xc   : > { %2111 = vmatprep.subr.bf16.mxu0 (!%p438_p2), %v2395_v1  ;;  %1006 = vmatpush1.bf16.msra.mxu1 (!%p438_p2), %v2259_v8  ;;  %v2287_v24 = vld [vmem:[%s2894_s3 + $0x124] ss:$24 sps:$4 sm:$0xff] (!%p438_p2)   ;;  %v2254_v25 = vld [vmem:[%s2894_s3 + $0x8] ss:$24 sps:$4 sm:$0xff] (!%p438_p2)   ;;  %v2260_v29 = vld [vmem:[%s2894_s3 + $0x38] ss:$24 sps:$4 sm:$0xff] (!%p438_p2)  }
   0xd   : > { %s2908_s19 = smov (!%p485_p3, %s1943_s19), 1  ;;  %1007 = vmatprep.subr.bf16.mxu1 %v2263_v10  ;;  %v2262_v27 = vld [vmem:[%s2894_s3 + $0x3c] ss:$24 sps:$4 sm:$0xff]   ;;  %v2289_v28 = vld [vmem:[%s2894_s3 + $0x120] ss:$24 sps:$4 sm:$0xff]  }
   0xe   : > { %s2052_s20 = sshll.u32 %s2908_s19, 4  ;;  %v2268_v30 = vld [vmem:[%s2894_s3 + $0x6c] ss:$24 sps:$4 sm:$0xff]   ;;  %v2266_v31 = vld [vmem:[%s2894_s3 + $0x68] ss:$24 sps:$4 sm:$0xff]  }
   0xf   : > { %2112 = vmatpush3.bf16.msra.mxu0 %v2245_v3  ;;  %s489_s25 = scalar_lea.vmem %s2891_s0, %s2052_s20  ;;  %v2274_v32 = vld [vmem:[%s2894_s3 + $0x9c] ss:$24 sps:$4 sm:$0xff]   ;;  %v2272_v33 = vld [vmem:[%s2894_s3 + $0x98] ss:$24 sps:$4 sm:$0xff]   ;;  %v2280_v34 = vld [vmem:[%s2894_s3 + $0xcc] ss:$24 sps:$4 sm:$0xff]   ;;  %s494_s27 = scalar_lea.vmem %s2906_s15, %s2052_s20 }
  0x10   : > { %2113 = vmatprep.subr.bf16.mxu0 %v2395_v1  ;;  %1008 = vmatpush1.bf16.msra.mxu1 %v2265_v11  ;;  %v633_v18 = vld [vmem:[%s489_s25] sm:$0xff]  ;;  %v634_v20 = vld [vmem:[%s489_s25 + $0x8] sm:$0xff]  ;;  %v2286_v36 = vld [vmem:[%s2894_s3 + $0xfc] ss:$24 sps:$4 sm:$0xff]  }
  0x11   : > { %1009 = vmatprep.subr.bf16.mxu1 %v2269_v12  ;;  %v635_v26 = vpack.c.bf16 %v634_v20, %v633_v18  ;;  %v2278_v35 = vld [vmem:[%s2894_s3 + $0xc8] ss:$24 sps:$4 sm:$0xff]   ;;  %v2284_v37 = vld [vmem:[%s2894_s3 + $0xf8] ss:$24 sps:$4 sm:$0xff]   ;;  %v2292_v38 = vld [vmem:[%s2894_s3 + $0x12c] ss:$24 sps:$4 sm:$0xff]  }
  0x12   : > { %v2290_v39 = vld [vmem:[%s2894_s3 + $0x128] ss:$24 sps:$4 sm:$0xff]   ;;  %v2293_v40 = vld [vmem:[%s2894_s3 + $0x154] ss:$24 sps:$4 sm:$0xff]   ;;  %v2296_v43 = vld [vmem:[%s2894_s3 + $0x158] ss:$24 sps:$4 sm:$0xff]  }
  0x13   : > { %2114 = vmatpush3.bf16.msra.mxu0 %v2246_v6  ;;  %v2295_v41 = vld [vmem:[%s2894_s3 + $0x150] ss:$24 sps:$4 sm:$0xff]   ;;  %v2298_v42 = vld [vmem:[%s2894_s3 + $0x15c] ss:$24 sps:$4 sm:$0xff]   ;;  %v1952_v46 = vld [vmem:[%s2893_s2] ss:$0 sm:$0xff]  ;;  %v733_v6 = vlaneseq }
  0x14   : > { %2115 = vmatprep.subr.bf16.mxu0 %v2395_v1  ;;  %1010 = vmatpush1.bf16.msra.mxu1 %v2271_v14  ;;  %v2301_v44 = vld [vmem:[%s2894_s3 + $0x14] ss:$24 sps:$4 sm:$0xff]   ;;  %v2299_v53 = vld [vmem:[%s2894_s3 + $0x10] ss:$24 sps:$4 sm:$0xff]   ;;  %v2304_v55 = vld [vmem:[%s2894_s3 + $0x44] ss:$24 sps:$4 sm:$0xff]  }
  0x15   : > { %1011 = vmatprep.subr.bf16.mxu1 %v2275_v15  ;;  %v2302_v56 = vld [vmem:[%s2894_s3 + $0x40] ss:$24 sps:$4 sm:$0xff]   ;;  %v2307_v57 = vld [vmem:[%s2894_s3 + $0x74] ss:$24 sps:$4 sm:$0xff]   ;;  %v2305_v58 = vld [vmem:[%s2894_s3 + $0x70] ss:$24 sps:$4 sm:$0xff]  }
  0x16   : > { %v2310_v59 = vld [vmem:[%s2894_s3 + $0xa4] ss:$24 sps:$4 sm:$0xff]   ;;  %v2308_v60 = vld [vmem:[%s2894_s3 + $0xa0] ss:$24 sps:$4 sm:$0xff]   ;;  %v2313_v61 = vld [vmem:[%s2894_s3 + $0xd4] ss:$24 sps:$4 sm:$0xff]  }
  0x17   : > { %2116 = vmatpush3.bf16.msra.mxu0 %v2247_v9  ;;  %v2311_v62 = vld [vmem:[%s2894_s3 + $0xd0] ss:$24 sps:$4 sm:$0xff]   ;;  %v2316_v63 = vld [vmem:[%s2894_s3 + $0x104] ss:$24 sps:$4 sm:$0xff]   ;;  %v2314_v0 = vld [vmem:[%s2894_s3 + $0x100] ss:$24 sps:$4 sm:$0xff]  }
  0x18   : > { %2117 = vmatprep.subr.bf16.mxu0 %v2395_v1  ;;  %1012 = vmatpush1.bf16.msra.mxu1 %v2277_v19  ;;  %v2319_v2 = vld [vmem:[%s2894_s3 + $0x134] ss:$24 sps:$4 sm:$0xff]   ;;  %v2317_v3 = vld [vmem:[%s2894_s3 + $0x130] ss:$24 sps:$4 sm:$0xff]   ;;  %v2322_v4 = vld [vmem:[%s2894_s3 + $0x164] ss:$24 sps:$4 sm:$0xff]  }
  0x19   : > { %1013 = vmatprep.subr.bf16.mxu1 %v2281_v21  ;;  %v2320_v5 = vld [vmem:[%s2894_s3 + $0x160] ss:$24 sps:$4 sm:$0xff]   ;;  %v734_v7 = vshrl.u32 %v733_v6, 7 }
  0x1a   : > { %v561_v10 = vld [vmem:[%s2895_s4] sm:$0x3f] }
  0x1b   : > { %2118 = vmatpush3.bf16.msra.mxu0 %v2248_v13  ;;  %v735_v8 = vsub.s32 0, %v734_v7  ;;  %v743_v9 = vsub.s32 2, %v734_v7  ;;  %v739_v11 = vsub.s32 1, %v734_v7  ;;  %v747_v12 = vsub.s32 3, %v734_v7 }
  0x1c   : > { %2119 = vmatprep.subr.bf16.mxu0 %v2395_v1  ;;  %1014 = vmatpush1.bf16.msra.mxu1 %v2283_v23 }
  0x1d   : > { %1015 = vmatprep.subr.bf16.mxu1 %v2287_v24  ;;  %v736_v13 = vrot.slane %v561_v10, %v735_v8  ;;  %v744_v14 = vrot.slane %v561_v10, %v743_v9  ;;  %v748_v18 = vrot.slane %v561_v10, %v747_v12 }
  0x1f   : > { %2120 = vmatpush3.bf16.msra.mxu0 %v2249_v16 }
  0x20   : > { %2121 = vmatprep.subr.bf16.mxu0 %v2395_v1  ;;  %1016 = vmatpush1.bf16.msra.mxu1 %v2289_v28 }
  0x21   : > { %1017 = vmatprep.subr.bf16.mxu1 %v2293_v40 }
  0x23   : > { %2122 = vmatpush3.bf16.msra.mxu0 %v2250_v17  ;;  %v740_v17 = vrot.slane %v561_v10, %v739_v11 }
  0x24   : > { %1046 = vmatprep.subr.bf16.mxu0 %v2256_v22  ;;  %1018 = vmatpush1.bf16.msra.mxu1 %v2295_v41 }
  0x25   : > { %1089 = vmatprep.subr.bf16.mxu1 %v2301_v44 }
  0x26   : > { %2124 = vmatmul.mubr.bf16.vlgmr.msra.gmra.mrb[0].mxu0 %v635_v26 }
  0x27   : > { %1047 = vmatpush1.bf16.msra.mxu0 %v2254_v25  ;;  %1078 = vmatprep.mubr.bf16.mxu0 %v2397_v45 }
  0x28   : > { %1048 = vmatprep.subr.bf16.mxu0 %v2262_v27 }
  0x2b   : > { %1049 = vmatpush1.bf16.msra.mxu0 %v2260_v29 }
  0x2c   : > { %1050 = vmatprep.subr.bf16.mxu0 %v2268_v30 }
  0x2f   : > { %1051 = vmatpush1.bf16.msra.mxu0 %v2266_v31 }
  0x30   : > { %1052 = vmatprep.subr.bf16.mxu0 %v2274_v32 }
  0x33   : > { %1053 = vmatpush1.bf16.msra.mxu0 %v2272_v33 }
  0x34   : > { %1054 = vmatprep.subr.bf16.mxu0 %v2280_v34 }
  0x37   : > { %1055 = vmatpush1.bf16.msra.mxu0 %v2278_v35 }
  0x38   : > { %1056 = vmatprep.subr.bf16.mxu0 %v2286_v36 }
  0x3b   : > { %1057 = vmatpush1.bf16.msra.mxu0 %v2284_v37  ;;  %v751_v37 = vsub.s32 4, %v734_v7 }
  0x3c   : > { %1058 = vmatprep.subr.bf16.mxu0 %v2292_v38  ;;  %v755_v38 = vsub.s32 5, %v734_v7 }
  0x3e   : > { %v756_v41 = vrot.slane %v561_v10, %v755_v38 }
  0x3f   : > { %1059 = vmatpush1.bf16.msra.mxu0 %v2290_v39  ;;  %v752_v39 = vrot.slane %v561_v10, %v751_v37 }
  0x40   : > { %1060 = vmatprep.subr.bf16.mxu0 %v2298_v42 }
  0x43   : > { %1061 = vmatpush1.bf16.msra.mxu0 %v2296_v43 }
  0x44   : > { %2127 = vmatprep.subr.bf16.mxu0 %v2395_v1 }
  0xf9   : > { %v724_v47 = vpop.f32.mrb[0].mxu0 }
  0xfa   : > { %v2125_v48 = vpop.f32.mrb[1].mxu0  ;;  %v2632_v50 = vadd.f32 %v1952_v46, %v724_v47 }
  0xfb   : > { %v727_v49 = vpop.f32.mrb[2].mxu0 }
  0xfc   : > { %v2634_v51 = vadd.f32 %v1952_v46, %v727_v49  ;;  %v2126_v52 = vpop.f32.mrb[3].mxu0 }
  0xfe   : > { %v731_v54 = vpack.c.bf16 %v2634_v51, %v2632_v50 }
 0x100   : > { %1036 = vmatmul.mubr.bf16.vlgmr.msra.gmra.mrb[0].mxu1 %v731_v54  ;;  %1079 = vmatmul.mubr.bf16.vlgmr.msra.gmra.mrb[4].mxu0 %v731_v54 }
 0x101   : > { %1090 = vmatpush1.bf16.msra.mxu1 %v2299_v53  ;;  %1121 = vmatprep.mubr.bf16.mxu1 %v2397_v45 }
 0x102   : > { %1091 = vmatprep.subr.bf16.mxu1 %v2304_v55  ;;  %2129 = vmatprep.mubr.msk.bf16.mxu0 %vm2396_vm0, %v2395_v1 }
 0x105   : > { %1092 = vmatpush1.bf16.msra.mxu1 %v2302_v56 }
 0x106   : > { %1093 = vmatprep.subr.bf16.mxu1 %v2307_v57 }
 0x109   : > { %1094 = vmatpush1.bf16.msra.mxu1 %v2305_v58 }
 0x10a   : > { %1095 = vmatprep.subr.bf16.mxu1 %v2310_v59 }
 0x10d   : > { %1096 = vmatpush1.bf16.msra.mxu1 %v2308_v60 }
 0x10e   : > { %1097 = vmatprep.subr.bf16.mxu1 %v2313_v61 }
 0x111   : > { %1098 = vmatpush1.bf16.msra.mxu1 %v2311_v62 }
 0x112   : > { %1099 = vmatprep.subr.bf16.mxu1 %v2316_v63 }
 0x115   : > { %1100 = vmatpush1.bf16.msra.mxu1 %v2314_v0 }
 0x116   : > { %1101 = vmatprep.subr.bf16.mxu1 %v2319_v2 }
 0x119   : > { %1102 = vmatpush1.bf16.msra.mxu1 %v2317_v3 }
 0x11a   : > { %1103 = vmatprep.subr.bf16.mxu1 %v2322_v4 }
 0x11d   : > { %1104 = vmatpush1.bf16.msra.mxu1 %v2320_v5 }
 0x11e   : > { %2133 = vmatprep.subr.bf16.mxu1 %v2395_v1 }
 0x120   : > { %1122 = vmatmul.mubr.bf16.vlgmr.msra.gmra.mrb[4].mxu1 %v731_v54 }
 0x121   : > { %2135 = vmatprep.mubr.msk.bf16.mxu1 %vm2396_vm0, %v2395_v1 }
 0x1d3   : > { %v1037_v15 = vpop.f32.mrb[0].mxu1  ;;  %v1080_v16 = vpop.f32.mrb[4].mxu0 }
 0x1d4   : > { %v1039_v19 = vpop.f32.mrb[1].mxu1  ;;  %v1082_v20 = vpop.f32.mrb[5].mxu0  ;;  %v1038_v23 = vadd.f32 %v1037_v15, %v736_v13  ;;  %v1081_v24 = vadd.f32 %v1080_v16, %v744_v14 }
 0x1d5   : > { %v1041_v21 = vpop.f32.mrb[2].mxu1  ;;  %v1084_v22 = vpop.f32.mrb[6].mxu0  ;;  %v1040_v29 = vadd.f32 %v1039_v19, %v740_v17  ;;  %v1083_v30 = vadd.f32 %v1082_v20, %v748_v18 }
 0x1d6   : > { %v1042_v25 = vadd.f32 %v1041_v21, %v736_v13  ;;  %v1085_v26 = vadd.f32 %v1084_v22, %v744_v14  ;;  %v1043_v27 = vpop.f32.mrb[3].mxu1  ;;  %v1086_v28 = vpop.f32.mrb[7].mxu0 }
 0x1d7   : > { %v1044_v31 = vadd.f32 %v1043_v27, %v740_v17  ;;  %v1087_v32 = vadd.f32 %v1086_v28, %v748_v18  ;;  %v2327_v27 = vld [vmem:[%s2896_s5 + $0x48] sm:$0xff]   ;;  %v2329_v28 = vld [vmem:[%s2896_s5 + $0x50] sm:$0xff]  }
 0x1d8   : > { %v1132_v33 = vpack.c.bf16 %v1042_v25, %v1038_v23  ;;  %v1133_v34 = vpack.c.bf16 %v1085_v26, %v1081_v24  ;;  %v2325_v26 = vld [vmem:[%s2896_s5 + $0x40] sm:$0xff]  }
 0x1d9   : > { %v1247_v35 = vpack.c.bf16 %v1044_v31, %v1040_v29  ;;  %v1248_v36 = vpack.c.bf16 %v1087_v32, %v1083_v30  ;;  %v2331_v29 = vld [vmem:[%s2896_s5 + $0x58] sm:$0xff]   ;;  %v2333_v30 = vld [vmem:[%s2896_s5 + $0x60] sm:$0xff]  }
 0x1da   : > { %2128 = vmatpush3.bf16.xpose.msra.mxu0 %v1133_v34 }
 0x1db   : > { %2139 = vmatprep.subr.bf16.mxu0 %v2395_v1 }
 0x1e1   : > { %2130 = vmatmul.mubr.bf16.vlgmr.msra.gmra.mrb[8].mxu0 %v1132_v33 }
 0x1e2   : > { %2140 = vmatpush3.bf16.xpose.msra.mxu0 %v1248_v36  ;;  %2141 = vmatprep.mubr.msk.bf16.mxu0 %vm2396_vm0, %v2395_v1 }
 0x1e3   : > { %2151 = vmatprep.subr.bf16.mxu0 %v2395_v1 }
 0x1e9   : > { %2142 = vmatmul.mubr.bf16.vlgmr.msra.gmra.mrb[12].mxu0 %v1247_v35 }
 0x1ea   : > { %2167 = vmatprep.mubr.msk.bf16.mxu0 %vm2396_vm0, %v2395_v1  ;;  %2152 = vmatpush3.bf16.msra.mxu0 %v2325_v26  ;;  %v2345_v26 = vld [vmem:[%s2900_s9 + $0x30] sm:$0xff]  }
 0x1eb   : > { %2153 = vmatprep.subr.bf16.mxu0 %v2395_v1 }
 0x1ee   : > { %2154 = vmatpush3.bf16.msra.mxu0 %v2327_v27  ;;  %v2346_v27 = vld [vmem:[%s2900_s9 + $0x38] sm:$0xff]  }
 0x1ef   : > { %2155 = vmatprep.subr.bf16.mxu0 %v2395_v1 }
 0x1f2   : > { %2156 = vmatpush3.bf16.msra.mxu0 %v2329_v28 }
 0x1f3   : > { %v1123_v40 = vpop.f32.mrb[4].mxu1  ;;  %2157 = vmatprep.subr.bf16.mxu0 %v2395_v1 }
 0x1f4   : > { %v1125_v42 = vpop.f32.mrb[5].mxu1  ;;  %v1124_v44 = vadd.f32 %v1123_v40, %v752_v39 }
 0x1f5   : > { %v1127_v43 = vpop.f32.mrb[6].mxu1  ;;  %v2697_v47 = vadd.f32 %v1125_v42, %v756_v41 }
 0x1f6   : > { %v1128_v45 = vadd.f32 %v1127_v43, %v752_v39  ;;  %v1129_v46 = vpop.f32.mrb[7].mxu1  ;;  %2158 = vmatpush3.bf16.msra.mxu0 %v2331_v29 }
 0x1f7   : > { %v2699_v48 = vadd.f32 %v1129_v46, %v756_v41  ;;  %2159 = vmatprep.subr.bf16.mxu0 %v2395_v1  ;;  %v2324_v46 = vld [vmem:[%s2896_s5 + $0x8] sm:$0xff]  }
 0x1f8   : > { %v1201_v49 = vpack.c.bf16 %v1128_v45, %v1124_v44  ;;  %v2323_v44 = vld [vmem:[%s2896_s5] sm:$0xff]  }
 0x1f9   : > { %v1315_v52 = vpack.c.bf16 %v2699_v48, %v2697_v47  ;;  %v2326_v47 = vld [vmem:[%s2896_s5 + $0x10] sm:$0xff]   ;;  %v2328_v48 = vld [vmem:[%s2896_s5 + $0x18] sm:$0xff]  }
 0x1fa   : > { %2134 = vmatpush3.bf16.msra.mxu1 %v1201_v49  ;;  %2160 = vmatpush3.bf16.msra.mxu0 %v2333_v30  ;;  %v2330_v49 = vld [vmem:[%s2896_s5 + $0x20] sm:$0xff]  }
 0x1fb   : > { %2145 = vmatprep.subr.bf16.mxu1 %v2395_v1  ;;  %2161 = vmatprep.subr.bf16.mxu0 %v2395_v1 }
 0x2b4   : > { %v1168_v53 = vpop.f32.mrb[8].mxu0 }
 0x2b5   : > { %v1175_v54 = vmul.f32 0.25, %v1168_v53  ;;  %v2131_v55 = vpop.f32.mrb[9].mxu0  ;;  %v2334_v53 = vld [vmem:[%s2896_s5 + $0x30] sm:$0xff]  }
 0x2b6   : > { %v1171_v56 = vpop.f32.mrb[10].mxu0  ;;  %v2336_v55 = vld [vmem:[%s2896_s5 + $0x38] sm:$0xff]  }
 0x2b7   : > { %v1176_v57 = vmul.f32 0.25, %v1171_v56  ;;  %v2132_v58 = vpop.f32.mrb[11].mxu0  ;;  %v1178_v59 = vsel %vm1177_vm1, %v1175_v54, -inf  ;;  %v2337_v56 = vld [vmem:[%s2896_s5 + $0x70] sm:$0xff]  }
 0x2b8   : > { %1179 = vmax.xlane.f32.xlu0 %v1178_v59 }
 0x2b9   : > { %v1181_v60 = vsel %vm1177_vm1, %v1176_v57, -inf }
 0x2bc   : > { %1182 = vmax.xlane.f32.xlu0 %v1181_v60  ;;  %v1283_v61 = vpop.f32.mrb[12].mxu0 }
 0x2bd   : > { %v1290_v62 = vmul.f32 0.25, %v1283_v61  ;;  %v2143_v63 = vpop.f32.mrb[13].mxu0 }
 0x2be   : > { %v1286_v0 = vpop.f32.mrb[14].mxu0 }
 0x2bf   : > { %v1291_v2 = vmul.f32 0.25, %v1286_v0  ;;  %v2144_v3 = vpop.f32.mrb[15].mxu0  ;;  %v1292_v4 = vsel %vm1177_vm1, %v1290_v62, -inf }
 0x2c0   : > { %1293 = vmax.xlane.f32.xlu1 %v1292_v4 }
 0x2c1   : > { %v1295_v5 = vsel %vm1177_vm1, %v1291_v2, -inf }
 0x2c4   : > { %1296 = vmax.xlane.f32.xlu1 %v1295_v5 }
 0x345   : > { %v1180_v6 = vpop.xlane.xlu0 %1179 }
 0x346   : > { %v1184_v7 = vsub.f32 %v1175_v54, %v1180_v6  ;;  %v2335_v54 = vld [vmem:[%s2896_s5 + $0x68] sm:$0xff]  }
 0x347   : > { %2162 = vmatpush3.bf16.msra.mxu0 %v2335_v54  ;;  %v2029_v54 = vld [vmem:[%s2899_s8] ss:$0 sm:$0xff] }
 0x348   : > { %v1186_v8 = vmul.f32 1.442695, %v1184_v7  ;;  %2163 = vmatprep.subr.bf16.mxu0 %v2395_v1 }
 0x349   : > { %v1183_v9 = vpop.xlane.xlu0 %1182 }
 0x34a   : > { %2355 = vpow2.f32 %v1186_v8  ;;  %v1185_v10 = vsub.f32 %v1176_v57, %v1183_v9  ;;  %v2338_v57 = vld [vmem:[%s2896_s5 + $0x78] sm:$0xff]   ;;  %v2027_v9 = vld [vmem:[%s2897_s6] ss:$0 sm:$0xff] }
 0x34b   : > { %2164 = vmatpush3.bf16.msra.mxu0 %v2337_v56 }
 0x34c   : > { %v1188_v11 = vmul.f32 1.442695, %v1185_v10  ;;  %2165 = vmatprep.subr.bf16.mxu0 %v2395_v1 }
 0x34d   : > { %v1294_v12 = vpop.xlane.xlu1 %1293 }
 0x34e   : > { %2357 = vpow2.f32 %v1188_v11  ;;  %v1298_v13 = vsub.f32 %v1290_v62, %v1294_v12 }
 0x34f   : > { %2166 = vmatpush3.bf16.msra.mxu0 %v2338_v57 }
 0x350   : > { %v1300_v14 = vmul.f32 1.442695, %v1298_v13  ;;  %2191 = vmatprep.subr.bf16.mxu0 %v2395_v1 }
 0x351   : > { %v1297_v15 = vpop.xlane.xlu1 %1296 }
 0x352   : > { %2359 = vpow2.f32 %v1300_v14  ;;  %v1299_v16 = vsub.f32 %v1291_v2, %v1297_v15 }
 0x354   : > { %v2356_v17 = vpop.eup %2355  ;;  %v1302_v18 = vmul.f32 1.442695, %v1299_v16 }
 0x355   : > { %v1190_v19 = vsel %vm1177_vm1, %v2356_v17, 0.0 }
 0x356   : > { %2361 = vpow2.f32 %v1302_v18  ;;  %1191 = vadd.xlane.f32.xlu0 %v1190_v19 }
 0x358   : > { %v2358_v20 = vpop.eup %2357 }
 0x359   : > { %v1193_v21 = vsel %vm1177_vm1, %v2358_v20, 0.0 }
 0x35a   : > { %1194 = vadd.xlane.f32.xlu1 %v1193_v21 }
 0x35c   : > { %v2360_v22 = vpop.eup %2359 }
 0x35d   : > { %v1304_v23 = vsel %vm1177_vm1, %v2360_v22, 0.0 }
 0x35e   : > { %1305 = vadd.xlane.f32.xlu0 %v1304_v23  ;;  %v2340_v23 = vld [vmem:[%s2900_s9 + $0x8] sm:$0xff]  }
 0x360   : > { %v2362_v24 = vpop.eup %2361 }
 0x361   : > { %v1307_v25 = vsel %vm1177_vm1, %v2362_v24, 0.0 }
 0x362   : > { %1308 = vadd.xlane.f32.xlu1 %v1307_v25  ;;  %v2344_v25 = vld [vmem:[%s2900_s9 + $0x28] sm:$0xff]  }
 0x3e3   : > { %v1192_v31 = vpop.xlane.xlu0 %1191 }
 0x3e4   : > { %2363 = vrcp.f32 %v1192_v31 }
 0x3e7   : > { %v1195_v32 = vpop.xlane.xlu1 %1194 }
 0x3e8   : > { %2365 = vrcp.f32 %v1195_v32 }
 0x3eb   : > { %v1306_v33 = vpop.xlane.xlu0 %1305 }
 0x3ec   : > { %2367 = vrcp.f32 %v1306_v33 }
 0x3ee   : > { %v2364_v35 = vpop.eup %2363 }
 0x3ef   : > { %v1309_v34 = vpop.xlane.xlu1 %1308  ;;  %v1198_v37 = vmul.f32 %v2364_v35, %v2356_v17 }
 0x3f0   : > { %2369 = vrcp.f32 %v1309_v34 }
 0x3f2   : > { %v2366_v36 = vpop.eup %2365 }
 0x3f3   : > { %v1199_v38 = vmul.f32 %v2366_v36, %v2358_v20 }
 0x3f5   : > { %v1200_v39 = vpack.c.bf16 %v1199_v38, %v1198_v37 }
 0x3f6   : > { %v2368_v40 = vpop.eup %2367 }
 0x3f7   : > { %2136 = vmatmul.mubr.msk.bf16.vlgmr.msra.gmra.mrb[8].mxu1 %vm1177_vm1, %v1200_v39  ;;  %v1312_v42 = vmul.f32 %v2368_v40, %v2360_v22  ;;  %v2339_v22 = vld [vmem:[%s2900_s9] sm:$0xff]  }
 0x3f8   : > { %2146 = vmatpush3.bf16.msra.mxu1 %v1315_v52  ;;  %2147 = vmatprep.mubr.msk.bf16.mxu1 %vm2396_vm0, %v2395_v1  ;;  %v2332_v52 = vld [vmem:[%s2896_s5 + $0x28] sm:$0xff]  }
 0x3f9   : > { %2171 = vmatprep.subr.bf16.mxu1 %v2395_v1 }
 0x3fa   : > { %v2370_v41 = vpop.eup %2369 }
 0x3fb   : > { %v1313_v43 = vmul.f32 %v2370_v41, %v2362_v24  ;;  %v2343_v24 = vld [vmem:[%s2900_s9 + $0x20] sm:$0xff]  }
 0x3fd   : > { %v1314_v45 = vpack.c.bf16 %v1313_v43, %v1312_v42 }
 0x3ff   : > { %2148 = vmatmul.mubr.msk.bf16.vlgmr.msra.gmra.mrb[12].mxu1 %vm1177_vm1, %v1314_v45 }
 0x400   : > { %2172 = vmatpush3.bf16.msra.mxu1 %v2323_v44  ;;  %2187 = vmatprep.mubr.msk.bf16.mxu1 %vm2396_vm0, %v2395_v1 }
 0x401   : > { %2173 = vmatprep.subr.bf16.mxu1 %v2395_v1 }
 0x404   : > { %2174 = vmatpush3.bf16.msra.mxu1 %v2324_v46  ;;  %v2028_v46 = vld [vmem:[%s2898_s7] ss:$0 sm:$0xff] }
 0x405   : > { %2175 = vmatprep.subr.bf16.mxu1 %v2395_v1 }
 0x408   : > { %2176 = vmatpush3.bf16.msra.mxu1 %v2326_v47 }
 0x409   : > { %2177 = vmatprep.subr.bf16.mxu1 %v2395_v1 }
 0x40c   : > { %2178 = vmatpush3.bf16.msra.mxu1 %v2328_v48 }
 0x40d   : > { %2179 = vmatprep.subr.bf16.mxu1 %v2395_v1 }
 0x410   : > { %2180 = vmatpush3.bf16.msra.mxu1 %v2330_v49 }
 0x411   : > { %2181 = vmatprep.subr.bf16.mxu1 %v2395_v1 }
 0x414   : > { %2182 = vmatpush3.bf16.msra.mxu1 %v2332_v52 }
 0x415   : > { %2183 = vmatprep.subr.bf16.mxu1 %v2395_v1 }
 0x418   : > { %2184 = vmatpush3.bf16.msra.mxu1 %v2334_v53 }
 0x419   : > { %2185 = vmatprep.subr.bf16.mxu1 %v2395_v1 }
 0x41c   : > { %2186 = vmatpush3.bf16.msra.mxu1 %v2336_v55 }
 0x41d   : > { %2211 = vmatprep.subr.bf16.mxu1 %v2395_v1 }
 0x4ca   : > { %v1239_v58 = vpop.f32.mrb[8].mxu1 }
 0x4cb   : > { %v2137_v59 = vpop.f32.mrb[9].mxu1 }
 0x4cc   : > { %v1242_v60 = vpop.f32.mrb[10].mxu1  ;;  %v2347_v59 = vld [vmem:[%s2902_s11] sm:$0xff]  }
 0x4cd   : > { %v1246_v61 = vpack.c.bf16 %v1242_v60, %v1239_v58  ;;  %v2138_v62 = vpop.f32.mrb[11].mxu1  ;;  %v2348_v60 = vld [vmem:[%s2902_s11 + $0x8] sm:$0xff]  }
 0x4ce   : > { %v2350_v62 = vld [vmem:[%s2902_s11 + $0x18] sm:$0xff]  }
 0x4cf   : > { %2188 = vmatmul.mubr.bf16.vlgmr.msra.gmra.mrb[16].mxu1 %v1246_v61  ;;  %v2349_v61 = vld [vmem:[%s2902_s11 + $0x10] sm:$0xff]  }
 0x4d0   : > { %2227 = vmatprep.mubr.msk.bf16.mxu1 %vm2396_vm0, %v2395_v1  ;;  %2212 = vmatpush3.bf16.msra.mxu1 %v2347_v59 }
 0x4d1   : > { %2213 = vmatprep.subr.bf16.mxu1 %v2395_v1 }
 0x4d2   : > { %v1353_v63 = vpop.f32.mrb[12].mxu1 }
 0x4d3   : > { %v2149_v0 = vpop.f32.mrb[13].mxu1 }
 0x4d4   : > { %v1356_v2 = vpop.f32.mrb[14].mxu1  ;;  %2214 = vmatpush3.bf16.msra.mxu1 %v2348_v60  ;;  %v2352_v0 = vld [vmem:[%s2902_s11 + $0x28] sm:$0xff]  }
 0x4d5   : > { %v1360_v3 = vpack.c.bf16 %v1356_v2, %v1353_v63  ;;  %v2150_v4 = vpop.f32.mrb[15].mxu1  ;;  %2215 = vmatprep.subr.bf16.mxu1 %v2395_v1  ;;  %v2351_v63 = vld [vmem:[%s2902_s11 + $0x20] sm:$0xff]   ;;  %v2353_v2 = vld [vmem:[%s2902_s11 + $0x30] sm:$0xff]  }
 0x4d6   : > { %v2030_v4 = vld [vmem:[%s2901_s10] ss:$0 sm:$0xff] }
 0x4d7   : > { %2168 = vmatmul.mubr.bf16.vlgmr.msra.gmra.mrb[16].mxu0 %v1360_v3  ;;  %v2354_v3 = vld [vmem:[%s2902_s11 + $0x38] sm:$0xff]  }
 0x4d8   : > { %2207 = vmatprep.mubr.msk.bf16.mxu0 %vm2396_vm0, %v2395_v1  ;;  %2192 = vmatpush3.bf16.msra.mxu0 %v2339_v22 }
 0x4d9   : > { %2193 = vmatprep.subr.bf16.mxu0 %v2395_v1  ;;  %2216 = vmatpush3.bf16.msra.mxu1 %v2349_v61 }
 0x4da   : > { %2217 = vmatprep.subr.bf16.mxu1 %v2395_v1 }
 0x4dc   : > { %2194 = vmatpush3.bf16.msra.mxu0 %v2340_v23 }
 0x4dd   : > { %2195 = vmatprep.subr.bf16.mxu0 %v2395_v1  ;;  %2218 = vmatpush3.bf16.msra.mxu1 %v2350_v62 }
 0x4de   : > { %2219 = vmatprep.subr.bf16.mxu1 %v2395_v1 }
 0x4e1   : > { %2220 = vmatpush3.bf16.msra.mxu1 %v2351_v63 }
 0x4e2   : > { %2221 = vmatprep.subr.bf16.mxu1 %v2395_v1 }
 0x4e5   : > { %2222 = vmatpush3.bf16.msra.mxu1 %v2352_v0  ;;  %v2039_v0 = vld [vmem:[%s2903_s12] ss:$0 sm:$0xff] }
 0x4e6   : > { %2223 = vmatprep.subr.bf16.mxu1 %v2395_v1 }
 0x4e9   : > { %2224 = vmatpush3.bf16.msra.mxu1 %v2353_v2 }
 0x4ea   : > { %2225 = vmatprep.subr.bf16.mxu1 %v2395_v1 }
 0x4ed   : > { %2226 = vmatpush3.bf16.msra.mxu1 %v2354_v3 }
 0x5a2   : > { %v1532_v5 = vpop.f32.mrb[16].mxu1 }
 0x5a3   : > { %v2189_v6 = vpop.f32.mrb[17].mxu1 }
 0x5a4   : > { %v1535_v7 = vpop.f32.mrb[18].mxu1 }
 0x5a5   : > { %v2190_v8 = vpop.f32.mrb[19].mxu1 }
 0x5aa   : > { %v1443_v10 = vpop.f32.mrb[16].mxu0 }
 0x5ab   : > { %v1533_v11 = vadd.f32 %v1532_v5, %v1443_v10  ;;  %v2169_v12 = vpop.f32.mrb[17].mxu0 }
 0x5ac   : > { %v1446_v13 = vpop.f32.mrb[18].mxu0 }
 0x5ad   : > { %v1545_v14 = vadd.f32 %v2027_v9, %v1533_v11  ;;  %v1536_v15 = vadd.f32 %v1535_v7, %v1446_v13  ;;  %v2170_v16 = vpop.f32.mrb[19].mxu0 }
 0x5af   : > { %v1546_v17 = vadd.f32 %v2027_v9, %v1536_v15  ;;  %v1547_v18 = vadd.f32 %v1545_v14, %v2632_v50  ;;  %v2341_v50 = vld [vmem:[%s2900_s9 + $0x10] sm:$0xff]  }
 0x5b0   : > { %2196 = vmatpush3.bf16.msra.mxu0 %v2341_v50 }
 0x5b1   : > { %1549 = vadd.xlane.f32.xlu0 %v1547_v18  ;;  %v1548_v19 = vadd.f32 %v1546_v17, %v2634_v51  ;;  %v1556_v20 = vmul.f32 %v1547_v18, %v1547_v18  ;;  %2197 = vmatprep.subr.bf16.mxu0 %v2395_v1  ;;  %v2342_v51 = vld [vmem:[%s2900_s9 + $0x18] sm:$0xff]  }
 0x5b3   : > { %1551 = vadd.xlane.f32.xlu1 %v1548_v19  ;;  %v1557_v21 = vmul.f32 %v1548_v19, %v1548_v19 }
 0x5b4   : > { %2198 = vmatpush3.bf16.msra.mxu0 %v2342_v51 }
 0x5b5   : > { %1558 = vadd.xlane.f32.xlu0 %v1556_v20  ;;  %2199 = vmatprep.subr.bf16.mxu0 %v2395_v1 }
 0x5b7   : > { %1560 = vadd.xlane.f32.xlu1 %v1557_v21 }
 0x5b8   : > { %2200 = vmatpush3.bf16.msra.mxu0 %v2343_v24 }
 0x5b9   : > { %2201 = vmatprep.subr.bf16.mxu0 %v2395_v1 }
 0x5bc   : > { %2202 = vmatpush3.bf16.msra.mxu0 %v2344_v25 }
 0x5bd   : > { %2203 = vmatprep.subr.bf16.mxu0 %v2395_v1 }
 0x5c0   : > { %2204 = vmatpush3.bf16.msra.mxu0 %v2345_v26 }
 0x5c1   : > { %2205 = vmatprep.subr.bf16.mxu0 %v2395_v1 }
 0x5c4   : > { %2206 = vmatpush3.bf16.msra.mxu0 %v2346_v27 }
 0x63e   : > { %v1550_v28 = vpop.xlane.xlu0 %1549 }
 0x63f   : > { %v1554_v29 = vmul.f32 0.03125, %v1550_v28 }
 0x640   : > { %v1552_v30 = vpop.xlane.xlu1 %1551 }
 0x641   : > { %v1555_v31 = vmul.f32 0.03125, %v1552_v30  ;;  %v1564_v33 = vmul.f32 %v1554_v29, %v1554_v29  ;;  %v1570_v44 = vsub.f32 %v1547_v18, %v1554_v29 }
 0x642   : > { %v1559_v32 = vpop.xlane.xlu0 %1558 }
 0x643   : > { %v1562_v34 = vmul.f32 0.03125, %v1559_v32  ;;  %v1565_v36 = vmul.f32 %v1555_v31, %v1555_v31  ;;  %v1571_v47 = vsub.f32 %v1548_v19, %v1555_v31 }
 0x644   : > { %v1561_v35 = vpop.xlane.xlu1 %1560 }
 0x645   : > { %v1566_v37 = vsub.f32 %v1562_v34, %v1564_v33  ;;  %v1563_v38 = vmul.f32 0.03125, %v1561_v35 }
 0x647   : > { %v1568_v39 = vmax.f32 %v1566_v37, 0.0  ;;  %v1567_v40 = vsub.f32 %v1563_v38, %v1565_v36 }
 0x649   : > { %v1572_v41 = vadd.f32 1e-05, %v1568_v39  ;;  %v1569_v42 = vmax.f32 %v1567_v40, 0.0 }
 0x64b   : > { %2371 = vrsqrt.f32 %v1572_v41  ;;  %v1573_v43 = vadd.f32 1e-05, %v1569_v42 }
 0x64d   : > { %2373 = vrsqrt.f32 %v1573_v43 }
 0x655   : > { %v2372_v45 = vpop.eup %2371 }
 0x656   : > { %v1576_v48 = vmul.f32 %v2372_v45, %v1570_v44 }
 0x657   : > { %v2374_v49 = vpop.eup %2373 }
 0x658   : > { %v1577_v52 = vmul.f32 %v2374_v49, %v1571_v47  ;;  %v1584_v53 = vmul.f32 %v2028_v46, %v1576_v48 }
 0x65a   : > { %v1585_v55 = vmul.f32 %v2028_v46, %v1577_v52  ;;  %v2832_v56 = vadd.f32 %v2029_v54, %v1584_v53  ;;  %v2398_v46 = vmov -1.0  }
 0x65c   : > { %v2834_v57 = vadd.f32 %v2029_v54, %v1585_v55 }
 0x65e   : > { %v1594_v58 = vpack.c.bf16 %v2834_v57, %v2832_v56 }
 0x660   : > { %2208 = vmatmul.mubr.bf16.vlgmr.msra.gmra.mrb[20].mxu0 %v1594_v58 }
 0x733   : > { %v1683_v5 = vpop.f32.mrb[20].mxu0 }
 0x734   : > { %v1684_v6 = vadd.f32 %v2030_v4, %v1683_v5  ;;  %v2209_v7 = vpop.f32.mrb[21].mxu0 }
 0x735   : > { %v1686_v8 = vpop.f32.mrb[22].mxu0 }
 0x736   : > { %v1692_v9 = vmul.f32 0.70710677, %v1684_v6  ;;  %v1687_v10 = vadd.f32 %v2030_v4, %v1686_v8  ;;  %v2210_v11 = vpop.f32.mrb[23].mxu0  ;;  %v1690_v58 = vmul.f32 0.5, %v1684_v6 }
 0x738   : > { %v1698_v12 = vand.u32 2147483647, %v1692_v9  ;;  %v1693_v13 = vmul.f32 0.70710677, %v1687_v10  ;;  %vm1694_vm2 = vcmp.ge.f32.partialorder %v1692_v9, 0.0  ;;  %v1691_v59 = vmul.f32 0.5, %v1687_v10 }
 0x739   : > { %v1696_v47 = vsel %vm1694_vm2, 1.0, %v2398_v46 }
 0x73a   : > { %v1700_v14 = vmul.f32 0.3275911, %v1698_v12  ;;  %v1699_v1 = vand.u32 2147483647, %v1693_v13  ;;  %v1726_v18 = vsub.f32 0.0, %v1698_v12  ;;  %vm1695_vm3 = vcmp.ge.f32.partialorder %v1693_v13, 0.0 }
 0x73b   : > { %v1697_v53 = vsel %vm1695_vm3, 1.0, %v2398_v46 }
 0x73c   : > { %v1702_v15 = vadd.f32 1.0, %v1700_v14  ;;  %v1701_v16 = vmul.f32 0.3275911, %v1699_v1  ;;  %v1727_v19 = vsub.f32 0.0, %v1699_v1  ;;  %v1728_v21 = vmul.f32 %v1726_v18, %v1698_v12 }
 0x73e   : > { %2375 = vrcp.f32 %v1702_v15  ;;  %v1703_v17 = vadd.f32 1.0, %v1701_v16  ;;  %v1729_v51 = vmul.f32 %v1727_v19, %v1699_v1  ;;  %v1730_v24 = vmul.f32 1.442695, %v1728_v21 }
 0x740   : > { %2377 = vrcp.f32 %v1703_v17  ;;  %v1732_v29 = vmul.f32 1.442695, %v1729_v51 }
 0x741   : > { %2379 = vpow2.f32 %v1730_v24 }
 0x742   : > { %2381 = vpow2.f32 %v1732_v29  ;;  %v2049_v29 = vld [vmem:[%s2905_s14] ss:$0 sm:$0xff] }
 0x748   : > { %v2376_v20 = vpop.eup %2375 }
 0x749   : > { %v1708_v22 = vmul.f32 1.0614054, %v2376_v20 }
 0x74a   : > { %v2378_v23 = vpop.eup %2377 }
 0x74b   : > { %v1710_v50 = vadd.f32 -1.4531521, %v1708_v22  ;;  %v1709_v25 = vmul.f32 1.0614054, %v2378_v23  ;;  %v2380_v40 = vpop.eup %2379 }
 0x74c   : > { %v2382_v44 = vpop.eup %2381 }
 0x74d   : > { %v1712_v26 = vmul.f32 %v2376_v20, %v1710_v50  ;;  %v1711_v27 = vadd.f32 -1.4531521, %v1709_v25  ;;  %v2048_v25 = vld [vmem:[%s2904_s13] ss:$0 sm:$0xff] }
 0x74f   : > { %v1714_v28 = vadd.f32 1.4214138, %v1712_v26  ;;  %v1713_v30 = vmul.f32 %v2378_v23, %v1711_v27 }
 0x751   : > { %v1716_v31 = vmul.f32 %v2376_v20, %v1714_v28  ;;  %v1715_v32 = vadd.f32 1.4214138, %v1713_v30 }
 0x753   : > { %v1718_v33 = vadd.f32 -0.28449672, %v1716_v31  ;;  %v1717_v34 = vmul.f32 %v2378_v23, %v1715_v32 }
 0x755   : > { %v1720_v35 = vmul.f32 %v2376_v20, %v1718_v33  ;;  %v1719_v36 = vadd.f32 -0.28449672, %v1717_v34 }
 0x757   : > { %v1722_v37 = vadd.f32 0.2548296, %v1720_v35  ;;  %v1721_v38 = vmul.f32 %v2378_v23, %v1719_v36 }
 0x759   : > { %v1724_v39 = vmul.f32 %v2376_v20, %v1722_v37  ;;  %v1723_v41 = vadd.f32 0.2548296, %v1721_v38 }
 0x75b   : > { %v1734_v42 = vmul.f32 %v2380_v40, %v1724_v39  ;;  %v1725_v43 = vmul.f32 %v2378_v23, %v1723_v41 }
 0x75d   : > { %v1736_v45 = vsub.f32 1.0, %v1734_v42  ;;  %v1735_v48 = vmul.f32 %v2382_v44, %v1725_v43 }
 0x75f   : > { %v1738_v49 = vmul.f32 %v1736_v45, %v1696_v47  ;;  %v1737_v52 = vsub.f32 1.0, %v1735_v48 }
 0x761   : > { %v1740_v54 = vadd.f32 1.0, %v1738_v49  ;;  %v1739_v55 = vmul.f32 %v1737_v52, %v1697_v53 }
 0x763   : > { %v1741_v60 = vadd.f32 1.0, %v1739_v55  ;;  %v1742_v61 = vmul.f32 %v1740_v54, %v1690_v58 }
 0x765   : > { %v1743_v62 = vmul.f32 %v1741_v60, %v1691_v59 }
 0x767   : > { %v1744_v63 = vpack.c.bf16 %v1743_v62, %v1742_v61 }
 0x769   : > { %2228 = vmatmul.mubr.bf16.vlgmr.msra.gmra.mrb[20].mxu1 %v1744_v63 }
 0x83c   : > { %v1833_v2 = vpop.f32.mrb[20].mxu1 }
 0x83d   : > { %v1834_v3 = vadd.f32 %v2039_v0, %v1833_v2  ;;  %v2229_v4 = vpop.f32.mrb[21].mxu1 }
 0x83e   : > { %v1836_v5 = vpop.f32.mrb[22].mxu1 }
 0x83f   : > { %v1840_v7 = vadd.f32 %v1834_v3, %v2832_v56  ;;  %v1837_v8 = vadd.f32 %v2039_v0, %v1836_v5  ;;  %v2230_v9 = vpop.f32.mrb[23].mxu1 }
 0x841   : > { %v1841_v6 = vadd.f32 %v1837_v8, %v2834_v57  ;;  %1842 = vadd.xlane.f32.xlu0 %v1840_v7  ;;  %v1848_v10 = vmul.f32 %v1840_v7, %v1840_v7 }
 0x843   : > { %1844 = vadd.xlane.f32.xlu1 %v1841_v6  ;;  %v1849_v11 = vmul.f32 %v1841_v6, %v1841_v6 }
 0x845   : > { %1850 = vadd.xlane.f32.xlu0 %v1848_v10 }
 0x847   : > { %1852 = vadd.xlane.f32.xlu1 %v1849_v11 }
 0x8ce   : > { %v1843_v12 = vpop.xlane.xlu0 %1842 }
 0x8cf   : > { %v1846_v13 = vmul.f32 0.03125, %v1843_v12 }
 0x8d0   : > { %v1845_v14 = vpop.xlane.xlu1 %1844 }
 0x8d1   : > { %v1847_v1 = vmul.f32 0.03125, %v1845_v14  ;;  %v1856_v16 = vmul.f32 %v1846_v13, %v1846_v13  ;;  %v1862_v51 = vsub.f32 %v1840_v7, %v1846_v13 }
 0x8d2   : > { %v1851_v15 = vpop.xlane.xlu0 %1850 }
 0x8d3   : > { %v1854_v17 = vmul.f32 0.03125, %v1851_v15  ;;  %v1857_v19 = vmul.f32 %v1847_v1, %v1847_v1  ;;  %v1863_v26 = vsub.f32 %v1841_v6, %v1847_v1 }
 0x8d4   : > { %v1853_v18 = vpop.xlane.xlu1 %1852 }
 0x8d5   : > { %v1858_v56 = vsub.f32 %v1854_v17, %v1856_v16  ;;  %v1855_v20 = vmul.f32 0.03125, %v1853_v18 }
 0x8d7   : > { %v1860_v21 = vmax.f32 %v1858_v56, 0.0  ;;  %v1859_v57 = vsub.f32 %v1855_v20, %v1857_v19 }
 0x8d9   : > { %v1864_v22 = vadd.f32 1e-05, %v1860_v21  ;;  %v1861_v23 = vmax.f32 %v1859_v57, 0.0 }
 0x8db   : > { %2383 = vrsqrt.f32 %v1864_v22  ;;  %v1865_v50 = vadd.f32 1e-05, %v1861_v23 }
 0x8dd   : > { %2385 = vrsqrt.f32 %v1865_v50 }
 0x8e5   : > { %v2384_v24 = vpop.eup %2383 }
 0x8e6   : > { %v1868_v27 = vmul.f32 %v2384_v24, %v1862_v51 }
 0x8e7   : > { %v2386_v28 = vpop.eup %2385 }
 0x8e8   : > { %v1876_v30 = vmul.f32 %v2048_v25, %v1868_v27  ;;  %v1869_v31 = vmul.f32 %v2386_v28, %v1863_v26 }
 0x8ea   : > { %v1884_v32 = vadd.f32 %v2049_v29, %v1876_v30  ;;  %v1877_v33 = vmul.f32 %v2048_v25, %v1869_v31 }
 0x8ec   : > { %1886 = vst [vmem:[%s494_s27] sm:$0xff] %v1884_v32  ;;  %v1885_v34 = vadd.f32 %v2049_v29, %v1877_v33 }
 0x8ee   : > { %1887 = vst [vmem:[%s494_s27 + $0x8] sm:$0xff] %v1885_v34 }
 0x8ef PF: > { %s25_s18 = sadd.s32 1, %s2393_s18  }
 0x8f0   : > { %p22_p4 = scmp.ge.s32.totalorder %s25_s18, 4  }
 0x8f2   :  { %24 = sbr.rel (!%p22_p4) target bundleno = 1 (0x1), region = 110 }

// kernel: vqvae_forward.9
= control target key start
LH: loop header
LB: loop body
LE: loop exit
PB: predicated region body
PF: predicated region fallthrough
CT: control target
= control target key end

     0   :  { %s4101_s0 = inlined_call_operand.vmem [shape: f32[2,4,128], index: 0, kind: input, shape index: {}]   ;;  %s4102_s1 = inlined_call_operand.vmem [shape: bf16[128,128], index: 1, kind: input, shape index: {}]   ;;  %s4103_s2 = inlined_call_operand.vmem [shape: f32[1,128], index: 2, kind: input, shape index: {}]   ;;  %s4104_s3 = inlined_call_operand.vmem [shape: bf16[128,768], index: 3, kind: input, shape index: {}]   ;;  %s4105_s4 = inlined_call_operand.vmem [shape: f32[1,768], index: 4, kind: input, shape index: {}]   ;;  %s4106_s5 = inlined_call_operand.vmem [shape: bf16[256,128], index: 5, kind: input, shape index: {}]   ;;  %s4107_s6 = inlined_call_operand.vmem [shape: f32[1,128], index: 6, kind: input, shape index: {}]   ;;  %s4108_s7 = inlined_call_operand.vmem [shape: f32[1,128], index: 7, kind: input, shape index: {}]   ;;  %s4109_s8 = inlined_call_operand.vmem [shape: f32[1,128], index: 8, kind: input, shape index: {}]   ;;  %s4110_s9 = inlined_call_operand.vmem [shape: bf16[128,128], index: 9, kind: input, shape index: {}]   ;;  %s4111_s10 = inlined_call_operand.vmem [shape: f32[1,128], index: 10, kind: input, shape index: {}]   ;;  %s4112_s11 = inlined_call_operand.vmem [shape: bf16[128,128], index: 11, kind: input, shape index: {}]   ;;  %s4113_s12 = inlined_call_operand.vmem [shape: f32[1,128], index: 12, kind: input, shape index: {}]   ;;  %s4114_s13 = inlined_call_operand.vmem [shape: f32[1,128], index: 13, kind: input, shape index: {}]   ;;  %s4115_s14 = inlined_call_operand.vmem [shape: f32[1,128], index: 14, kind: input, shape index: {}]   ;;  %s4116_s15 = inlined_call_operand.vmem [shape: f32[16,128], index: 15, kind: input, shape index: {}]   ;;  %s4117_s16 = inlined_call_operand.vmem [shape: f32[1,16], index: 16, kind: input, shape index: {}]   ;;  %s4118_s17 = inlined_call_operand.vmem [shape: f32[2,4,128], index: 17, kind: output, shape index: {0}]   ;;  %s4119_s18 = inlined_call_operand.hbm [shape: f32[1], index: 18, kind: output, shape index: {1}]  }
   0x1   :  { %4161 = sst [smem:[#allocation39_spill]] %s4101_s0 }
   0x2   :  { %4162 = sst [smem:[#allocation40_spill]] %s4102_s1 }
   0x3   :  { %4163 = sst [smem:[#allocation41_spill]] %s4103_s2 }
   0x4   :  { %s4164_s29 = sld [smem:[#allocation40_spill]]  ;;  %v4130_v1 = vmov 0.0   ;;  %vm3055_vm0 = vmmov 0   ;;  %v2881_v4 = vld [vmem:[%s4104_s3 + $0x4] ss:$24 sps:$4 sm:$0xff]   ;;  %s4165_s23 = sld [smem:[#allocation39_spill]] }
   0x5   :  { %2575 = vmatprep.subr.bf16.mxu0 %v4130_v1  ;;  %2591 = vmatprep.mubr.msk.bf16.mxu0 %vm3055_vm0, %v4130_v1  ;;  %v2883_v5 = vld [vmem:[%s4104_s3] ss:$24 sps:$4 sm:$0xff]   ;;  %v2887_v7 = vld [vmem:[%s4104_s3 + $0x34] ss:$24 sps:$4 sm:$0xff]   ;;  %v2889_v8 = vld [vmem:[%s4104_s3 + $0x30] ss:$24 sps:$4 sm:$0xff]  }
   0x6   :  { %568 = vmatprep.subr.bf16.mxu1 %v2881_v4  ;;  %v2893_v10 = vld [vmem:[%s4104_s3 + $0x64] ss:$24 sps:$4 sm:$0xff]   ;;  %v2895_v11 = vld [vmem:[%s4104_s3 + $0x60] ss:$24 sps:$4 sm:$0xff]   ;;  %v2899_v12 = vld [vmem:[%s4104_s3 + $0x94] ss:$24 sps:$4 sm:$0xff]  }
   0x7   :  { %569 = vmatpush1.bf16.msra.mxu1 %v2883_v5  ;;  %v2901_v14 = vld [vmem:[%s4104_s3 + $0x90] ss:$24 sps:$4 sm:$0xff]   ;;  %v2905_v15 = vld [vmem:[%s4104_s3 + $0xc4] ss:$24 sps:$4 sm:$0xff]   ;;  %v2907_v18 = vld [vmem:[%s4104_s3 + $0xc0] ss:$24 sps:$4 sm:$0xff]  }
   0x8   :  { %570 = vmatprep.subr.bf16.mxu1 %v2887_v7  ;;  %v2911_v20 = vld [vmem:[%s4104_s3 + $0xf4] ss:$24 sps:$4 sm:$0xff]   ;;  %v2913_v22 = vld [vmem:[%s4104_s3 + $0xf0] ss:$24 sps:$4 sm:$0xff]   ;;  %v2917_v23 = vld [vmem:[%s4104_s3 + $0x124] ss:$24 sps:$4 sm:$0xff]  }
   0x9   :  { %v2886_v21 = vld [vmem:[%s4104_s3 + $0xc] ss:$24 sps:$4 sm:$0xff]   ;;  %v2884_v24 = vld [vmem:[%s4104_s3 + $0x8] ss:$24 sps:$4 sm:$0xff]   ;;  %v2892_v26 = vld [vmem:[%s4104_s3 + $0x3c] ss:$24 sps:$4 sm:$0xff]  }
   0xa   :  { %v2873_v0 = vld [vmem:[%s4164_s29] sm:$0xff]   ;;  %v2874_v2 = vld [vmem:[%s4164_s29 + $0x8] sm:$0xff]   ;;  %v2875_v3 = vld [vmem:[%s4164_s29 + $0x10] sm:$0xff]  }
   0xb   :  { %2576 = vmatpush3.bf16.msra.mxu0 %v2873_v0  ;;  %v2876_v6 = vld [vmem:[%s4164_s29 + $0x18] sm:$0xff]   ;;  %v2877_v9 = vld [vmem:[%s4164_s29 + $0x20] sm:$0xff]   ;;  %571 = vmatpush1.bf16.msra.mxu1 %v2889_v8  ;;  %v2878_v13 = vld [vmem:[%s4164_s29 + $0x28] sm:$0xff]  }
   0xc   :  { %2577 = vmatprep.subr.bf16.mxu0 %v4130_v1  ;;  %572 = vmatprep.subr.bf16.mxu1 %v2893_v10  ;;  %v2879_v16 = vld [vmem:[%s4164_s29 + $0x30] sm:$0xff]   ;;  %v2880_v17 = vld [vmem:[%s4164_s29 + $0x38] sm:$0xff]   ;;  %v200_v19 = vld [vmem:[%s4165_s23] sm:$0xf] }
   0xd   :  { %v201_v25 = vpack.c.bf16 %v200_v19, %v200_v19  ;;  %v2919_v27 = vld [vmem:[%s4104_s3 + $0x120] ss:$24 sps:$4 sm:$0xff]   ;;  %v3251_v29 = vld [vmem:[%s4104_s3 + $0x6c] ss:$24 sps:$4 sm:$0xff]   ;;  %v3261_v31 = vld [vmem:[%s4104_s3 + $0x9c] ss:$24 sps:$4 sm:$0xff]  }
   0xe   :  { %v3246_v28 = vld [vmem:[%s4104_s3 + $0x38] ss:$24 sps:$4 sm:$0xff]   ;;  %v3256_v30 = vld [vmem:[%s4104_s3 + $0x68] ss:$24 sps:$4 sm:$0xff]   ;;  %v3273_v33 = vld [vmem:[%s4104_s3 + $0xcc] ss:$24 sps:$4 sm:$0xff]  }
   0xf   :  { %2578 = vmatpush3.bf16.msra.mxu0 %v2874_v2  ;;  %573 = vmatpush1.bf16.msra.mxu1 %v2895_v11  ;;  %v3268_v32 = vld [vmem:[%s4104_s3 + $0x98] ss:$24 sps:$4 sm:$0xff]   ;;  %v3280_v34 = vld [vmem:[%s4104_s3 + $0xc8] ss:$24 sps:$4 sm:$0xff]   ;;  %v3285_v35 = vld [vmem:[%s4104_s3 + $0xfc] ss:$24 sps:$4 sm:$0xff]  }
  0x10   :  { %2579 = vmatprep.subr.bf16.mxu0 %v4130_v1  ;;  %574 = vmatprep.subr.bf16.mxu1 %v2899_v12  ;;  %v3292_v36 = vld [vmem:[%s4104_s3 + $0xf8] ss:$24 sps:$4 sm:$0xff]   ;;  %v3297_v37 = vld [vmem:[%s4104_s3 + $0x12c] ss:$24 sps:$4 sm:$0xff]   ;;  %v3304_v38 = vld [vmem:[%s4104_s3 + $0x128] ss:$24 sps:$4 sm:$0xff]  }
  0x13   :  { %2580 = vmatpush3.bf16.msra.mxu0 %v2875_v3  ;;  %575 = vmatpush1.bf16.msra.mxu1 %v2901_v14 }
  0x14   :  { %2581 = vmatprep.subr.bf16.mxu0 %v4130_v1  ;;  %576 = vmatprep.subr.bf16.mxu1 %v2905_v15 }
  0x17   :  { %2582 = vmatpush3.bf16.msra.mxu0 %v2876_v6  ;;  %577 = vmatpush1.bf16.msra.mxu1 %v2907_v18 }
  0x18   :  { %2583 = vmatprep.subr.bf16.mxu0 %v4130_v1  ;;  %578 = vmatprep.subr.bf16.mxu1 %v2911_v20 }
  0x1b   :  { %2584 = vmatpush3.bf16.msra.mxu0 %v2877_v9  ;;  %579 = vmatpush1.bf16.msra.mxu1 %v2913_v22 }
  0x1c   :  { %2585 = vmatprep.subr.bf16.mxu0 %v4130_v1  ;;  %580 = vmatprep.subr.bf16.mxu1 %v2917_v23 }
  0x1f   :  { %2586 = vmatpush3.bf16.msra.mxu0 %v2878_v13  ;;  %581 = vmatpush1.bf16.msra.mxu1 %v2919_v27 }
  0x20   :  { %2587 = vmatprep.subr.bf16.mxu0 %v4130_v1 }
  0x23   :  { %2588 = vmatpush3.bf16.msra.mxu0 %v2879_v16 }
  0x24   :  { %2589 = vmatprep.subr.bf16.mxu0 %v4130_v1 }
  0x27   :  { %2590 = vmatpush3.bf16.msra.mxu0 %v2880_v17 }
  0x28   :  { %609 = vmatprep.subr.bf16.mxu0 %v2886_v21 }
  0x2a   :  { %2592 = vmatmul.mubr.bf16.vlgmr.msra.gmra.mrb[0].mxu0 %v201_v25 }
  0x2b   :  { %610 = vmatpush1.bf16.msra.mxu0 %v2884_v24 }
  0x2c   :  { %611 = vmatprep.subr.bf16.mxu0 %v2892_v26 }
  0x2f   :  { %612 = vmatpush1.bf16.msra.mxu0 %v3246_v28 }
  0x30   :  { %613 = vmatprep.subr.bf16.mxu0 %v3251_v29 }
  0x33   :  { %614 = vmatpush1.bf16.msra.mxu0 %v3256_v30 }
  0x34   :  { %615 = vmatprep.subr.bf16.mxu0 %v3261_v31 }
  0x37   :  { %616 = vmatpush1.bf16.msra.mxu0 %v3268_v32 }
  0x38   :  { %617 = vmatprep.subr.bf16.mxu0 %v3273_v33 }
  0x3b   :  { %618 = vmatpush1.bf16.msra.mxu0 %v3280_v34 }
  0x3c   :  { %619 = vmatprep.subr.bf16.mxu0 %v3285_v35 }
  0x3f   :  { %620 = vmatpush1.bf16.msra.mxu0 %v3292_v36 }
  0x40   :  { %621 = vmatprep.subr.bf16.mxu0 %v3297_v37 }
  0x41   :  { %24 = vsyncpa [#allocation3], 0  ;;  %v3312_v39 = vld [vmem:[%s4104_s3 + $0x154] ss:$24 sps:$4 sm:$0xff]   ;;  %v3317_v40 = vld [vmem:[%s4104_s3 + $0x150] ss:$24 sps:$4 sm:$0xff]   ;;  %v4122_v4 = vlaneseq }
  0x42   :  { %v3322_v41 = vld [vmem:[%s4104_s3 + $0x15c] ss:$24 sps:$4 sm:$0xff]   ;;  %582 = vmatprep.subr.bf16.mxu1 %v3312_v39  ;;  %v3328_v42 = vld [vmem:[%s4104_s3 + $0x158] ss:$24 sps:$4 sm:$0xff]   ;;  %v4123_v44 = vmov 0   ;;  %s4166_s20 = sld [smem:[#allocation41_spill]] }
  0x43   :  { %622 = vmatpush1.bf16.msra.mxu0 %v3304_v38  ;;  %583 = vmatpush1.bf16.msra.mxu1 %v3317_v40  ;;  %v3336_v43 = vld [vmem:[%s4104_s3 + $0x14] ss:$24 sps:$4 sm:$0xff]   ;;  %v3353_v50 = vld [vmem:[%s4104_s3 + $0x10] ss:$24 sps:$4 sm:$0xff]   ;;  %v3360_v53 = vld [vmem:[%s4104_s3 + $0x44] ss:$24 sps:$4 sm:$0xff]  }
  0x44   :  { %623 = vmatprep.subr.bf16.mxu0 %v3322_v41  ;;  %600 = vmatprep.mubr.bf16.mxu1 %v4123_v44  ;;  %v3366_v54 = vld [vmem:[%s4104_s3 + $0x40] ss:$24 sps:$4 sm:$0xff]   ;;  %v3373_v55 = vld [vmem:[%s4104_s3 + $0x74] ss:$24 sps:$4 sm:$0xff]   ;;  %v3381_v56 = vld [vmem:[%s4104_s3 + $0x70] ss:$24 sps:$4 sm:$0xff]  }
  0x45   :  { %641 = vmatprep.mubr.bf16.mxu0 %v4123_v44  ;;  %650 = vmatprep.subr.bf16.mxu1 %v3336_v43  ;;  %v3387_v57 = vld [vmem:[%s4104_s3 + $0xa4] ss:$24 sps:$4 sm:$0xff]   ;;  %v3393_v58 = vld [vmem:[%s4104_s3 + $0xa0] ss:$24 sps:$4 sm:$0xff]   ;;  %v3399_v59 = vld [vmem:[%s4104_s3 + $0xd4] ss:$24 sps:$4 sm:$0xff]  }
  0x46   :  { %v3405_v60 = vld [vmem:[%s4104_s3 + $0xd0] ss:$24 sps:$4 sm:$0xff]   ;;  %v3411_v61 = vld [vmem:[%s4104_s3 + $0x104] ss:$24 sps:$4 sm:$0xff]   ;;  %v3417_v62 = vld [vmem:[%s4104_s3 + $0x100] ss:$24 sps:$4 sm:$0xff]  }
  0x47   :  { %624 = vmatpush1.bf16.msra.mxu0 %v3328_v42  ;;  %v3423_v63 = vld [vmem:[%s4104_s3 + $0x134] ss:$24 sps:$4 sm:$0xff]   ;;  %v3429_v0 = vld [vmem:[%s4104_s3 + $0x130] ss:$24 sps:$4 sm:$0xff]   ;;  %v3435_v2 = vld [vmem:[%s4104_s3 + $0x164] ss:$24 sps:$4 sm:$0xff]  }
  0x48   :  { %2595 = vmatprep.subr.bf16.mxu0 %v4130_v1  ;;  %v3345_v45 = vld [vmem:[%s4166_s20] ss:$0 sm:$0xff]  ;;  %v3449_v5 = vshrl.u32 %v4122_v4, 7  ;;  %vm752_vm1 = vcmask 1041408   ;;  %vm734_vm2 = vcmask 27648   ;;  %vm748_vm3 = vcmask 31744  }
  0x49   :  { %v3441_v3 = vld [vmem:[%s4104_s3 + $0x160] ss:$24 sps:$4 sm:$0xff]   ;;  %vm1084_vm4 = vcmask 1043456   ;;  %vm1447_vm6 = vcmask 125952   ;;  %vm1462_vm8 = vcmask 130048   ;;  %s3042_s27 = scalar_lea.hbm %s4119_s18, 16 }
  0x4a   :  { %v308_v6 = vsub.s32 2, %v3449_v5  ;;  %v3455_v7 = vld [vmem:[%s4105_s4] sm:$0x3f]  ;;  %v300_v9 = vsub.s32 0, %v3449_v5  ;;  %v312_v10 = vsub.s32 3, %v3449_v5  ;;  %v304_v24 = vsub.s32 1, %v3449_v5  ;;  %p3043_p0 = scmp.ne.s32.totalorder %s4119_s18, %s3042_s27  ;;  %p3046_p1 = scmp.lt.u32.totalorder %s3042_s27, %s4119_s18 }
  0x4c   :  { %v3458_v8 = vrot.slane %v3455_v7, %v308_v6  ;;  %v3464_v16 = vrot.slane %v3455_v7, %v300_v9  ;;  %v3467_v20 = vrot.slane %v3455_v7, %v312_v10  ;;  %v3474_v27 = vrot.slane %v3455_v7, %v304_v24  ;;  %p3048_p2 = pnand %p3046_p1, %p3043_p0 }
  0xfd   :  { %v290_v46 = vpop.f32.mrb[0].mxu0 }
  0xfe   :  { %v3348_v47 = vadd.f32 %v3345_v45, %v290_v46  ;;  %v2593_v48 = vpop.f32.mrb[1].mxu0 }
  0xff   :  { %v293_v49 = vpop.f32.mrb[2].mxu0 }
 0x100   :  { %v296_v51 = vpack.c.bf16 %v3348_v47, %v3348_v47  ;;  %v2594_v52 = vpop.f32.mrb[3].mxu0 }
 0x102   :  { %601 = vmatmul.mubr.bf16.vlgmr.msra.gmra.mrb[0].mxu1 %v296_v51  ;;  %642 = vmatmul.mubr.bf16.vlgmr.msra.gmra.mrb[4].mxu0 %v296_v51 }
 0x103   :  { %651 = vmatpush1.bf16.msra.mxu1 %v3353_v50  ;;  %682 = vmatprep.mubr.bf16.mxu1 %v4123_v44 }
 0x104   :  { %652 = vmatprep.subr.bf16.mxu1 %v3360_v53  ;;  %2597 = vmatprep.mubr.msk.bf16.mxu0 %vm3055_vm0, %v4130_v1 }
 0x107   :  { %653 = vmatpush1.bf16.msra.mxu1 %v3366_v54 }
 0x108   :  { %654 = vmatprep.subr.bf16.mxu1 %v3373_v55 }
 0x10b   :  { %655 = vmatpush1.bf16.msra.mxu1 %v3381_v56 }
 0x10c   :  { %656 = vmatprep.subr.bf16.mxu1 %v3387_v57 }
 0x10f   :  { %657 = vmatpush1.bf16.msra.mxu1 %v3393_v58 }
 0x110   :  { %658 = vmatprep.subr.bf16.mxu1 %v3399_v59 }
 0x113   :  { %659 = vmatpush1.bf16.msra.mxu1 %v3405_v60 }
 0x114   :  { %660 = vmatprep.subr.bf16.mxu1 %v3411_v61 }
 0x117   :  { %661 = vmatpush1.bf16.msra.mxu1 %v3417_v62 }
 0x118   :  { %662 = vmatprep.subr.bf16.mxu1 %v3423_v63 }
 0x11b   :  { %663 = vmatpush1.bf16.msra.mxu1 %v3429_v0 }
 0x11c   :  { %664 = vmatprep.subr.bf16.mxu1 %v3435_v2 }
 0x11f   :  { %665 = vmatpush1.bf16.msra.mxu1 %v3441_v3 }
 0x120   :  { %2601 = vmatprep.subr.bf16.mxu1 %v4130_v1 }
 0x122   :  { %683 = vmatmul.mubr.bf16.vlgmr.msra.gmra.mrb[4].mxu1 %v296_v51  ;;  %v316_v51 = vsub.s32 4, %v3449_v5 }
 0x123   :  { %2603 = vmatprep.mubr.msk.bf16.mxu1 %vm3055_vm0, %v4130_v1 }
 0x124   :  { %v3484_v52 = vrot.slane %v3455_v7, %v316_v51 }
 0x126   :  { %4167 = vst [vmem:[#allocation5_spill] sm:$0xff] %v3484_v52 }
 0x1d5   :  { %v602_v11 = vpop.f32.mrb[0].mxu1  ;;  %v643_v12 = vpop.f32.mrb[4].mxu0 }
 0x1d6   :  { %v644_v13 = vadd.f32 %v643_v12, %v3458_v8  ;;  %v604_v14 = vpop.f32.mrb[1].mxu1  ;;  %v645_v15 = vpop.f32.mrb[5].mxu0  ;;  %v603_v23 = vadd.f32 %v602_v11, %v3464_v16 }
 0x1d7   :  { %v606_v17 = vpop.f32.mrb[2].mxu1  ;;  %v647_v18 = vpop.f32.mrb[6].mxu0  ;;  %v646_v25 = vadd.f32 %v645_v15, %v3467_v20  ;;  %v605_v48 = vadd.f32 %v604_v14, %v3474_v27 }
 0x1d8   :  { %v692_v19 = vpack.c.bf16 %v644_v13, %v644_v13  ;;  %v607_v21 = vpop.f32.mrb[3].mxu1  ;;  %v648_v22 = vpop.f32.mrb[7].mxu0  ;;  %v691_v26 = vpack.c.bf16 %v603_v23, %v603_v23 }
 0x1d9   :  { %v798_v46 = vpack.c.bf16 %v646_v25, %v646_v25  ;;  %v797_v49 = vpack.c.bf16 %v605_v48, %v605_v48 }
 0x1da   :  { %2596 = vmatpush3.bf16.xpose.msra.mxu0 %v692_v19 }
 0x1db   :  { %2607 = vmatprep.subr.bf16.mxu0 %v4130_v1 }
 0x1e1   :  { %2598 = vmatmul.mubr.bf16.vlgmr.msra.gmra.mrb[8].mxu0 %v691_v26 }
 0x1e2   :  { %2608 = vmatpush3.bf16.xpose.msra.mxu0 %v798_v46  ;;  %2609 = vmatprep.mubr.msk.bf16.mxu0 %vm3055_vm0, %v4130_v1 }
 0x1e3   :  { %2619 = vmatprep.subr.bf16.mxu0 %v4130_v1 }
 0x1e9   :  { %2610 = vmatmul.mubr.bf16.vlgmr.msra.gmra.mrb[12].mxu0 %v797_v49 }
 0x1ea   :  { %2635 = vmatprep.mubr.msk.bf16.mxu0 %vm3055_vm0, %v4130_v1 }
 0x1f5   :  { %v684_v6 = vpop.f32.mrb[4].mxu1 }
 0x1f6   :  { %v685_v9 = vadd.f32 %v684_v6, %v3484_v52  ;;  %v686_v10 = vpop.f32.mrb[5].mxu1 }
 0x1f7   :  { %v688_v11 = vpop.f32.mrb[6].mxu1 }
 0x1f8   :  { %v747_v12 = vpack.c.bf16 %v685_v9, %v685_v9  ;;  %v689_v13 = vpop.f32.mrb[7].mxu1 }
 0x1fa   :  { %v754_v14 = vsel %vm752_vm1, %v747_v12, 0 }
 0x1fb   :  { %2602 = vmatpush3.bf16.msra.mxu1 %v754_v14 }
 0x1fc   :  { %2613 = vmatprep.subr.bf16.mxu1 %v4130_v1 }
 0x2b4   :  { %v727_v15 = vpop.f32.mrb[8].mxu0 }
 0x2b5   :  { %v733_v17 = vmul.f32 0.25, %v727_v15  ;;  %v2599_v18 = vpop.f32.mrb[9].mxu0 }
 0x2b6   :  { %v730_v19 = vpop.f32.mrb[10].mxu0 }
 0x2b7   :  { %v2600_v21 = vpop.f32.mrb[11].mxu0  ;;  %v735_v22 = vsel %vm734_vm2, %v733_v17, -inf  ;;  %v3496_v19 = vld [vmem:[%s4106_s5 + $0x40] sm:$0xff]  }
 0x2b8   :  { %736 = vmax.xlane.f32.xlu0 %v735_v22  ;;  %2620 = vmatpush3.bf16.msra.mxu0 %v3496_v19  ;;  %v3510_v21 = vld [vmem:[%s4106_s5 + $0x50] sm:$0xff]   ;;  %v3517_v22 = vld [vmem:[%s4106_s5 + $0x58] sm:$0xff]  }
 0x2b9   :  { %2621 = vmatprep.subr.bf16.mxu0 %v4130_v1 }
 0x2bc   :  { %v833_v23 = vpop.f32.mrb[12].mxu0 }
 0x2bd   :  { %v839_v24 = vmul.f32 0.25, %v833_v23  ;;  %v2611_v25 = vpop.f32.mrb[13].mxu0  ;;  %v3524_v23 = vld [vmem:[%s4106_s5 + $0x60] sm:$0xff]  }
 0x2be   :  { %v836_v26 = vpop.f32.mrb[14].mxu0  ;;  %4168 = vst [vmem:[#allocation6_spill] sm:$0xff] %v3524_v23 }
 0x2bf   :  { %v2612_v46 = vpop.f32.mrb[15].mxu0  ;;  %v840_v48 = vsel %vm734_vm2, %v839_v24, -inf }
 0x2c0   :  { %841 = vmax.xlane.f32.xlu0 %v840_v48 }
 0x345   :  { %v737_v49 = vpop.xlane.xlu0 %736 }
 0x346   :  { %v738_v51 = vsub.f32 %v733_v17, %v737_v49  ;;  %v3503_v17 = vld [vmem:[%s4106_s5 + $0x48] sm:$0xff]  }
 0x347   :  { %2622 = vmatpush3.bf16.msra.mxu0 %v3503_v17 }
 0x348   :  { %v739_v6 = vmul.f32 1.442695, %v738_v51  ;;  %2623 = vmatprep.subr.bf16.mxu0 %v4130_v1 }
 0x34a   :  { %2985 = vpow2.f32 %v739_v6 }
 0x34b   :  { %2624 = vmatpush3.bf16.msra.mxu0 %v3510_v21 }
 0x34c   :  { %2625 = vmatprep.subr.bf16.mxu0 %v4130_v1 }
 0x34d   :  { %v842_v9 = vpop.xlane.xlu0 %841 }
 0x34e   :  { %v843_v11 = vsub.f32 %v839_v24, %v842_v9  ;;  %v320_v24 = vsub.s32 5, %v3449_v5 }
 0x34f   :  { %2626 = vmatpush3.bf16.msra.mxu0 %v3517_v22 }
 0x350   :  { %v844_v12 = vmul.f32 1.442695, %v843_v11  ;;  %2627 = vmatprep.subr.bf16.mxu0 %v4130_v1  ;;  %v3530_v26 = vrot.slane %v3455_v7, %v320_v24  ;;  %v3578_v24 = vld [vmem:[%s4106_s5 + $0x28] sm:$0xff]  }
 0x351   :  { %4175 = vst [vmem:[#allocation13_spill] sm:$0xff] %v3578_v24 }
 0x352   :  { %2987 = vpow2.f32 %v844_v12  ;;  %4169 = vst [vmem:[#allocation7_spill] sm:$0xff] %v3530_v26  ;;  %v687_v46 = vadd.f32 %v686_v10, %v3530_v26  ;;  %v3541_v10 = vld [vmem:[%s4106_s5] sm:$0xff]  }
 0x353   :  { %2628 = vmatpush3.bf16.msra.mxu0 %v3524_v23  ;;  %4170 = vst [vmem:[#allocation8_spill] sm:$0xff] %v3541_v10 }
 0x354   :  { %v2986_v13 = vpop.eup %2985  ;;  %2629 = vmatprep.subr.bf16.mxu0 %v4130_v1  ;;  %v852_v51 = vpack.c.bf16 %v687_v46, %v687_v46  ;;  %v3593_v46 = vld [vmem:[%s4106_s5 + $0x68] sm:$0xff]  }
 0x355   :  { %v741_v14 = vsel %vm734_vm2, %v2986_v13, 0.0  ;;  %4177 = vst [vmem:[#allocation15_spill] sm:$0xff] %v3593_v46 }
 0x356   :  { %742 = vadd.xlane.f32.xlu1 %v741_v14  ;;  %v857_v11 = vsel %vm752_vm1, %v852_v51, 0  ;;  %v3557_v14 = vld [vmem:[%s4106_s5 + $0x10] sm:$0xff]   ;;  %v3614_v51 = vld [vmem:[%s4106_s5 + $0x78] sm:$0xff]  }
 0x357   :  { %4172 = vst [vmem:[#allocation10_spill] sm:$0xff] %v3557_v14  ;;  %2630 = vmatpush3.bf16.msra.mxu0 %v3593_v46  ;;  %4180 = vst [vmem:[#allocation18_spill] sm:$0xff] %v3614_v51 }
 0x358   :  { %2631 = vmatprep.subr.bf16.mxu0 %v4130_v1 }
 0x35c   :  { %v2988_v15 = vpop.eup %2987 }
 0x35d   :  { %v846_v18 = vsel %vm734_vm2, %v2988_v15, 0.0 }
 0x35e   :  { %847 = vadd.xlane.f32.xlu1 %v846_v18  ;;  %v3571_v18 = vld [vmem:[%s4106_s5 + $0x20] sm:$0xff]  }
 0x35f   :  { %4174 = vst [vmem:[#allocation12_spill] sm:$0xff] %v3571_v18 }
 0x3e3   :  { %v743_v25 = vpop.xlane.xlu1 %742 }
 0x3e4   :  { %2989 = vrcp.f32 %v743_v25  ;;  %v3585_v25 = vld [vmem:[%s4106_s5 + $0x30] sm:$0xff]  }
 0x3e5   :  { %4176 = vst [vmem:[#allocation14_spill] sm:$0xff] %v3585_v25 }
 0x3eb   :  { %v848_v48 = vpop.xlane.xlu1 %847 }
 0x3ec   :  { %2991 = vrcp.f32 %v848_v48  ;;  %v3598_v48 = vld [vmem:[%s4106_s5 + $0x38] sm:$0xff]  }
 0x3ed   :  { %4178 = vst [vmem:[#allocation16_spill] sm:$0xff] %v3598_v48 }
 0x3ee   :  { %v2990_v49 = vpop.eup %2989 }
 0x3ef   :  { %v745_v6 = vmul.f32 %v2990_v49, %v2986_v13  ;;  %v3548_v13 = vld [vmem:[%s4106_s5 + $0x8] sm:$0xff]   ;;  %v3607_v49 = vld [vmem:[%s4106_s5 + $0x70] sm:$0xff]  }
 0x3f0   :  { %4171 = vst [vmem:[#allocation9_spill] sm:$0xff] %v3548_v13  ;;  %4179 = vst [vmem:[#allocation17_spill] sm:$0xff] %v3607_v49  ;;  %2632 = vmatpush3.bf16.msra.mxu0 %v3607_v49 }
 0x3f1   :  { %v746_v9 = vpack.c.bf16 %v745_v6, %v745_v6  ;;  %2633 = vmatprep.subr.bf16.mxu0 %v4130_v1 }
 0x3f3   :  { %2604 = vmatmul.mubr.msk.bf16.vlgmr.msra.gmra.mrb[8].mxu1 %vm748_vm3, %v746_v9 }
 0x3f4   :  { %2614 = vmatpush3.bf16.msra.mxu1 %v857_v11  ;;  %2615 = vmatprep.mubr.msk.bf16.mxu1 %vm3055_vm0, %v4130_v1 }
 0x3f5   :  { %2639 = vmatprep.subr.bf16.mxu1 %v4130_v1  ;;  %2634 = vmatpush3.bf16.msra.mxu0 %v3614_v51 }
 0x3f6   :  { %v2992_v5 = vpop.eup %2991  ;;  %2659 = vmatprep.subr.bf16.mxu0 %v4130_v1 }
 0x3f7   :  { %v850_v7 = vmul.f32 %v2992_v5, %v2988_v15  ;;  %v3564_v15 = vld [vmem:[%s4106_s5 + $0x18] sm:$0xff]  }
 0x3f8   :  { %4173 = vst [vmem:[#allocation11_spill] sm:$0xff] %v3564_v15 }
 0x3f9   :  { %v851_v12 = vpack.c.bf16 %v850_v7, %v850_v7 }
 0x3fb   :  { %2616 = vmatmul.mubr.msk.bf16.vlgmr.msra.gmra.mrb[12].mxu1 %vm748_vm3, %v851_v12 }
 0x3fc   :  { %2640 = vmatpush3.bf16.msra.mxu1 %v3541_v10  ;;  %2655 = vmatprep.mubr.msk.bf16.mxu1 %vm3055_vm0, %v4130_v1 }
 0x3fd   :  { %2641 = vmatprep.subr.bf16.mxu1 %v4130_v1 }
 0x400   :  { %2642 = vmatpush3.bf16.msra.mxu1 %v3548_v13 }
 0x401   :  { %2643 = vmatprep.subr.bf16.mxu1 %v4130_v1 }
 0x404   :  { %2644 = vmatpush3.bf16.msra.mxu1 %v3557_v14 }
 0x405   :  { %2645 = vmatprep.subr.bf16.mxu1 %v4130_v1 }
 0x408   :  { %2646 = vmatpush3.bf16.msra.mxu1 %v3564_v15 }
 0x409   :  { %2647 = vmatprep.subr.bf16.mxu1 %v4130_v1 }
 0x40c   :  { %2648 = vmatpush3.bf16.msra.mxu1 %v3571_v18 }
 0x40d   :  { %2649 = vmatprep.subr.bf16.mxu1 %v4130_v1 }
 0x410   :  { %2650 = vmatpush3.bf16.msra.mxu1 %v3578_v24 }
 0x411   :  { %2651 = vmatprep.subr.bf16.mxu1 %v4130_v1 }
 0x414   :  { %2652 = vmatpush3.bf16.msra.mxu1 %v3585_v25 }
 0x415   :  { %2653 = vmatprep.subr.bf16.mxu1 %v4130_v1 }
 0x418   :  { %2654 = vmatpush3.bf16.msra.mxu1 %v3598_v48 }
 0x419   :  { %2679 = vmatprep.subr.bf16.mxu1 %v4130_v1 }
 0x4c6   :  { %v790_v6 = vpop.f32.mrb[8].mxu1 }
 0x4c7   :  { %v796_v9 = vpack.c.bf16 %v790_v6, %v790_v6  ;;  %v2605_v11 = vpop.f32.mrb[9].mxu1  ;;  %v3625_v6 = vld [vmem:[%s4110_s9] sm:$0xff]  }
 0x4c8   :  { %v793_v5 = vpop.f32.mrb[10].mxu1  ;;  %4181 = vst [vmem:[#allocation19_spill] sm:$0xff] %v3625_v6 }
 0x4c9   :  { %v2606_v7 = vpop.f32.mrb[11].mxu1  ;;  %2656 = vmatmul.mubr.bf16.vlgmr.msra.gmra.mrb[16].mxu1 %v796_v9 }
 0x4ca   :  { %2695 = vmatprep.mubr.msk.bf16.mxu1 %vm3055_vm0, %v4130_v1 }
 0x4ce   :  { %v893_v12 = vpop.f32.mrb[12].mxu1 }
 0x4cf   :  { %v899_v4 = vpack.c.bf16 %v893_v12, %v893_v12  ;;  %v2617_v44 = vpop.f32.mrb[13].mxu1 }
 0x4d0   :  { %v896_v48 = vpop.f32.mrb[14].mxu1  ;;  %v3632_v44 = vld [vmem:[%s4107_s6] ss:$0 sm:$0xff] }
 0x4d1   :  { %v2618_v25 = vpop.f32.mrb[15].mxu1  ;;  %2636 = vmatmul.mubr.bf16.vlgmr.msra.gmra.mrb[16].mxu0 %v899_v4  ;;  %4182 = vst [vmem:[#allocation20_spill] sm:$0xff] %v3632_v44 }
 0x4d2   :  { %2675 = vmatprep.mubr.msk.bf16.mxu0 %vm3055_vm0, %v4130_v1  ;;  %2660 = vmatpush3.bf16.msra.mxu0 %v3625_v6 }
 0x4d3   :  { %2661 = vmatprep.subr.bf16.mxu0 %v4130_v1 }
 0x59c   :  { %v1070_v9 = vpop.f32.mrb[16].mxu1 }
 0x59d   :  { %v2657_v11 = vpop.f32.mrb[17].mxu1 }
 0x59e   :  { %v1073_v5 = vpop.f32.mrb[18].mxu1 }
 0x59f   :  { %v2658_v7 = vpop.f32.mrb[19].mxu1 }
 0x5a0   :  { %v3641_v7 = vld [vmem:[%s4110_s9 + $0x8] sm:$0xff]  }
 0x5a1   :  { %4183 = vst [vmem:[#allocation21_spill] sm:$0xff] %v3641_v7  ;;  %2662 = vmatpush3.bf16.msra.mxu0 %v3641_v7  ;;  %v3689_v7 = vld [vmem:[%s4108_s7] ss:$0 sm:$0xff] }
 0x5a2   :  { %4191 = vst [vmem:[#allocation28_spill] sm:$0xff] %v3689_v7 }
 0x5a4   :  { %v982_v4 = vpop.f32.mrb[16].mxu0 }
 0x5a5   :  { %v1071_v25 = vadd.f32 %v1070_v9, %v982_v4  ;;  %v2637_v48 = vpop.f32.mrb[17].mxu0  ;;  %v4184_v9 = vmov 0.0   ;;  %v3675_v4 = vld [vmem:[%s4110_s9 + $0x30] sm:$0xff]  }
 0x5a6   :  { %v985_v12 = vpop.f32.mrb[18].mxu0  ;;  %2663 = vmatprep.subr.bf16.mxu0 %v4184_v9  ;;  %4189 = vst [vmem:[#allocation26_spill] sm:$0xff] %v3675_v4 }
 0x5a7   :  { %v1082_v24 = vadd.f32 %v3632_v44, %v1071_v25  ;;  %v2638_v18 = vpop.f32.mrb[19].mxu0  ;;  %v3682_v25 = vld [vmem:[%s4110_s9 + $0x38] sm:$0xff]  }
 0x5a8   :  { %v3661_v18 = vld [vmem:[%s4110_s9 + $0x20] sm:$0xff]   ;;  %4190 = vst [vmem:[#allocation27_spill] sm:$0xff] %v3682_v25 }
 0x5a9   :  { %v1083_v6 = vadd.f32 %v1082_v24, %v3348_v47  ;;  %v3648_v47 = vld [vmem:[%s4110_s9 + $0x10] sm:$0xff]   ;;  %4187 = vst [vmem:[#allocation24_spill] sm:$0xff] %v3661_v18  ;;  %v3668_v24 = vld [vmem:[%s4110_s9 + $0x28] sm:$0xff]  }
 0x5aa   :  { %4185 = vst [vmem:[#allocation22_spill] sm:$0xff] %v3648_v47  ;;  %2664 = vmatpush3.bf16.msra.mxu0 %v3648_v47  ;;  %4188 = vst [vmem:[#allocation25_spill] sm:$0xff] %v3668_v24 }
 0x5ab   :  { %v1085_v1 = vsel %vm1084_vm4, %v1083_v6, 0.0  ;;  %v1090_v11 = vmul.f32 %v1083_v6, %v1083_v6  ;;  %2665 = vmatprep.subr.bf16.mxu0 %v4184_v9 }
 0x5ac   :  { %1086 = vadd.xlane.f32.xlu0 %v1085_v1  ;;  %v3655_v1 = vld [vmem:[%s4110_s9 + $0x18] sm:$0xff]  }
 0x5ad   :  { %v1091_v5 = vsel %vm1084_vm4, %v1090_v11, 0.0  ;;  %4186 = vst [vmem:[#allocation23_spill] sm:$0xff] %v3655_v1 }
 0x5ae   :  { %1092 = vadd.xlane.f32.xlu1 %v1091_v5  ;;  %2666 = vmatpush3.bf16.msra.mxu0 %v3655_v1 }
 0x5af   :  { %2667 = vmatprep.subr.bf16.mxu0 %v4184_v9 }
 0x5b2   :  { %2668 = vmatpush3.bf16.msra.mxu0 %v3661_v18 }
 0x5b3   :  { %2669 = vmatprep.subr.bf16.mxu0 %v4184_v9 }
 0x5b6   :  { %2670 = vmatpush3.bf16.msra.mxu0 %v3668_v24 }
 0x5b7   :  { %2671 = vmatprep.subr.bf16.mxu0 %v4184_v9 }
 0x5ba   :  { %2672 = vmatpush3.bf16.msra.mxu0 %v3675_v4 }
 0x5bb   :  { %2673 = vmatprep.subr.bf16.mxu0 %v4184_v9 }
 0x5be   :  { %2674 = vmatpush3.bf16.msra.mxu0 %v3682_v25  ;;  %v3694_v25 = vld [vmem:[%s4109_s8] ss:$0 sm:$0xff] }
 0x5bf   :  { %4192 = vst [vmem:[#allocation29_spill] sm:$0xff] %v3694_v25 }
 0x639   :  { %v1087_v48 = vpop.xlane.xlu0 %1086 }
 0x63a   :  { %v1089_v12 = vmul.f32 0.03125, %v1087_v48 }
 0x63b   :  { %v1093_v11 = vpop.xlane.xlu1 %1092 }
 0x63c   :  { %v1095_v5 = vmul.f32 %v1089_v12, %v1089_v12  ;;  %v1094_v44 = vmul.f32 0.03125, %v1093_v11  ;;  %v1098_v47 = vsub.f32 %v1083_v6, %v1089_v12  ;;  %v3749_v12 = vld [vmem:[%s4112_s11 + $0x30] sm:$0xff]   ;;  %v3756_v11 = vld [vmem:[%s4112_s11 + $0x38] sm:$0xff]  }
 0x63d   :  { %4199 = vst [vmem:[#allocation36_spill] sm:$0xff] %v3749_v12  ;;  %4200 = vst [vmem:[#allocation37_spill] sm:$0xff] %v3756_v11 }
 0x63e   :  { %v1096_v24 = vsub.f32 %v1094_v44, %v1095_v5  ;;  %v3762_v5 = vld [vmem:[%s4111_s10] ss:$0 sm:$0xff] }
 0x63f   :  { %4201 = vst [vmem:[#allocation38_spill] sm:$0xff] %v3762_v5 }
 0x640   :  { %v1097_v18 = vmax.f32 %v1096_v24, 0.0  ;;  %v3735_v24 = vld [vmem:[%s4112_s11 + $0x20] sm:$0xff]  }
 0x641   :  { %4197 = vst [vmem:[#allocation34_spill] sm:$0xff] %v3735_v24 }
 0x642   :  { %v1099_v1 = vadd.f32 1e-05, %v1097_v18  ;;  %v3728_v18 = vld [vmem:[%s4112_s11 + $0x18] sm:$0xff]  }
 0x643   :  { %4196 = vst [vmem:[#allocation33_spill] sm:$0xff] %v3728_v18 }
 0x644   :  { %2993 = vrsqrt.f32 %v1099_v1  ;;  %v3721_v1 = vld [vmem:[%s4112_s11 + $0x10] sm:$0xff]  }
 0x645   :  { %4195 = vst [vmem:[#allocation32_spill] sm:$0xff] %v3721_v1 }
 0x64e   :  { %v2994_v4 = vpop.eup %2993 }
 0x64f   :  { %v1101_v15 = vmul.f32 %v2994_v4, %v1098_v47  ;;  %v3707_v47 = vld [vmem:[%s4112_s11] sm:$0xff]   ;;  %v3742_v4 = vld [vmem:[%s4112_s11 + $0x28] sm:$0xff]  }
 0x650   :  { %4193 = vst [vmem:[#allocation30_spill] sm:$0xff] %v3707_v47  ;;  %2680 = vmatpush3.bf16.msra.mxu1 %v3707_v47  ;;  %4198 = vst [vmem:[#allocation35_spill] sm:$0xff] %v3742_v4 }
 0x651   :  { %v1108_v48 = vmul.f32 %v3689_v7, %v1101_v15  ;;  %2681 = vmatprep.subr.bf16.mxu1 %v4184_v9  ;;  %v3714_v15 = vld [vmem:[%s4112_s11 + $0x8] sm:$0xff]  }
 0x652   :  { %4194 = vst [vmem:[#allocation31_spill] sm:$0xff] %v3714_v15 }
 0x653   :  { %v3698_v44 = vadd.f32 %v3694_v25, %v1108_v48 }
 0x654   :  { %2682 = vmatpush3.bf16.msra.mxu1 %v3714_v15 }
 0x655   :  { %v1116_v6 = vpack.c.bf16 %v3698_v44, %v3698_v44  ;;  %2683 = vmatprep.subr.bf16.mxu1 %v4184_v9 }
 0x657   :  { %2676 = vmatmul.mubr.bf16.vlgmr.msra.gmra.mrb[20].mxu0 %v1116_v6 }
 0x658   :  { %2703 = vmatprep.mubr.msk.f32.mxu0 %vm3055_vm0, %v4184_v9  ;;  %2684 = vmatpush3.bf16.msra.mxu1 %v3721_v1 }
 0x659   :  { %2685 = vmatprep.subr.bf16.mxu1 %v4184_v9 }
 0x65c   :  { %2686 = vmatpush3.bf16.msra.mxu1 %v3728_v18 }
 0x65d   :  { %2687 = vmatprep.subr.bf16.mxu1 %v4184_v9 }
 0x660   :  { %2688 = vmatpush3.bf16.msra.mxu1 %v3735_v24 }
 0x661   :  { %2689 = vmatprep.subr.bf16.mxu1 %v4184_v9 }
 0x664   :  { %2690 = vmatpush3.bf16.msra.mxu1 %v3742_v4 }
 0x665   :  { %2691 = vmatprep.subr.bf16.mxu1 %v4184_v9 }
 0x668   :  { %2692 = vmatpush3.bf16.msra.mxu1 %v3749_v12 }
 0x669   :  { %2693 = vmatprep.subr.bf16.mxu1 %v4184_v9 }
 0x66c   :  { %2694 = vmatpush3.bf16.msra.mxu1 %v3756_v11 }
 0x72a   :  { %v1205_v48 = vpop.f32.mrb[20].mxu0 }
 0x72b   :  { %v1206_v6 = vadd.f32 %v3762_v5, %v1205_v48  ;;  %v2677_v25 = vpop.f32.mrb[21].mxu0 }
 0x72c   :  { %v1208_v7 = vpop.f32.mrb[22].mxu0 }
 0x72d   :  { %v1212_v12 = vmul.f32 0.70710677, %v1206_v6  ;;  %v2678_v4 = vpop.f32.mrb[23].mxu0 }
 0x72f   :  { %v1215_v24 = vand.u32 2147483647, %v1212_v12  ;;  %vm1213_vm5 = vcmp.ge.f32.partialorder %v1212_v12, 0.0 }
 0x731   :  { %v1216_v18 = vmul.f32 0.3275911, %v1215_v24  ;;  %v1229_v15 = vsub.f32 0.0, %v1215_v24 }
 0x733   :  { %v1217_v1 = vadd.f32 1.0, %v1216_v18  ;;  %v1230_v14 = vmul.f32 %v1229_v15, %v1215_v24  ;;  %v3057_v18 = vmov -1.0   ;;  %v1211_v15 = vmul.f32 0.5, %v1206_v6  ;;  %v198_v6 = vld [vmem:[%s4116_s15 + $0x8] sm:$0xff] }
 0x735   :  { %2995 = vrcp.f32 %v1217_v1  ;;  %v1231_v10 = vmul.f32 1.442695, %v1230_v14  ;;  %v1214_v1 = vsel %vm1213_vm5, 1.0, %v3057_v18 }
 0x737   :  { %2997 = vpow2.f32 %v1231_v10 }
 0x73f   :  { %v2996_v47 = vpop.eup %2995 }
 0x740   :  { %v1220_v11 = vmul.f32 1.0614054, %v2996_v47 }
 0x741   :  { %v2998_v5 = vpop.eup %2997 }
 0x742   :  { %v1221_v13 = vadd.f32 -1.4531521, %v1220_v11 }
 0x744   :  { %v1222_v26 = vmul.f32 %v2996_v47, %v1221_v13 }
 0x746   :  { %v1223_v51 = vadd.f32 1.4214138, %v1222_v26  ;;  %v3771_v26 = vld [vmem:[%s4113_s12] ss:$0 sm:$0xff] }
 0x748   :  { %v1224_v49 = vmul.f32 %v2996_v47, %v1223_v51 }
 0x74a   :  { %v1225_v46 = vadd.f32 -0.28449672, %v1224_v49 }
 0x74c   :  { %v1226_v48 = vmul.f32 %v2996_v47, %v1225_v46 }
 0x74e   :  { %v1227_v25 = vadd.f32 0.2548296, %v1226_v48  ;;  %v3058_v48 = vmov 0.0|0.0  }
 0x74f   :  { %2851 = vmatprep.subr.bf16.mxu0 %v3058_v48  ;;  %2854 = vmatprep.subr.bf16.mxu1 %v3058_v48 }
 0x750   :  { %v1228_v7 = vmul.f32 %v2996_v47, %v1227_v25  ;;  %v3017_v25 = vld [vmem:[%s4104_s3 + $0x4] ss:$24 sps:$4 sm:$0xff]  }
 0x752   :  { %v1233_v4 = vmul.f32 %v2998_v5, %v1228_v7  ;;  %v197_v5 = vld [vmem:[%s4116_s15] sm:$0xff] }
 0x754   :  { %v1234_v52 = vsub.f32 1.0, %v1233_v4 }
 0x756   :  { %v1235_v23 = vmul.f32 %v1234_v52, %v1214_v1 }
 0x758   :  { %v1236_v24 = vadd.f32 1.0, %v1235_v23 }
 0x75a   :  { %v1237_v11 = vmul.f32 %v1236_v24, %v1211_v15 }
 0x75c   :  { %v1238_v14 = vpack.c.bf16 %v1237_v11, %v1237_v11 }
 0x75e   :  { %2696 = vmatmul.mubr.bf16.vlgmr.msra.gmra.mrb[20].mxu1 %v1238_v14 }
 0x75f   :  { %2710 = vmatprep.mubr.msk.f32.mxu1 %vm3055_vm0, %v4184_v9 }
 0x831   :  { %v1327_v10 = vpop.f32.mrb[20].mxu1 }
 0x832   :  { %v1328_v13 = vadd.f32 %v3771_v26, %v1327_v10  ;;  %v2697_v46 = vpop.f32.mrb[21].mxu1 }
 0x833   :  { %v1330_v49 = vpop.f32.mrb[22].mxu1 }
 0x834   :  { %v1333_v52 = vadd.f32 %v1328_v13, %v3698_v44  ;;  %v2698_v51 = vpop.f32.mrb[23].mxu1  ;;  %v3784_v44 = vpack.c.bf16 %v198_v6, %v197_v5  ;;  %v3796_v49 = vld [vmem:[%s4114_s13] ss:$0 sm:$0xff] }
 0x835   :  { %v3018_v5 = vld [vmem:[%s4164_s29] sm:$0xff]  }
 0x836   :  { %v1334_v23 = vsel %vm1084_vm4, %v1333_v52, 0.0  ;;  %v1338_v47 = vmul.f32 %v1333_v52, %v1333_v52  ;;  %2853 = vmatpush3.bf16.xpose.msra.mxu0 %v3784_v44  ;;  %2856 = vmatpush3.bf16.msra.mxu1 %v3784_v44 }
 0x837   :  { %1335 = vadd.xlane.f32.xlu0 %v1334_v23  ;;  %2713 = vmatprep.subr.bf16.mxu0 %v4184_v9  ;;  %v3801_v23 = vld [vmem:[%s4115_s14] ss:$0 sm:$0xff] }
 0x838   :  { %v1339_v12 = vsel %vm1084_vm4, %v1338_v47, 0.0  ;;  %1594 = vmatprep.subr.bf16.mxu1 %v3017_v25  ;;  %v3019_v25 = vld [vmem:[%s4164_s29 + $0x8] sm:$0xff]  }
 0x839   :  { %1340 = vadd.xlane.f32.xlu1 %v1339_v12 }
 0x8c4   :  { %v1336_v7 = vpop.xlane.xlu0 %1335 }
 0x8c5   :  { %v1337_v4 = vmul.f32 0.03125, %v1336_v7  ;;  %v3020_v7 = vld [vmem:[%s4164_s29 + $0x10] sm:$0xff]  }
 0x8c6   :  { %v1341_v1 = vpop.xlane.xlu1 %1340 }
 0x8c7   :  { %v1343_v15 = vmul.f32 %v1337_v4, %v1337_v4  ;;  %v1342_v24 = vmul.f32 0.03125, %v1341_v1  ;;  %v1346_v13 = vsub.f32 %v1333_v52, %v1337_v4  ;;  %v3021_v4 = vld [vmem:[%s4164_s29 + $0x18] sm:$0xff]   ;;  %v3022_v1 = vld [vmem:[%s4164_s29 + $0x20] sm:$0xff]  }
 0x8c9   :  { %v1344_v11 = vsub.f32 %v1342_v24, %v1343_v15  ;;  %v3023_v15 = vld [vmem:[%s4164_s29 + $0x28] sm:$0xff]   ;;  %v3024_v24 = vld [vmem:[%s4164_s29 + $0x30] sm:$0xff]  }
 0x8cb   :  { %v1345_v14 = vmax.f32 %v1344_v11, 0.0  ;;  %v3025_v11 = vld [vmem:[%s4164_s29 + $0x38] sm:$0xff]  }
 0x8cd   :  { %v1347_v10 = vadd.f32 1e-05, %v1345_v14  ;;  %v3026_v14 = vld [vmem:[%s4104_s3 + $0xc] ss:$24 sps:$4 sm:$0xff]  }
 0x8cf   :  { %2999 = vrsqrt.f32 %v1347_v10  ;;  %v2451_v10 = vld [vmem:[%s4165_s23 + $0x4] sm:$0xf] }
 0x8d9   :  { %v3000_v46 = vpop.eup %2999 }
 0x8da   :  { %v1349_v51 = vmul.f32 %v3000_v46, %v1346_v13  ;;  %v1552_v13 = vpack.c.bf16 %v2451_v10, %v2451_v10  ;;  %v3027_v46 = vld [vmem:[%s4104_s3 + $0x8] ss:$24 sps:$4 sm:$0xff]   ;;  %v3032_v10 = vld [vmem:[%s4104_s3 + $0x64] ss:$24 sps:$4 sm:$0xff]  }
 0x8dc   :  { %v1356_v47 = vmul.f32 %v3796_v49, %v1349_v51  ;;  %v4202_v51 = vmov 0  }
 0x8de   :  { %v3805_v12 = vadd.f32 %v3801_v23, %v1356_v47  ;;  %v3028_v47 = vld [vmem:[%s4104_s3 + $0x3c] ss:$24 sps:$4 sm:$0xff]  }
 0x8e0   :  { %2704 = vmatmul.mubr.f32.vlgmr.msra.gmra.mrb[24].mxu0 %v3805_v12  ;;  %v1364_v52 = vmul.f32 %v3805_v12, %v3805_v12 }
 0x8e1   :  { %2714 = vmatpush3.bf16.msra.mxu0 %v3018_v5  ;;  %2729 = vmatprep.mubr.msk.bf16.mxu0 %vm3055_vm0, %v4184_v9 }
 0x8e2   :  { %v1365_v6 = vsel %vm1084_vm4, %v1364_v52, 0.0  ;;  %2715 = vmatprep.subr.bf16.mxu0 %v4184_v9 }
 0x8e3   :  { %1366 = vadd.xlane.f32.xlu0 %v1365_v6 }
 0x8e5   :  { %2716 = vmatpush3.bf16.msra.mxu0 %v3019_v25 }
 0x8e6   :  { %2717 = vmatprep.subr.bf16.mxu0 %v4184_v9 }
 0x8e9   :  { %2718 = vmatpush3.bf16.msra.mxu0 %v3020_v7 }
 0x8ea   :  { %2719 = vmatprep.subr.bf16.mxu0 %v4184_v9 }
 0x8ed   :  { %2720 = vmatpush3.bf16.msra.mxu0 %v3021_v4 }
 0x8ee   :  { %2721 = vmatprep.subr.bf16.mxu0 %v4184_v9 }
 0x8f1   :  { %2722 = vmatpush3.bf16.msra.mxu0 %v3022_v1 }
 0x8f2   :  { %2723 = vmatprep.subr.bf16.mxu0 %v4184_v9 }
 0x8f5   :  { %2724 = vmatpush3.bf16.msra.mxu0 %v3023_v15 }
 0x8f6   :  { %2725 = vmatprep.subr.bf16.mxu0 %v4184_v9 }
 0x8f9   :  { %2726 = vmatpush3.bf16.msra.mxu0 %v3024_v24 }
 0x8fa   :  { %2727 = vmatprep.subr.bf16.mxu0 %v4184_v9 }
 0x8fd   :  { %2728 = vmatpush3.bf16.msra.mxu0 %v3025_v11  ;;  %v3030_v11 = vld [vmem:[%s4104_s3 + $0x34] ss:$24 sps:$4 sm:$0xff]  }
 0x8fe   :  { %1635 = vmatprep.subr.bf16.mxu0 %v3026_v14  ;;  %v3031_v14 = vld [vmem:[%s4104_s3 + $0x30] ss:$24 sps:$4 sm:$0xff]  }
 0x900   :  { %2730 = vmatmul.mubr.bf16.vlgmr.msra.gmra.mrb[28].mxu0 %v1552_v13  ;;  %v3033_v13 = vld [vmem:[%s4104_s3 + $0x60] ss:$24 sps:$4 sm:$0xff]  }
 0x901   :  { %1636 = vmatpush1.bf16.msra.mxu0 %v3027_v46  ;;  %1667 = vmatprep.mubr.bf16.mxu0 %v4202_v51  ;;  %v3034_v46 = vld [vmem:[%s4104_s3 + $0x94] ss:$24 sps:$4 sm:$0xff]  }
 0x902   :  { %1637 = vmatprep.subr.bf16.mxu0 %v3028_v47  ;;  %v3035_v47 = vld [vmem:[%s4104_s3 + $0x90] ss:$24 sps:$4 sm:$0xff]  }
 0x905   :  { %1638 = vmatpush1.bf16.msra.mxu0 %v3246_v28  ;;  %v3874_v28 = vld [vmem:[%s4117_s16] ss:$0 sm:$0xff] }
 0x906   :  { %1639 = vmatprep.subr.bf16.mxu0 %v3251_v29 }
 0x909   :  { %1640 = vmatpush1.bf16.msra.mxu0 %v3256_v30 }
 0x90a   :  { %1641 = vmatprep.subr.bf16.mxu0 %v3261_v31 }
 0x90d   :  { %1642 = vmatpush1.bf16.msra.mxu0 %v3268_v32 }
 0x90e   :  { %1643 = vmatprep.subr.bf16.mxu0 %v3273_v33 }
 0x911   :  { %1644 = vmatpush1.bf16.msra.mxu0 %v3280_v34 }
 0x912   :  { %1645 = vmatprep.subr.bf16.mxu0 %v3285_v35 }
 0x915   :  { %1646 = vmatpush1.bf16.msra.mxu0 %v3292_v36  ;;  %v4203_v36 = vlaneseq }
 0x916   :  { %1647 = vmatprep.subr.bf16.mxu0 %v3297_v37 }
 0x917   :  { %v1452_v37 = vand.u32 127, %v4203_v36 }
 0x919   :  { %1648 = vmatpush1.bf16.msra.mxu0 %v3304_v38  ;;  %v3879_v38 = vcvt.s32.f32 %v1452_v37  ;;  %v4208_v37 = vld [vmem:[#allocation18_spill] sm:$0xff] }
 0x91a   :  { %1649 = vmatprep.subr.bf16.mxu0 %v3322_v41 }
 0x91d   :  { %1650 = vmatpush1.bf16.msra.mxu0 %v3328_v42 }
 0x91e   :  { %2733 = vmatprep.subr.bf16.mxu0 %v4184_v9 }
 0x970   :  { %v1367_v29 = vpop.xlane.xlu0 %1366 }
 0x971   :  { %v1444_v31 = vadd.f32 %v3874_v28, %v1367_v29  ;;  %v3036_v29 = vld [vmem:[%s4104_s3 + $0xc4] ss:$24 sps:$4 sm:$0xff]  }
 0x9b3   :  { %v1434_v30 = vpop.f32.mrb[24].mxu0 }
 0x9b4   :  { %v1445_v32 = vmul.f32 2.0, %v1434_v30  ;;  %v2705_v33 = vpop.f32.mrb[25].mxu0  ;;  %v3037_v30 = vld [vmem:[%s4104_s3 + $0xc0] ss:$24 sps:$4 sm:$0xff]  }
 0x9b5   :  { %v3040_v33 = vld [vmem:[%s4104_s3 + $0x124] ss:$24 sps:$4 sm:$0xff]  }
 0x9b6   :  { %v1446_v34 = vsub.f32 %v1444_v31, %v1445_v32  ;;  %v3038_v31 = vld [vmem:[%s4104_s3 + $0xf4] ss:$24 sps:$4 sm:$0xff]   ;;  %v3039_v32 = vld [vmem:[%s4104_s3 + $0xf0] ss:$24 sps:$4 sm:$0xff]  }
 0x9b8   :  { %v1448_v35 = vsel %vm1447_vm6, %v1446_v34, inf }
 0x9b9   :  { %1449 = vmin.xlane.f32.xlu1 %v1448_v35 }
 0x9d3   :  { %v1587_v5 = vpop.f32.mrb[28].mxu0 }
 0x9d4   :  { %v3884_v6 = vadd.f32 %v3345_v45, %v1587_v5  ;;  %v2731_v25 = vpop.f32.mrb[29].mxu0  ;;  %v3029_v45 = vld [vmem:[%s4104_s3] ss:$24 sps:$4 sm:$0xff]  }
 0x9d5   :  { %v1590_v7 = vpop.f32.mrb[30].mxu0 }
 0x9d6   :  { %v1593_v4 = vpack.c.bf16 %v3884_v6, %v3884_v6  ;;  %v2732_v1 = vpop.f32.mrb[31].mxu0 }
 0x9d8   :  { %1668 = vmatmul.mubr.bf16.vlgmr.msra.gmra.mrb[32].mxu0 %v1593_v4 }
 0x9d9   :  { %2735 = vmatprep.mubr.msk.bf16.mxu0 %vm3055_vm0, %v4184_v9 }
 0xa46   :  { %v1450_v41 = vpop.xlane.xlu1 %1449 }
 0xa47   :  { %vm1454_vm7 = vcmp.le.f32.partialorder %v1446_v34, %v1450_v41  ;;  %v3041_v34 = vld [vmem:[%s4104_s3 + $0x120] ss:$24 sps:$4 sm:$0xff]  }
 0xa48   :  { %v1455_v42 = vsel %vm1454_vm7, %v3879_v38, 16.0 }
 0xa49   :  { %v1456_v52 = vsel %vm1447_vm6, %v1455_v42, inf }
 0xa4a   :  { %1457 = vmin.xlane.f32.xlu0 %v1456_v52 }
 0xad7   :  { %v1458_v15 = vpop.xlane.xlu0 %1457 }
 0xad8   :  { %vm1459_vm9 = vcmp.eq.f32.partialorder %v3879_v38, %v1458_v15 }
 0xad9   :  { %v2449_v24 = vsel %vm1459_vm9, 1.0, %v4184_v9 }
 0xada   :  { %2711 = vmatmul.mubr.msk.f32.vlgmr.msra.gmra.mrb[24].mxu1 %vm1462_vm8, %v2449_v24 }
 0xadb   :  { %1595 = vmatpush1.bf16.msra.mxu1 %v3029_v45  ;;  %1626 = vmatprep.mubr.bf16.mxu1 %v4202_v51 }
 0xadc   :  { %1596 = vmatprep.subr.bf16.mxu1 %v3030_v11 }
 0xadf   :  { %1597 = vmatpush1.bf16.msra.mxu1 %v3031_v14 }
 0xae0   :  { %1598 = vmatprep.subr.bf16.mxu1 %v3032_v10 }
 0xae3   :  { %1599 = vmatpush1.bf16.msra.mxu1 %v3033_v13 }
 0xae4   :  { %1600 = vmatprep.subr.bf16.mxu1 %v3034_v46 }
 0xae7   :  { %1601 = vmatpush1.bf16.msra.mxu1 %v3035_v47 }
 0xae8   :  { %1602 = vmatprep.subr.bf16.mxu1 %v3036_v29 }
 0xaeb   :  { %1603 = vmatpush1.bf16.msra.mxu1 %v3037_v30 }
 0xaec   :  { %1604 = vmatprep.subr.bf16.mxu1 %v3038_v31 }
 0xaef   :  { %1605 = vmatpush1.bf16.msra.mxu1 %v3039_v32 }
 0xaf0   :  { %1606 = vmatprep.subr.bf16.mxu1 %v3040_v33 }
 0xaf3   :  { %1607 = vmatpush1.bf16.msra.mxu1 %v3041_v34 }
 0xaf4   :  { %1608 = vmatprep.subr.bf16.mxu1 %v3312_v39  ;;  %v1669_v39 = vpop.f32.mrb[32].mxu0 }
 0xaf7   :  { %1609 = vmatpush1.bf16.msra.mxu1 %v3317_v40  ;;  %v1670_v40 = vadd.f32 %v1669_v39, %v3458_v8  ;;  %v4204_v8 = vld [vmem:[#allocation6_spill] sm:$0xff]  ;;  %v4209_v39 = vld [vmem:[#allocation7_spill] sm:$0xff] }
 0xaf8   :  { %1676 = vmatprep.subr.bf16.mxu1 %v3336_v43  ;;  %v1671_v43 = vpop.f32.mrb[33].mxu0 }
 0xafa   :  { %1627 = vmatmul.mubr.bf16.vlgmr.msra.gmra.mrb[28].mxu1 %v1593_v4 }
 0xafb   :  { %1677 = vmatpush1.bf16.msra.mxu1 %v3353_v50  ;;  %1708 = vmatprep.mubr.bf16.mxu1 %v4202_v51  ;;  %v1673_v50 = vpop.f32.mrb[34].mxu0 }
 0xafc   :  { %1678 = vmatprep.subr.bf16.mxu1 %v3360_v53  ;;  %v1718_v53 = vpack.c.bf16 %v1670_v40, %v1670_v40 }
 0xafe   :  { %2734 = vmatpush3.bf16.xpose.msra.mxu0 %v1718_v53 }
 0xaff   :  { %1679 = vmatpush1.bf16.msra.mxu1 %v3366_v54  ;;  %v1674_v54 = vpop.f32.mrb[35].mxu0  ;;  %2745 = vmatprep.subr.bf16.mxu0 %v4184_v9 }
 0xb00   :  { %1680 = vmatprep.subr.bf16.mxu1 %v3373_v55 }
 0xb03   :  { %1681 = vmatpush1.bf16.msra.mxu1 %v3381_v56 }
 0xb04   :  { %1682 = vmatprep.subr.bf16.mxu1 %v3387_v57  ;;  %v1672_v57 = vadd.f32 %v1671_v43, %v3467_v20  ;;  %v4205_v20 = vld [vmem:[#allocation5_spill] sm:$0xff] }
 0xb07   :  { %1683 = vmatpush1.bf16.msra.mxu1 %v3393_v58 }
 0xb08   :  { %1684 = vmatprep.subr.bf16.mxu1 %v3399_v59 }
 0xb0b   :  { %1685 = vmatpush1.bf16.msra.mxu1 %v3405_v60 }
 0xb0c   :  { %1686 = vmatprep.subr.bf16.mxu1 %v3411_v61 }
 0xb0f   :  { %1687 = vmatpush1.bf16.msra.mxu1 %v3417_v62 }
 0xb10   :  { %1688 = vmatprep.subr.bf16.mxu1 %v3423_v63 }
 0xb13   :  { %1689 = vmatpush1.bf16.msra.mxu1 %v3429_v0  ;;  %v1821_v0 = vpack.c.bf16 %v1672_v57, %v1672_v57 }
 0xb14   :  { %1690 = vmatprep.subr.bf16.mxu1 %v3435_v2 }
 0xb17   :  { %1691 = vmatpush1.bf16.msra.mxu1 %v3441_v3 }
 0xb18   :  { %2739 = vmatprep.subr.bf16.mxu1 %v4184_v9 }
 0xb1a   :  { %1709 = vmatmul.mubr.bf16.vlgmr.msra.gmra.mrb[32].mxu1 %v1593_v4 }
 0xb1b   :  { %2741 = vmatprep.mubr.msk.bf16.mxu1 %vm3055_vm0, %v4184_v9 }
 0xbad   :  { %v3957_v55 = vpop.f32.mrb[24].mxu1 }
 0xbae   :  { %1536 = vst [vmem:[%s4118_s17] sm:$0xf] %v3957_v55  ;;  %v2712_v56 = vpop.f32.mrb[25].mxu1 }
 0xbcd   :  { %v1628_v58 = vpop.f32.mrb[28].mxu1 }
 0xbce   :  { %v1629_v59 = vadd.f32 %v1628_v58, %v3464_v16  ;;  %v1630_v60 = vpop.f32.mrb[29].mxu1 }
 0xbcf   :  { %v1632_v61 = vpop.f32.mrb[30].mxu1  ;;  %v1631_v2 = vadd.f32 %v1630_v60, %v3474_v27 }
 0xbd0   :  { %v1717_v62 = vpack.c.bf16 %v1629_v59, %v1629_v59  ;;  %v1633_v63 = vpop.f32.mrb[31].mxu1  ;;  %v4210_v61 = vld [vmem:[#allocation8_spill] sm:$0xff] }
 0xbd1   :  { %v1820_v3 = vpack.c.bf16 %v1631_v2, %v1631_v2  ;;  %v4212_v63 = vld [vmem:[#allocation10_spill] sm:$0xff]  ;;  %v4214_v2 = vld [vmem:[#allocation12_spill] sm:$0xff] }
 0xbd2   :  { %2736 = vmatmul.mubr.bf16.vlgmr.msra.gmra.mrb[36].mxu0 %v1717_v62  ;;  %v4211_v62 = vld [vmem:[#allocation9_spill] sm:$0xff] }
 0xbd3   :  { %2746 = vmatpush3.bf16.xpose.msra.mxu0 %v1821_v0  ;;  %2747 = vmatprep.mubr.msk.bf16.mxu0 %vm3055_vm0, %v4184_v9  ;;  %v4213_v0 = vld [vmem:[#allocation11_spill] sm:$0xff] }
 0xbd4   :  { %2757 = vmatprep.subr.bf16.mxu0 %v4184_v9 }
 0xbda   :  { %2748 = vmatmul.mubr.bf16.vlgmr.msra.gmra.mrb[40].mxu0 %v1820_v3  ;;  %v4215_v3 = vld [vmem:[#allocation13_spill] sm:$0xff] }
 0xbdb   :  { %2758 = vmatpush3.bf16.msra.mxu0 %v3496_v19  ;;  %2773 = vmatprep.mubr.msk.bf16.mxu0 %vm3055_vm0, %v4184_v9 }
 0xbdc   :  { %2759 = vmatprep.subr.bf16.mxu0 %v4184_v9 }
 0xbdf   :  { %2760 = vmatpush3.bf16.msra.mxu0 %v3503_v17  ;;  %v4206_v17 = vld [vmem:[#allocation15_spill] sm:$0xff] }
 0xbe0   :  { %2761 = vmatprep.subr.bf16.mxu0 %v4184_v9 }
 0xbe3   :  { %2762 = vmatpush3.bf16.msra.mxu0 %v3510_v21 }
 0xbe4   :  { %2763 = vmatprep.subr.bf16.mxu0 %v4184_v9 }
 0xbe7   :  { %2764 = vmatpush3.bf16.msra.mxu0 %v3517_v22  ;;  %v4207_v22 = vld [vmem:[#allocation17_spill] sm:$0xff] }
 0xbe8   :  { %2765 = vmatprep.subr.bf16.mxu0 %v4184_v9 }
 0xbeb   :  { %2766 = vmatpush3.bf16.msra.mxu0 %v4204_v8  ;;  %v4216_v8 = vld [vmem:[#allocation14_spill] sm:$0xff] }
 0xbec   :  { %2767 = vmatprep.subr.bf16.mxu0 %v4184_v9 }
 0xbed   :  { %v1710_v16 = vpop.f32.mrb[32].mxu1 }
 0xbee   :  { %v1711_v27 = vadd.f32 %v1710_v16, %v4205_v20  ;;  %v1712_v19 = vpop.f32.mrb[33].mxu1  ;;  %v4217_v16 = vld [vmem:[#allocation16_spill] sm:$0xff] }
 0xbef   :  { %v1714_v51 = vpop.f32.mrb[34].mxu1  ;;  %2768 = vmatpush3.bf16.msra.mxu0 %v4206_v17  ;;  %v1713_v40 = vadd.f32 %v1712_v19, %v4209_v39 }
 0xbf0   :  { %v1772_v35 = vpack.c.bf16 %v1711_v27, %v1711_v27  ;;  %v1715_v36 = vpop.f32.mrb[35].mxu1  ;;  %2769 = vmatprep.subr.bf16.mxu0 %v4184_v9 }
 0xbf1   :  { %v1875_v53 = vpack.c.bf16 %v1713_v40, %v1713_v40  ;;  %v4234_v40 = vld [vmem:[#allocation20_spill] sm:$0xff] }
 0xbf2   :  { %v1777_v21 = vsel %vm752_vm1, %v1772_v35, 0  ;;  %v4218_v35 = vld [vmem:[#allocation30_spill] sm:$0xff] }
 0xbf3   :  { %2740 = vmatpush3.bf16.msra.mxu1 %v1777_v21  ;;  %2770 = vmatpush3.bf16.msra.mxu0 %v4207_v22  ;;  %v1880_v57 = vsel %vm752_vm1, %v1875_v53, 0  ;;  %v4219_v21 = vld [vmem:[#allocation31_spill] sm:$0xff] }
 0xbf4   :  { %2751 = vmatprep.subr.bf16.mxu1 %v4184_v9  ;;  %2771 = vmatprep.subr.bf16.mxu0 %v4184_v9 }
 0xbf7   :  { %2772 = vmatpush3.bf16.msra.mxu0 %v4208_v37 }
 0xbf8   :  { %2797 = vmatprep.subr.bf16.mxu0 %v4184_v9 }
 0xca5   :  { %v1753_v41 = vpop.f32.mrb[36].mxu0 }
 0xca6   :  { %v1759_v42 = vmul.f32 0.25, %v1753_v41  ;;  %v2737_v52 = vpop.f32.mrb[37].mxu0 }
 0xca7   :  { %v1756_v5 = vpop.f32.mrb[38].mxu0  ;;  %v4220_v52 = vld [vmem:[#allocation19_spill] sm:$0xff] }
 0xca8   :  { %v2738_v25 = vpop.f32.mrb[39].mxu0  ;;  %v1760_v7 = vsel %vm734_vm2, %v1759_v42, -inf  ;;  %v4221_v5 = vld [vmem:[#allocation32_spill] sm:$0xff] }
 0xca9   :  { %1761 = vmax.xlane.f32.xlu1 %v1760_v7  ;;  %v4222_v25 = vld [vmem:[#allocation21_spill] sm:$0xff] }
 0xcaa   :  { %v4223_v7 = vld [vmem:[#allocation33_spill] sm:$0xff] }
 0xcad   :  { %v1856_v4 = vpop.f32.mrb[40].mxu0 }
 0xcae   :  { %v1862_v1 = vmul.f32 0.25, %v1856_v4  ;;  %v2749_v15 = vpop.f32.mrb[41].mxu0  ;;  %v4224_v4 = vld [vmem:[#allocation22_spill] sm:$0xff] }
 0xcaf   :  { %v1859_v24 = vpop.f32.mrb[42].mxu0  ;;  %v4226_v15 = vld [vmem:[#allocation23_spill] sm:$0xff] }
 0xcb0   :  { %v2750_v45 = vpop.f32.mrb[43].mxu0  ;;  %v1863_v11 = vsel %vm734_vm2, %v1862_v1, -inf  ;;  %v4227_v24 = vld [vmem:[#allocation35_spill] sm:$0xff] }
 0xcb1   :  { %1864 = vmax.xlane.f32.xlu0 %v1863_v11  ;;  %v4228_v45 = vld [vmem:[#allocation24_spill] sm:$0xff] }
 0xcb2   :  { %v4229_v11 = vld [vmem:[#allocation36_spill] sm:$0xff] }
 0xd36   :  { %v1762_v14 = vpop.xlane.xlu1 %1761 }
 0xd37   :  { %v1763_v10 = vsub.f32 %v1759_v42, %v1762_v14  ;;  %v4230_v14 = vld [vmem:[#allocation25_spill] sm:$0xff] }
 0xd39   :  { %v1764_v13 = vmul.f32 1.442695, %v1763_v10  ;;  %v4231_v10 = vld [vmem:[#allocation37_spill] sm:$0xff] }
 0xd3b   :  { %3001 = vpow2.f32 %v1764_v13  ;;  %v4232_v13 = vld [vmem:[#allocation26_spill] sm:$0xff] }
 0xd3e   :  { %v1865_v46 = vpop.xlane.xlu0 %1864 }
 0xd3f   :  { %v1866_v47 = vsub.f32 %v1862_v1, %v1865_v46  ;;  %v4225_v1 = vld [vmem:[#allocation34_spill] sm:$0xff]  ;;  %v4233_v46 = vld [vmem:[#allocation27_spill] sm:$0xff] }
 0xd41   :  { %v1867_v29 = vmul.f32 1.442695, %v1866_v47 }
 0xd43   :  { %3003 = vpow2.f32 %v1867_v29 }
 0xd45   :  { %v3002_v30 = vpop.eup %3001 }
 0xd46   :  { %v1766_v31 = vsel %vm734_vm2, %v3002_v30, 0.0 }
 0xd47   :  { %1767 = vadd.xlane.f32.xlu1 %v1766_v31 }
 0xd4d   :  { %v3004_v32 = vpop.eup %3003 }
 0xd4e   :  { %v1869_v33 = vsel %vm734_vm2, %v3004_v32, 0.0 }
 0xd4f   :  { %1870 = vadd.xlane.f32.xlu0 %v1869_v33 }
 0xdd4   :  { %v1768_v34 = vpop.xlane.xlu1 %1767 }
 0xdd5   :  { %3005 = vrcp.f32 %v1768_v34 }
 0xddc   :  { %v1871_v43 = vpop.xlane.xlu0 %1870 }
 0xddd   :  { %3007 = vrcp.f32 %v1871_v43 }
 0xddf   :  { %v3006_v50 = vpop.eup %3005 }
 0xde0   :  { %v1770_v54 = vmul.f32 %v3006_v50, %v3002_v30 }
 0xde2   :  { %v1771_v56 = vpack.c.bf16 %v1770_v54, %v1770_v54 }
 0xde4   :  { %2742 = vmatmul.mubr.msk.bf16.vlgmr.msra.gmra.mrb[36].mxu1 %vm748_vm3, %v1771_v56 }
 0xde5   :  { %2752 = vmatpush3.bf16.msra.mxu1 %v1880_v57  ;;  %2753 = vmatprep.mubr.msk.bf16.mxu1 %vm3055_vm0, %v4184_v9 }
 0xde6   :  { %2777 = vmatprep.subr.bf16.mxu1 %v4184_v9 }
 0xde7   :  { %v3008_v58 = vpop.eup %3007 }
 0xde8   :  { %v1873_v59 = vmul.f32 %v3008_v58, %v3004_v32 }
 0xdea   :  { %v1874_v60 = vpack.c.bf16 %v1873_v59, %v1873_v59 }
 0xdec   :  { %2754 = vmatmul.mubr.msk.bf16.vlgmr.msra.gmra.mrb[40].mxu1 %vm748_vm3, %v1874_v60 }
 0xded   :  { %2778 = vmatpush3.bf16.msra.mxu1 %v4210_v61  ;;  %2793 = vmatprep.mubr.msk.bf16.mxu1 %vm3055_vm0, %v4184_v9 }
 0xdee   :  { %2779 = vmatprep.subr.bf16.mxu1 %v4184_v9 }
 0xdf1   :  { %2780 = vmatpush3.bf16.msra.mxu1 %v4211_v62 }
 0xdf2   :  { %2781 = vmatprep.subr.bf16.mxu1 %v4184_v9 }
 0xdf5   :  { %2782 = vmatpush3.bf16.msra.mxu1 %v4212_v63 }
 0xdf6   :  { %2783 = vmatprep.subr.bf16.mxu1 %v4184_v9 }
 0xdf9   :  { %2784 = vmatpush3.bf16.msra.mxu1 %v4213_v0 }
 0xdfa   :  { %2785 = vmatprep.subr.bf16.mxu1 %v4184_v9 }
 0xdfd   :  { %2786 = vmatpush3.bf16.msra.mxu1 %v4214_v2 }
 0xdfe   :  { %2787 = vmatprep.subr.bf16.mxu1 %v4184_v9 }
 0xe01   :  { %2788 = vmatpush3.bf16.msra.mxu1 %v4215_v3 }
 0xe02   :  { %2789 = vmatprep.subr.bf16.mxu1 %v4184_v9 }
 0xe05   :  { %2790 = vmatpush3.bf16.msra.mxu1 %v4216_v8 }
 0xe06   :  { %2791 = vmatprep.subr.bf16.mxu1 %v4184_v9 }
 0xe09   :  { %2792 = vmatpush3.bf16.msra.mxu1 %v4217_v16 }
 0xe0a   :  { %2817 = vmatprep.subr.bf16.mxu1 %v4184_v9 }
 0xeb7   :  { %v1813_v20 = vpop.f32.mrb[36].mxu1 }
 0xeb8   :  { %v1819_v27 = vpack.c.bf16 %v1813_v20, %v1813_v20  ;;  %v2743_v19 = vpop.f32.mrb[37].mxu1  ;;  %v4236_v20 = vld [vmem:[#allocation29_spill] sm:$0xff] }
 0xeb9   :  { %v1816_v51 = vpop.f32.mrb[38].mxu1 }
 0xeba   :  { %v2744_v17 = vpop.f32.mrb[39].mxu1  ;;  %2794 = vmatmul.mubr.bf16.vlgmr.msra.gmra.mrb[44].mxu1 %v1819_v27 }
 0xebb   :  { %2818 = vmatpush3.bf16.msra.mxu1 %v4218_v35  ;;  %2833 = vmatprep.mubr.msk.bf16.mxu1 %vm3055_vm0, %v4184_v9  ;;  %v4237_v17 = vld [vmem:[#allocation38_spill] sm:$0xff] }
 0xebc   :  { %2819 = vmatprep.subr.bf16.mxu1 %v4184_v9 }
 0xebf   :  { %v1916_v36 = vpop.f32.mrb[40].mxu1  ;;  %2820 = vmatpush3.bf16.msra.mxu1 %v4219_v21 }
 0xec0   :  { %v1922_v22 = vpack.c.bf16 %v1916_v36, %v1916_v36  ;;  %v2755_v37 = vpop.f32.mrb[41].mxu1  ;;  %2821 = vmatprep.subr.bf16.mxu1 %v4184_v9 }
 0xec1   :  { %v1919_v41 = vpop.f32.mrb[42].mxu1 }
 0xec2   :  { %v2756_v42 = vpop.f32.mrb[43].mxu1  ;;  %2774 = vmatmul.mubr.bf16.vlgmr.msra.gmra.mrb[44].mxu0 %v1922_v22 }
 0xec3   :  { %2798 = vmatpush3.bf16.msra.mxu0 %v4220_v52  ;;  %2813 = vmatprep.mubr.msk.bf16.mxu0 %vm3055_vm0, %v4184_v9 }
 0xec4   :  { %2799 = vmatprep.subr.bf16.mxu0 %v4184_v9  ;;  %2822 = vmatpush3.bf16.msra.mxu1 %v4221_v5 }
 0xec5   :  { %2823 = vmatprep.subr.bf16.mxu1 %v4184_v9 }
 0xec7   :  { %2800 = vmatpush3.bf16.msra.mxu0 %v4222_v25 }
 0xec8   :  { %2801 = vmatprep.subr.bf16.mxu0 %v4184_v9  ;;  %2824 = vmatpush3.bf16.msra.mxu1 %v4223_v7 }
 0xec9   :  { %2825 = vmatprep.subr.bf16.mxu1 %v4184_v9 }
 0xecb   :  { %2802 = vmatpush3.bf16.msra.mxu0 %v4224_v4 }
 0xecc   :  { %2803 = vmatprep.subr.bf16.mxu0 %v4184_v9  ;;  %2826 = vmatpush3.bf16.msra.mxu1 %v4225_v1 }
 0xecd   :  { %2827 = vmatprep.subr.bf16.mxu1 %v4184_v9 }
 0xecf   :  { %2804 = vmatpush3.bf16.msra.mxu0 %v4226_v15 }
 0xed0   :  { %2805 = vmatprep.subr.bf16.mxu0 %v4184_v9  ;;  %2828 = vmatpush3.bf16.msra.mxu1 %v4227_v24 }
 0xed1   :  { %2829 = vmatprep.subr.bf16.mxu1 %v4184_v9 }
 0xed3   :  { %2806 = vmatpush3.bf16.msra.mxu0 %v4228_v45 }
 0xed4   :  { %2807 = vmatprep.subr.bf16.mxu0 %v4184_v9  ;;  %2830 = vmatpush3.bf16.msra.mxu1 %v4229_v11 }
 0xed5   :  { %2831 = vmatprep.subr.bf16.mxu1 %v4184_v9 }
 0xed7   :  { %2808 = vmatpush3.bf16.msra.mxu0 %v4230_v14 }
 0xed8   :  { %2809 = vmatprep.subr.bf16.mxu0 %v4184_v9  ;;  %2832 = vmatpush3.bf16.msra.mxu1 %v4231_v10 }
 0xed9   :  { %2860 = vmatprep.subr.bf16.mxu1 %v3058_v48 }
 0xedb   :  { %2810 = vmatpush3.bf16.msra.mxu0 %v4232_v13 }
 0xedc   :  { %2811 = vmatprep.subr.bf16.mxu0 %v4184_v9 }
 0xedf   :  { %2812 = vmatpush3.bf16.msra.mxu0 %v4233_v46 }
 0xee0   :  { %2857 = vmatprep.subr.bf16.mxu0 %v3058_v48 }
 0xf8d   :  { %v1997_v47 = vpop.f32.mrb[44].mxu1 }
 0xf8e   :  { %v2795_v29 = vpop.f32.mrb[45].mxu1 }
 0xf8f   :  { %v2000_v30 = vpop.f32.mrb[46].mxu1 }
 0xf90   :  { %v2796_v31 = vpop.f32.mrb[47].mxu1 }
 0xf95   :  { %v1957_v32 = vpop.f32.mrb[44].mxu0 }
 0xf96   :  { %v1998_v33 = vadd.f32 %v1997_v47, %v1957_v32  ;;  %v2775_v34 = vpop.f32.mrb[45].mxu0 }
 0xf97   :  { %v1960_v39 = vpop.f32.mrb[46].mxu0 }
 0xf98   :  { %v2003_v43 = vadd.f32 %v4234_v40, %v1998_v33  ;;  %v2776_v50 = vpop.f32.mrb[47].mxu0 }
 0xf9a   :  { %v2004_v53 = vadd.f32 %v2003_v43, %v3884_v6  ;;  %v4235_v6 = vld [vmem:[#allocation28_spill] sm:$0xff] }
 0xf9c   :  { %v2005_v54 = vsel %vm1084_vm4, %v2004_v53, 0.0  ;;  %v2009_v56 = vmul.f32 %v2004_v53, %v2004_v53 }
 0xf9d   :  { %2006 = vadd.xlane.f32.xlu1 %v2005_v54 }
 0xf9e   :  { %v2010_v57 = vsel %vm1084_vm4, %v2009_v56, 0.0 }
 0xf9f   :  { %2011 = vadd.xlane.f32.xlu0 %v2010_v57 }
0x102a   :  { %v2007_v48 = vpop.xlane.xlu1 %2006 }
0x102b   :  { %v2008_v58 = vmul.f32 0.03125, %v2007_v48 }
0x102c   :  { %v2012_v59 = vpop.xlane.xlu0 %2011 }
0x102d   :  { %v2014_v60 = vmul.f32 %v2008_v58, %v2008_v58  ;;  %v2013_v61 = vmul.f32 0.03125, %v2012_v59  ;;  %v2017_v2 = vsub.f32 %v2004_v53, %v2008_v58 }
0x102f   :  { %v2015_v62 = vsub.f32 %v2013_v61, %v2014_v60 }
0x1031   :  { %v2016_v63 = vmax.f32 %v2015_v62, 0.0 }
0x1033   :  { %v2018_v0 = vadd.f32 1e-05, %v2016_v63 }
0x1035   :  { %3009 = vrsqrt.f32 %v2018_v0 }
0x103f   :  { %v3010_v3 = vpop.eup %3009 }
0x1040   :  { %v2020_v8 = vmul.f32 %v3010_v3, %v2017_v2 }
0x1042   :  { %v2021_v16 = vmul.f32 %v4235_v6, %v2020_v8 }
0x1044   :  { %v2022_v27 = vadd.f32 %v4236_v20, %v2021_v16 }
0x1046   :  { %v2023_v19 = vpack.c.bf16 %v2022_v27, %v2022_v27 }
0x1048   :  { %2814 = vmatmul.mubr.bf16.vlgmr.msra.gmra.mrb[48].mxu0 %v2023_v19 }
0x1049   :  { %2859 = vmatpush3.bf16.xpose.msra.mxu0 %v3784_v44  ;;  %2841 = vmatprep.mubr.msk.f32.mxu0 %vm3055_vm0, %v4184_v9 }
0x111b   :  { %v2058_v51 = vpop.f32.mrb[48].mxu0 }
0x111c   :  { %v2059_v35 = vadd.f32 %v4237_v17, %v2058_v51  ;;  %v2815_v36 = vpop.f32.mrb[49].mxu0  ;;  %v1537_v17 = vsub.f32 %v3957_v55, %v3805_v12 }
0x111d   :  { %v2061_v21 = vpop.f32.mrb[50].mxu0 }
0x111e   :  { %v2065_v22 = vmul.f32 0.70710677, %v2059_v35  ;;  %v2816_v37 = vpop.f32.mrb[51].mxu0  ;;  %v2064_v33 = vmul.f32 0.5, %v2059_v35 }
0x111f   :  { %v1538_v37 = vmul.f32 %v1537_v17, %v1537_v17 }
0x1120   :  { %v2068_v41 = vand.u32 2147483647, %v2065_v22  ;;  %vm2066_vm10 = vcmp.ge.f32.partialorder %v2065_v22, 0.0 }
0x1121   :  { %v2067_v31 = vsel %vm2066_vm10, 1.0, %v3057_v18 }
0x1122   :  { %v2069_v42 = vmul.f32 0.3275911, %v2068_v41  ;;  %v2082_v5 = vsub.f32 0.0, %v2068_v41 }
0x1124   :  { %v2070_v52 = vadd.f32 1.0, %v2069_v42  ;;  %v2083_v7 = vmul.f32 %v2082_v5, %v2068_v41 }
0x1126   :  { %3011 = vrcp.f32 %v2070_v52  ;;  %v2084_v15 = vmul.f32 1.442695, %v2083_v7 }
0x1128   :  { %3013 = vpow2.f32 %v2084_v15 }
0x1130   :  { %v3012_v25 = vpop.eup %3011 }
0x1131   :  { %v2073_v4 = vmul.f32 1.0614054, %v3012_v25 }
0x1132   :  { %v3014_v47 = vpop.eup %3013 }
0x1133   :  { %v2074_v1 = vadd.f32 -1.4531521, %v2073_v4 }
0x1135   :  { %v2075_v24 = vmul.f32 %v3012_v25, %v2074_v1 }
0x1137   :  { %v2076_v45 = vadd.f32 1.4214138, %v2075_v24 }
0x1139   :  { %v2077_v11 = vmul.f32 %v3012_v25, %v2076_v45 }
0x113b   :  { %v2078_v14 = vadd.f32 -0.28449672, %v2077_v11 }
0x113d   :  { %v2079_v10 = vmul.f32 %v3012_v25, %v2078_v14 }
0x113f   :  { %v2080_v13 = vadd.f32 0.2548296, %v2079_v10 }
0x1141   :  { %v2081_v46 = vmul.f32 %v3012_v25, %v2080_v13 }
0x1143   :  { %v2086_v29 = vmul.f32 %v3014_v47, %v2081_v46 }
0x1145   :  { %v2087_v30 = vsub.f32 1.0, %v2086_v29 }
0x1147   :  { %v2088_v32 = vmul.f32 %v2087_v30, %v2067_v31 }
0x1149   :  { %v2089_v34 = vadd.f32 1.0, %v2088_v32 }
0x114b   :  { %v2090_v39 = vmul.f32 %v2089_v34, %v2064_v33 }
0x114d   :  { %v2091_v40 = vpack.c.bf16 %v2090_v39, %v2090_v39 }
0x114f   :  { %2834 = vmatmul.mubr.bf16.vlgmr.msra.gmra.mrb[48].mxu1 %v2091_v40 }
0x1150   :  { %2862 = vmatpush3.bf16.msra.mxu1 %v3784_v44  ;;  %2848 = vmatprep.mubr.msk.f32.mxu1 %vm3055_vm0, %v4184_v9 }
0x1222   :  { %v2126_v43 = vpop.f32.mrb[48].mxu1 }
0x1223   :  { %v2127_v50 = vadd.f32 %v3771_v26, %v2126_v43  ;;  %v2835_v53 = vpop.f32.mrb[49].mxu1 }
0x1224   :  { %v2129_v54 = vpop.f32.mrb[50].mxu1 }
0x1225   :  { %v2132_v56 = vadd.f32 %v2127_v50, %v2022_v27  ;;  %v2836_v57 = vpop.f32.mrb[51].mxu1 }
0x1227   :  { %v2133_v18 = vsel %vm1084_vm4, %v2132_v56, 0.0  ;;  %v2137_v48 = vmul.f32 %v2132_v56, %v2132_v56 }
0x1228   :  { %2134 = vadd.xlane.f32.xlu1 %v2133_v18 }
0x1229   :  { %v2138_v58 = vsel %vm1084_vm4, %v2137_v48, 0.0 }
0x122a   :  { %2139 = vadd.xlane.f32.xlu0 %v2138_v58 }
0x12b5   :  { %v2135_v59 = vpop.xlane.xlu1 %2134 }
0x12b6   :  { %v2136_v60 = vmul.f32 0.03125, %v2135_v59 }
0x12b7   :  { %v2140_v44 = vpop.xlane.xlu0 %2139 }
0x12b8   :  { %v2142_v61 = vmul.f32 %v2136_v60, %v2136_v60  ;;  %v2141_v62 = vmul.f32 0.03125, %v2140_v44  ;;  %v2145_v26 = vsub.f32 %v2132_v56, %v2136_v60 }
0x12ba   :  { %v2143_v63 = vsub.f32 %v2141_v62, %v2142_v61 }
0x12bc   :  { %v2144_v0 = vmax.f32 %v2143_v63, 0.0 }
0x12be   :  { %v2146_v2 = vadd.f32 1e-05, %v2144_v0 }
0x12c0   :  { %3015 = vrsqrt.f32 %v2146_v2 }
0x12ca   :  { %v3016_v3 = vpop.eup %3015 }
0x12cb   :  { %v2148_v8 = vmul.f32 %v3016_v3, %v2145_v26 }
0x12cd   :  { %v2149_v6 = vmul.f32 %v3796_v49, %v2148_v8 }
0x12cf   :  { %v2150_v16 = vadd.f32 %v3801_v23, %v2149_v6  ;;  %v1539_v23 = vsel %vm1084_vm4, %v1538_v37, 0.0 }
0x12d1   :  { %2842 = vmatmul.mubr.f32.vlgmr.msra.gmra.mrb[26].mxu0 %v2150_v16  ;;  %v2151_v20 = vmul.f32 %v2150_v16, %v2150_v16 }
0x12d3   :  { %v2152_v27 = vsel %vm1084_vm4, %v2151_v20, 0.0 }
0x12d4   :  { %2153 = vadd.xlane.f32.xlu1 %v2152_v27 }
0x1361   :  { %v2154_v19 = vpop.xlane.xlu1 %2153 }
0x1362   :  { %v2225_v35 = vadd.f32 %v3874_v28, %v2154_v19 }
0x13a4   :  { %v2221_v51 = vpop.f32.mrb[26].mxu0 }
0x13a5   :  { %v2226_v36 = vmul.f32 2.0, %v2221_v51  ;;  %v2843_v21 = vpop.f32.mrb[27].mxu0 }
0x13a7   :  { %v2227_v22 = vsub.f32 %v2225_v35, %v2226_v36 }
0x13a9   :  { %v2228_v49 = vsel %vm1447_vm6, %v2227_v22, inf }
0x13aa   :  { %2229 = vmin.xlane.f32.xlu0 %v2228_v49 }
0x13ae   :  { %1540 = vadd.xlane.f32.xlu0 %v1539_v23 }
0x1437   :  { %v2230_v41 = vpop.xlane.xlu0 %2229 }
0x1438   :  { %vm2231_vm11 = vcmp.le.f32.partialorder %v2227_v22, %v2230_v41 }
0x1439   :  { %v2232_v42 = vsel %vm2231_vm11, %v3879_v38, 16.0 }
0x143a   :  { %v2233_v52 = vsel %vm1447_vm6, %v2232_v42, inf }
0x143b   :  { %2234 = vmin.xlane.f32.xlu1 %v2233_v52  ;;  %v1541_v12 = vpop.xlane.xlu0 %1540 }
0x143c   :  { %v1542_v55 = vrot.slane %v1541_v12, 4 }
0x143e   :  { %v1543_v28 = vadd.f32 %v1542_v55, %v1541_v12 }
0x1440   :  { %v1544_v5 = vrot.slane %v1543_v28, 2 }
0x1442   :  { %v1545_v25 = vadd.f32 %v1544_v5, %v1543_v28 }
0x1444   :  { %v1546_v7 = vrot.slane %v1545_v25, 1 }
0x1446   :  { %v1547_v4 = vadd.f32 %v1546_v7, %v1545_v25 }
0x1448   :  { %2863 = vpush %v1547_v4 }
0x1479   :  { %s2864_s24 = spop %2863 }
0x14c8   :  { %v2235_v1 = vpop.xlane.xlu1 %2234 }
0x14c9   :  { %vm2236_vm12 = vcmp.eq.f32.partialorder %v3879_v38, %v2235_v1 }
0x14ca   :  { %v2454_v15 = vsel %vm2236_vm12, 1.0, %v4184_v9 }
0x14cb   :  { %2849 = vmatmul.mubr.msk.f32.vlgmr.msra.gmra.mrb[26].mxu1 %vm1462_vm8, %v2454_v15 }
0x159e   :  { %v2308_v24 = vpop.f32.mrb[26].mxu1 }
0x159f   :  { %2456 = vst [vmem:[%s4118_s17 + $0x4] sm:$0xf] %v2308_v24  ;;  %v2314_v45 = vsub.f32 %v2308_v24, %v2150_v16  ;;  %v2850_v11 = vpop.f32.mrb[27].mxu1 }
0x15a1   :  { %v2315_v14 = vmul.f32 %v2314_v45, %v2314_v45 }
0x15a3   :  { %v2316_v10 = vsel %vm1084_vm4, %v2315_v14, 0.0 }
0x15a4   :  { %2317 = vadd.xlane.f32.xlu1 %v2316_v10 }
0x1631   :  { %v2318_v13 = vpop.xlane.xlu1 %2317 }
0x1632   :  { %v2319_v46 = vrot.slane %v2318_v13, 4 }
0x1634   :  { %v2320_v47 = vadd.f32 %v2319_v46, %v2318_v13 }
0x1636   :  { %v2321_v29 = vrot.slane %v2320_v47, 2 }
0x1638   :  { %v2322_v38 = vadd.f32 %v2321_v29, %v2320_v47 }
0x163a   :  { %v2323_v30 = vrot.slane %v2322_v38, 1 }
0x163c   :  { %v2324_v9 = vadd.f32 %v2323_v30, %v2322_v38 }
0x163e   :  { %2865 = vpush %v2324_v9 }
0x166f   :  { %s2866_s25 = spop %2865 }
0x1670   :  { %s2326_s26 = sadd.f32 %s2866_s25, %s2864_s24 }
0x1672   :  { %s2327_s13 = smul.f32 1.25, %s2326_s26 }
0x1674   :  { %s2330_s14 = smul.f32 0.00390625, %s2327_s13 }
0x1676   :  { %2332 = sst [smem:[#allocation2]] %s2330_s14 }
0x1677   :  { %3051 = shalt.err (!%p3048_p2)
}
0x1678   :  { %s3059_s19 = smov [#allocation2]  }
0x1679   :  { %2342 = dma.smem_to_hbm %s3059_s19, 16, %s4119_s18, [#allocation3]  }
0x167a   :  { %3052 = dma.done.wait [#allocation3], 16  }
0x167b   :  { %3053 = vsyncadd [#allocation3], 4294967280 }
0x167c   :  { %2348 = sfence }
0x167d   :  { %2349 = vsyncpa [#allocation3], 1 }

</bundles_post_ra>
